<compile_context>
chip_gen: v7x
topology: tpu7x:2x2x1
jax: 0.10.0
libtpu: 0.0.40
codegen_flags: <defaults>
</compile_context>

<pallas_src>
import functools

import jax
import jax.numpy as jnp
from jax.experimental import pallas as pl
from jax.experimental.pallas import tpu as pltpu

BN_EPS = 1e-5
D = 784            # 1*28*28, fixed by MLP([(784,256),(256,256),(256,784)])
DP = 896           # 784 padded up to 7*128 for lane-dense layout
H = 256
H2 = 2 * H         # concatenated s/t hidden width of the shared first layer
D1 = D2 = 28
NUM_COUPLING = 6
NUM_FLOW_BN = 4


# ----------------------------------------------------------------------------
# Kernel: one grid step == one coupling layer (+ optional flow-BN)
# ----------------------------------------------------------------------------
def _flow_step_kernel(x_ref, rv_ref, masks_ref, valid_ref,
                      w1_ref, v1_ref, w2_ref, v2_ref, w3_ref, b3_ref, bnp_ref,
                      y_ref, ld_ref, *, n_real):
  li = pl.program_id(0)

  # y_ref / ld_ref are revisited (same block every step): they act as the
  # resident activation / logdet accumulators. Initialize once.
  @pl.when(li == 0)
  def _init():
    y_ref[...] = x_ref[...]
    ld_ref[...] = jnp.zeros_like(ld_ref)

  h = y_ref[...]                       # (Np, DP) f32, pad lanes/rows are 0
  rv = rv_ref[...] > 0.0               # (Np, 1) row-valid mask
  inv_n = 1.0 / float(n_real)

  def batch_stats(z):
    # Training-mode (biased) batch statistics over the real rows only,
    # single sweep: var = E[z^2] - mu^2.
    zm = jnp.where(rv, z, 0.0)
    mu = jnp.sum(zm, axis=0, keepdims=True) * inv_n
    ex2 = jnp.sum(zm * zm, axis=0, keepdims=True) * inv_n
    var = jnp.maximum(ex2 - mu * mu, 0.0)
    return mu, var

  def bn_relu(z, g, b):
    mu, var = batch_stats(z)
    return jnp.maximum((z - mu) * jax.lax.rsqrt(var + BN_EPS) * g + b, 0.0)

  # ---- Affine coupling layer li ----
  mask = masks_ref[...]                # (1, DP); pad lanes are 1 => inv_mask 0
  inv_mask = 1.0 - mask
  xm = h * mask
  xm16 = xm.astype(jnp.bfloat16)

  # Shared first layer: s-net and t-net W1 concatenated -> single matmul.
  v1 = v1_ref[...]                     # (3, 2H) = [b1 ; gamma1 ; beta1]
  z = jnp.dot(xm16, w1_ref[...], preferred_element_type=jnp.float32) + v1[0:1]
  z = bn_relu(z, v1[1:2], v1[2:3])     # (Np, 2H)

  st = []
  for k in range(2):                   # k=0 -> s-net, k=1 -> t-net
    hk = z[:, k * H:(k + 1) * H].astype(jnp.bfloat16)
    v2 = v2_ref[k]                     # (3, H) = [b2 ; gamma2 ; beta2]
    zk = jnp.dot(hk, w2_ref[k], preferred_element_type=jnp.float32) + v2[0:1]
    zk = bn_relu(zk, v2[1:2], v2[2:3])
    ok = jnp.dot(zk.astype(jnp.bfloat16), w3_ref[k],
                 preferred_element_type=jnp.float32) + b3_ref[k]
    st.append(ok * inv_mask)           # exactly 0 in masked + pad lanes
  s, t = st

  y_ref[...] = xm + inv_mask * (h * jnp.exp(s) + t)
  ld_ref[...] = ld_ref[...] + jnp.sum(s, axis=1, keepdims=True)

  # ---- Interleaved flow BatchNorm (after couplings 0..3 only) ----
  @pl.when(li < NUM_FLOW_BN)
  def _flow_bn():
    bi = jnp.minimum(li, NUM_FLOW_BN - 1)
    p = bnp_ref[bi]                    # (2, DP) = [log_gamma ; beta]
    lg, beta = p[0:1], p[1:2]
    hc = y_ref[...]
    mu, var = batch_stats(hc)
    y_ref[...] = (hc - mu) * jax.lax.rsqrt(var + BN_EPS) * jnp.exp(lg) + beta
    # Restrict the logdet sum to real (non-pad) features.
    bn_ld = jnp.sum(valid_ref[...] * (lg - 0.5 * jnp.log(var + BN_EPS)))
    ld_ref[...] = ld_ref[...] + bn_ld


# ----------------------------------------------------------------------------
# Parameter construction (deterministic, PyTorch-default-like init)
# ----------------------------------------------------------------------------
def _init_linear(key, fan_in, fan_out):
  kw, kb = jax.random.split(key)
  bound = 1.0 / (float(fan_in) ** 0.5)
  w = jax.random.uniform(kw, (fan_in, fan_out), jnp.float32, -bound, bound)
  b = jax.random.uniform(kb, (fan_out,), jnp.float32, -bound, bound)
  return w, b


def _init_net(key):
  k1, k2, k3 = jax.random.split(key, 3)
  w1, b1 = _init_linear(k1, D, H)
  w2, b2 = _init_linear(k2, H, H)
  w3, b3 = _init_linear(k3, H, D)
  return (w1, b1, w2, b2, w3, b3)


def _make_masks():
  # mask1[j][i] = 1 if (i + j) % 2 else 0, flattened to (1, 784).
  i = jnp.arange(D1)[None, :]
  j = jnp.arange(D2)[:, None]
  mask1 = ((i + j) % 2).astype(jnp.float32).reshape(1, D)
  return mask1, 1.0 - mask1


def build_flow_params(key):
  mask1, mask2 = _make_masks()
  pad = DP - D
  coupling_masks = [mask1, mask2, mask1, mask2, mask1, mask2]

  masks, w1_all, v1_all = [], [], []
  w2_all, v2_all, w3_all, b3_all = [], [], [], []

  for li in range(NUM_COUPLING):
    key, ks, kt = jax.random.split(key, 3)
    nets = (_init_net(ks), _init_net(kt))             # (s-net, t-net)

    # Shared first layer: concat along output dim, zero-pad the input dim.
    w1c = jnp.concatenate([nets[0][0], nets[1][0]], axis=1)      # (D, 2H)
    w1c = jnp.pad(w1c, ((0, pad), (0, 0)))                       # (DP, 2H)
    b1c = jnp.concatenate([nets[0][1], nets[1][1]])              # (2H,)
    w1_all.append(w1c.astype(jnp.bfloat16))
    v1_all.append(jnp.stack([b1c,
                             jnp.ones((H2,), jnp.float32),
                             jnp.zeros((H2,), jnp.float32)]))    # (3, 2H)

    w2_l, v2_l, w3_l, b3_l = [], [], [], []
    for k in range(2):
      _, _, w2, b2, w3, b3 = nets[k]
      w2_l.append(w2.astype(jnp.bfloat16))                       # (H, H)
      v2_l.append(jnp.stack([b2,
                             jnp.ones((H,), jnp.float32),
                             jnp.zeros((H,), jnp.float32)]))     # (3, H)
      w3_l.append(jnp.pad(w3, ((0, 0), (0, pad))).astype(jnp.bfloat16))
      b3_l.append(jnp.pad(b3, (0, pad))[None, :])                # (1, DP)
    w2_all.append(jnp.stack(w2_l))       # (2, H, H)
    v2_all.append(jnp.stack(v2_l))       # (2, 3, H)
    w3_all.append(jnp.stack(w3_l))       # (2, H, DP)
    b3_all.append(jnp.stack(b3_l))       # (2, 1, DP)

    # Pad mask lanes with ONES so inv_mask == 0 there (robust pad invariant).
    masks.append(jnp.pad(coupling_masks[li], ((0, 0), (0, pad)),
                         constant_values=1.0))                   # (1, DP)

  bnp = jnp.zeros((NUM_FLOW_BN, 2, DP), jnp.float32)   # [log_gamma ; beta]
  valid = jnp.pad(jnp.ones((1, D), jnp.float32), ((0, 0), (0, pad)))

  return dict(
      masks=jnp.stack(masks),          # (6, 1, DP)    f32
      valid=valid,                     # (1, DP)       f32
      w1=jnp.stack(w1_all),            # (6, DP, 2H)   bf16
      v1=jnp.stack(v1_all),            # (6, 3, 2H)    f32
      w2=jnp.stack(w2_all),            # (6, 2, H, H)  bf16
      v2=jnp.stack(v2_all),            # (6, 2, 3, H)  f32
      w3=jnp.stack(w3_all),            # (6, 2, H, DP) bf16
      b3=jnp.stack(b3_all),            # (6, 2, 1, DP) f32
      bnp=bnp,                         # (4, 2, DP)    f32
  )


# ----------------------------------------------------------------------------
# Full forward (SequentialFlow: C BN C BN C BN C BN C C) in one pallas_call
# ----------------------------------------------------------------------------
@jax.jit
def stacked_affine_coupling_flow_forward(x, params):
  n = x.shape[0]
  n_pad = ((n + 7) // 8) * 8
  h = x.reshape(n, -1).astype(jnp.float32)             # (N, 784)
  assert h.shape[1] == D, h.shape
  h = jnp.pad(h, ((0, n_pad - n), (0, DP - D)))         # (N_pad, 896)
  rv = (jnp.arange(n_pad) < n).astype(jnp.float32)[:, None]   # (N_pad, 1)

  in_specs = [
      pl.BlockSpec((n_pad, DP), lambda li: (0, 0)),            # x (resident)
      pl.BlockSpec((n_pad, 1), lambda li: (0, 0)),             # row-valid
      pl.BlockSpec((None, 1, DP), lambda li: (li, 0, 0)),      # mask[li]
      pl.BlockSpec((1, DP), lambda li: (0, 0)),                # valid lanes
      pl.BlockSpec((None, DP, H2), lambda li: (li, 0, 0)),     # w1[li]
      pl.BlockSpec((None, 3, H2), lambda li: (li, 0, 0)),      # v1[li]
      pl.BlockSpec((None, 2, H, H), lambda li: (li, 0, 0, 0)),   # w2[li]
      pl.BlockSpec((None, 2, 3, H), lambda li: (li, 0, 0, 0)),   # v2[li]
      pl.BlockSpec((None, 2, H, DP), lambda li: (li, 0, 0, 0)),  # w3[li]
      pl.BlockSpec((None, 2, 1, DP), lambda li: (li, 0, 0, 0)),  # b3[li]
      pl.BlockSpec((NUM_FLOW_BN, 2, DP), lambda li: (0, 0, 0)),  # flow-BN prm
  ]
  out_specs = (
      pl.BlockSpec((n_pad, DP), lambda li: (0, 0)),    # y   (resident acc)
      pl.BlockSpec((n_pad, 128), lambda li: (0, 0)),   # logdet (lane-dense)
  )

  wbytes = sum(int(v.size) * v.dtype.itemsize for v in params.values())
  flops = 2 * n_pad * NUM_COUPLING * (DP * H2 + 2 * H * H + 2 * H * DP)
  trans = n_pad * NUM_COUPLING * (DP + H2 + 2 * H) + NUM_FLOW_BN * n_pad * DP

  y_pad, ld = pl.pallas_call(
      functools.partial(_flow_step_kernel, n_real=n),
      grid=(NUM_COUPLING,),
      in_specs=in_specs,
      out_specs=out_specs,
      out_shape=(jax.ShapeDtypeStruct((n_pad, DP), jnp.float32),
                 jax.ShapeDtypeStruct((n_pad, 128), jnp.float32)),
      compiler_params=pltpu.CompilerParams(
          dimension_semantics=("arbitrary",),
          vmem_limit_bytes=32 << 20),
      cost_estimate=pl.CostEstimate(
          flops=flops, transcendentals=trans,
          bytes_accessed=wbytes + (2 * n_pad * DP + n_pad * 129) * 4),
  )(h, rv, params['masks'], params['valid'], params['w1'], params['v1'],
    params['w2'], params['v2'], params['w3'], params['b3'], params['bnp'])

  y = y_pad[:n, :D].reshape(x.shape)
  return y, ld[:n, 0]


if __name__ == "__main__":
  key = jax.random.PRNGKey(0)
  k_x, k_p = jax.random.split(key)
  # Batch 2; spatial shape fixed at (1, 28, 28) by the 784-wide MLPs.
  x = jax.random.normal(k_x, (2, 1, 28, 28), jnp.float32)
  params = build_flow_params(k_p)

  y, logdet_j = stacked_affine_coupling_flow_forward(x, params)
  y = jax.block_until_ready(y)
  logdet_j = jax.block_until_ready(logdet_j)

  assert y.shape == x.shape, y.shape
  assert logdet_j.shape == (x.shape[0],), logdet_j.shape
  assert bool(jnp.all(jnp.isfinite(y))) and bool(jnp.all(jnp.isfinite(logdet_j)))
  print("KERNEL_OK")
</pallas_src>

<mosaic_0001>
module attributes {stable_mosaic.version = 11 : i64} {
  func.func @_flow_step_kernel(%arg0: i32, %arg1: memref<8x896xf32, #tpu.memory_space<vmem>>, %arg2: memref<8x1xf32, #tpu.memory_space<vmem>>, %arg3: memref<1x1x896xf32, #tpu.memory_space<vmem>>, %arg4: memref<1x896xf32, #tpu.memory_space<vmem>>, %arg5: memref<1x896x512xbf16, #tpu.memory_space<vmem>>, %arg6: memref<1x3x512xf32, #tpu.memory_space<vmem>>, %arg7: memref<1x2x256x256xbf16, #tpu.memory_space<vmem>>, %arg8: memref<1x2x3x256xf32, #tpu.memory_space<vmem>>, %arg9: memref<1x2x256x896xbf16, #tpu.memory_space<vmem>>, %arg10: memref<1x2x1x896xf32, #tpu.memory_space<vmem>>, %arg11: memref<4x2x896xf32, #tpu.memory_space<vmem>>, %arg12: memref<8x896xf32, #tpu.memory_space<vmem>>, %arg13: memref<8x128xf32, #tpu.memory_space<vmem>>) attributes {dimension_semantics = [#tpu.dimension_semantics<arbitrary>], iteration_bounds = array<i64: 6>, scalar_prefetch = 0 : i64, scratch_operands = 0 : i64, tpu.core_type = #tpu.core_type<tc>, window_params = [{pipeline_mode = #tpu.pipeline_mode<synchronous>, transform_indices = @transform_0, window_bounds = array<i64: 8, 896>}, {pipeline_mode = #tpu.pipeline_mode<synchronous>, transform_indices = @transform_1, window_bounds = array<i64: 8, 1>}, {transform_indices = @transform_2, window_bounds = array<i64: 1, 1, 896>}, {pipeline_mode = #tpu.pipeline_mode<synchronous>, transform_indices = @transform_3, window_bounds = array<i64: 1, 896>}, {transform_indices = @transform_4, window_bounds = array<i64: 1, 896, 512>}, {transform_indices = @transform_5, window_bounds = array<i64: 1, 3, 512>}, {transform_indices = @transform_6, window_bounds = array<i64: 1, 2, 256, 256>}, {transform_indices = @transform_7, window_bounds = array<i64: 1, 2, 3, 256>}, {transform_indices = @transform_8, window_bounds = array<i64: 1, 2, 256, 896>}, {transform_indices = @transform_9, window_bounds = array<i64: 1, 2, 1, 896>}, {pipeline_mode = #tpu.pipeline_mode<synchronous>, transform_indices = @transform_10, window_bounds = array<i64: 4, 2, 896>}, {pipeline_mode = #tpu.pipeline_mode<synchronous>, transform_indices = @transform_11, window_bounds = array<i64: 8, 896>}, {pipeline_mode = #tpu.pipeline_mode<synchronous>, transform_indices = @transform_12, window_bounds = array<i64: 8, 128>}]} {
    %c0_i32 = arith.constant 0 : i32
    %0 = arith.cmpi eq, %arg0, %c0_i32 : i32
    %1 = arith.extui %0 : i1 to i32
    %c0_i32_0 = arith.constant 0 : i32
    %2 = arith.cmpi ne, %1, %c0_i32_0 : i32
    scf.if %2 {
      %c0_82 = arith.constant 0 : index
      %c0_83 = arith.constant 0 : index
      %174 = vector.load %arg1[%c0_82, %c0_83] : memref<8x896xf32, #tpu.memory_space<vmem>>, vector<8x896xf32>
      %c0_84 = arith.constant 0 : index
      %c0_85 = arith.constant 0 : index
      %175 = vector.load %arg12[%c0_84, %c0_85] : memref<8x896xf32, #tpu.memory_space<vmem>>, vector<8x896xf32>
      tpu.vector_store %arg12[%c0_84, %c0_85], %174 {strides = array<i32>} : memref<8x896xf32, #tpu.memory_space<vmem>>, vector<8x896xf32>,
      %cst_86 = arith.constant 0.000000e+00 : f32
      %176 = vector.broadcast %cst_86 : f32 to vector<8x128xf32>
      %c0_87 = arith.constant 0 : index
      %c0_88 = arith.constant 0 : index
      %177 = vector.load %arg13[%c0_87, %c0_88] : memref<8x128xf32, #tpu.memory_space<vmem>>, vector<8x128xf32>
      tpu.vector_store %arg13[%c0_87, %c0_88], %176 {strides = array<i32>} : memref<8x128xf32, #tpu.memory_space<vmem>>, vector<8x128xf32>,
    } else {
    }
    %c0 = arith.constant 0 : index
    %c0_1 = arith.constant 0 : index
    %3 = vector.load %arg12[%c0, %c0_1] : memref<8x896xf32, #tpu.memory_space<vmem>>, vector<8x896xf32>
    %c0_2 = arith.constant 0 : index
    %c0_3 = arith.constant 0 : index
    %4 = vector.load %arg2[%c0_2, %c0_3] : memref<8x1xf32, #tpu.memory_space<vmem>>, vector<8x1xf32>
    %cst = arith.constant 0.000000e+00 : f32
    %5 = vector.broadcast %cst : f32 to vector<8x1xf32>
    %6 = arith.cmpf ogt, %4, %5 : vector<8x1xf32>
    %c0_4 = arith.constant 0 : index
    %c0_5 = arith.constant 0 : index
    %c0_6 = arith.constant 0 : index
    %7 = vector.load %arg3[%c0_4, %c0_5, %c0_6] : memref<1x1x896xf32, #tpu.memory_space<vmem>>, vector<1x1x896xf32>
    %8 = vector.shape_cast %7 : vector<1x1x896xf32> to vector<1x896xf32>
    %cst_7 = arith.constant 1.000000e+00 : f32
    %9 = vector.broadcast %cst_7 : f32 to vector<1x896xf32>
    %10 = arith.subf %9, %8 : vector<1x896xf32>
    %11 = vector.broadcast %8 : vector<1x896xf32> to vector<8x896xf32>
    %12 = arith.mulf %3, %11 : vector<8x896xf32>
    %13 = arith.truncf %12 : vector<8x896xf32> to vector<8x896xbf16>
    %c0_8 = arith.constant 0 : index
    %c0_9 = arith.constant 0 : index
    %c0_10 = arith.constant 0 : index
    %14 = vector.load %arg6[%c0_8, %c0_9, %c0_10] : memref<1x3x512xf32, #tpu.memory_space<vmem>>, vector<1x3x512xf32>
    %15 = vector.shape_cast %14 : vector<1x3x512xf32> to vector<3x512xf32>
    %c0_11 = arith.constant 0 : index
    %c0_12 = arith.constant 0 : index
    %c0_13 = arith.constant 0 : index
    %16 = vector.load %arg5[%c0_11, %c0_12, %c0_13] : memref<1x896x512xbf16, #tpu.memory_space<vmem>>, vector<1x896x512xbf16>
    %17 = vector.shape_cast %16 : vector<1x896x512xbf16> to vector<896x512xbf16>
    %cst_14 = arith.constant dense<0.000000e+00> : vector<8x512xf32>
    %18 = tpu.matmul %13, %17, %cst_14 {dimension_numbers = #tpu.dot_dimension_numbers<[1], [0], [0], [1], [0, 0, 1, 1], [], []>} : vector<8x896xbf16>, vector<896x512xbf16>, vector<8x512xf32> -> vector<8x512xf32>
    %19 = vector.extract_strided_slice %15 {offsets = [0, 0], sizes = [1, 512], strides = [1, 1]} : vector<3x512xf32> to vector<1x512xf32>
    %20 = vector.broadcast %19 : vector<1x512xf32> to vector<8x512xf32>
    %21 = arith.addf %18, %20 : vector<8x512xf32>
    %22 = vector.extract_strided_slice %15 {offsets = [1, 0], sizes = [1, 512], strides = [1, 1]} : vector<3x512xf32> to vector<1x512xf32>
    %23 = vector.extract_strided_slice %15 {offsets = [2, 0], sizes = [1, 512], strides = [1, 1]} : vector<3x512xf32> to vector<1x512xf32>
    %cst_15 = arith.constant 0.000000e+00 : f32
    %24 = vector.shape_cast %6 : vector<8x1xi1> to vector<8x1xi1>
    %25 = vector.broadcast %24 : vector<8x1xi1> to vector<8x512xi1>
    %26 = vector.broadcast %cst_15 : f32 to vector<8x512xf32>
    %27 = arith.select %25, %21, %26 : vector<8x512xi1>, vector<8x512xf32>
    %cst_16 = arith.constant dense<0.000000e+00> : vector<512xf32>
    %28 = vector.multi_reduction <add>, %27, %cst_16 [0] : vector<8x512xf32> to vector<512xf32>
    %29 = vector.shape_cast %28 : vector<512xf32> to vector<1x512xf32>
    %cst_17 = arith.constant 5.000000e-01 : f32
    %30 = vector.broadcast %cst_17 : f32 to vector<1x512xf32>
    %31 = arith.mulf %29, %30 : vector<1x512xf32>
    %32 = arith.mulf %27, %27 : vector<8x512xf32>
    %cst_18 = arith.constant dense<0.000000e+00> : vector<512xf32>
    %33 = vector.multi_reduction <add>, %32, %cst_18 [0] : vector<8x512xf32> to vector<512xf32>
    %34 = vector.shape_cast %33 : vector<512xf32> to vector<1x512xf32>
    %cst_19 = arith.constant 5.000000e-01 : f32
    %35 = vector.broadcast %cst_19 : f32 to vector<1x512xf32>
    %36 = arith.mulf %34, %35 : vector<1x512xf32>
    %37 = arith.mulf %31, %31 : vector<1x512xf32>
    %38 = arith.subf %36, %37 : vector<1x512xf32>
    %cst_20 = arith.constant 0.000000e+00 : f32
    %39 = vector.broadcast %cst_20 : f32 to vector<1x512xf32>
    %40 = arith.maximumf %38, %39 : vector<1x512xf32>
    %41 = vector.broadcast %31 : vector<1x512xf32> to vector<8x512xf32>
    %42 = arith.subf %21, %41 : vector<8x512xf32>
    %cst_21 = arith.constant 9.99999974E-6 : f32
    %43 = vector.broadcast %cst_21 : f32 to vector<1x512xf32>
    %44 = arith.addf %40, %43 : vector<1x512xf32>
    %45 = math.rsqrt %44 : vector<1x512xf32>
    %46 = vector.broadcast %45 : vector<1x512xf32> to vector<8x512xf32>
    %47 = arith.mulf %42, %46 : vector<8x512xf32>
    %48 = vector.broadcast %22 : vector<1x512xf32> to vector<8x512xf32>
    %49 = arith.mulf %47, %48 : vector<8x512xf32>
    %50 = vector.broadcast %23 : vector<1x512xf32> to vector<8x512xf32>
    %51 = arith.addf %49, %50 : vector<8x512xf32>
    %cst_22 = arith.constant 0.000000e+00 : f32
    %52 = vector.broadcast %cst_22 : f32 to vector<8x512xf32>
    %53 = arith.maximumf %51, %52 : vector<8x512xf32>
    %54 = vector.extract_strided_slice %53 {offsets = [0, 0], sizes = [8, 256], strides = [1, 1]} : vector<8x512xf32> to vector<8x256xf32>
    %55 = arith.truncf %54 : vector<8x256xf32> to vector<8x256xbf16>
    %c0_23 = arith.constant 0 : index
    %c0_24 = arith.constant 0 : index
    %c0_25 = arith.constant 0 : index
    %c0_26 = arith.constant 0 : index
    %56 = vector.load %arg8[%c0_23, %c0_24, %c0_25, %c0_26] : memref<1x2x3x256xf32, #tpu.memory_space<vmem>>, vector<1x1x3x256xf32>
    %57 = vector.shape_cast %56 : vector<1x1x3x256xf32> to vector<3x256xf32>
    %c0_27 = arith.constant 0 : index
    %c0_28 = arith.constant 0 : index
    %c0_29 = arith.constant 0 : index
    %c0_30 = arith.constant 0 : index
    %58 = vector.load %arg7[%c0_27, %c0_28, %c0_29, %c0_30] : memref<1x2x256x256xbf16, #tpu.memory_space<vmem>>, vector<1x1x256x256xbf16>
    %59 = vector.shape_cast %58 : vector<1x1x256x256xbf16> to vector<256x256xbf16>
    %cst_31 = arith.constant dense<0.000000e+00> : vector<8x256xf32>
    %60 = tpu.matmul %55, %59, %cst_31 {dimension_numbers = #tpu.dot_dimension_numbers<[1], [0], [0], [1], [0, 0, 1, 1], [], []>} : vector<8x256xbf16>, vector<256x256xbf16>, vector<8x256xf32> -> vector<8x256xf32>
    %61 = vector.extract_strided_slice %57 {offsets = [0, 0], sizes = [1, 256], strides = [1, 1]} : vector<3x256xf32> to vector<1x256xf32>
    %62 = vector.broadcast %61 : vector<1x256xf32> to vector<8x256xf32>
    %63 = arith.addf %60, %62 : vector<8x256xf32>
    %64 = vector.extract_strided_slice %57 {offsets = [1, 0], sizes = [1, 256], strides = [1, 1]} : vector<3x256xf32> to vector<1x256xf32>
    %65 = vector.extract_strided_slice %57 {offsets = [2, 0], sizes = [1, 256], strides = [1, 1]} : vector<3x256xf32> to vector<1x256xf32>
    %cst_32 = arith.constant 0.000000e+00 : f32
    %66 = vector.shape_cast %6 : vector<8x1xi1> to vector<8x1xi1>
    %67 = vector.broadcast %66 : vector<8x1xi1> to vector<8x256xi1>
    %68 = vector.broadcast %cst_32 : f32 to vector<8x256xf32>
    %69 = arith.select %67, %63, %68 : vector<8x256xi1>, vector<8x256xf32>
    %cst_33 = arith.constant dense<0.000000e+00> : vector<256xf32>
    %70 = vector.multi_reduction <add>, %69, %cst_33 [0] : vector<8x256xf32> to vector<256xf32>
    %71 = vector.shape_cast %70 : vector<256xf32> to vector<1x256xf32>
    %cst_34 = arith.constant 5.000000e-01 : f32
    %72 = vector.broadcast %cst_34 : f32 to vector<1x256xf32>
    %73 = arith.mulf %71, %72 : vector<1x256xf32>
    %74 = arith.mulf %69, %69 : vector<8x256xf32>
    %cst_35 = arith.constant dense<0.000000e+00> : vector<256xf32>
    %75 = vector.multi_reduction <add>, %74, %cst_35 [0] : vector<8x256xf32> to vector<256xf32>
    %76 = vector.shape_cast %75 : vector<256xf32> to vector<1x256xf32>
    %cst_36 = arith.constant 5.000000e-01 : f32
    %77 = vector.broadcast %cst_36 : f32 to vector<1x256xf32>
    %78 = arith.mulf %76, %77 : vector<1x256xf32>
    %79 = arith.mulf %73, %73 : vector<1x256xf32>
    %80 = arith.subf %78, %79 : vector<1x256xf32>
    %cst_37 = arith.constant 0.000000e+00 : f32
    %81 = vector.broadcast %cst_37 : f32 to vector<1x256xf32>
    %82 = arith.maximumf %80, %81 : vector<1x256xf32>
    %83 = vector.broadcast %73 : vector<1x256xf32> to vector<8x256xf32>
    %84 = arith.subf %63, %83 : vector<8x256xf32>
    %cst_38 = arith.constant 9.99999974E-6 : f32
    %85 = vector.broadcast %cst_38 : f32 to vector<1x256xf32>
    %86 = arith.addf %82, %85 : vector<1x256xf32>
    %87 = math.rsqrt %86 : vector<1x256xf32>
    %88 = vector.broadcast %87 : vector<1x256xf32> to vector<8x256xf32>
    %89 = arith.mulf %84, %88 : vector<8x256xf32>
    %90 = vector.broadcast %64 : vector<1x256xf32> to vector<8x256xf32>
    %91 = arith.mulf %89, %90 : vector<8x256xf32>
    %92 = vector.broadcast %65 : vector<1x256xf32> to vector<8x256xf32>
    %93 = arith.addf %91, %92 : vector<8x256xf32>
    %cst_39 = arith.constant 0.000000e+00 : f32
    %94 = vector.broadcast %cst_39 : f32 to vector<8x256xf32>
    %95 = arith.maximumf %93, %94 : vector<8x256xf32>
    %96 = arith.truncf %95 : vector<8x256xf32> to vector<8x256xbf16>
    %c0_40 = arith.constant 0 : index
    %c0_41 = arith.constant 0 : index
    %c0_42 = arith.constant 0 : index
    %c0_43 = arith.constant 0 : index
    %97 = vector.load %arg9[%c0_40, %c0_41, %c0_42, %c0_43] : memref<1x2x256x896xbf16, #tpu.memory_space<vmem>>, vector<1x1x256x896xbf16>
    %98 = vector.shape_cast %97 : vector<1x1x256x896xbf16> to vector<256x896xbf16>
    %cst_44 = arith.constant dense<0.000000e+00> : vector<8x896xf32>
    %99 = tpu.matmul %96, %98, %cst_44 {dimension_numbers = #tpu.dot_dimension_numbers<[1], [0], [0], [1], [0, 0, 1, 1], [], []>} : vector<8x256xbf16>, vector<256x896xbf16>, vector<8x896xf32> -> vector<8x896xf32>
    %c0_45 = arith.constant 0 : index
    %c0_46 = arith.constant 0 : index
    %c0_47 = arith.constant 0 : index
    %c0_48 = arith.constant 0 : index
    %100 = vector.load %arg10[%c0_45, %c0_46, %c0_47, %c0_48] : memref<1x2x1x896xf32, #tpu.memory_space<vmem>>, vector<1x1x1x896xf32>
    %101 = vector.shape_cast %100 : vector<1x1x1x896xf32> to vector<1x896xf32>
    %102 = vector.broadcast %101 : vector<1x896xf32> to vector<8x896xf32>
    %103 = arith.addf %99, %102 : vector<8x896xf32>
    %104 = vector.broadcast %10 : vector<1x896xf32> to vector<8x896xf32>
    %105 = arith.mulf %103, %104 : vector<8x896xf32>
    %106 = vector.extract_strided_slice %53 {offsets = [0, 256], sizes = [8, 256], strides = [1, 1]} : vector<8x512xf32> to vector<8x256xf32>
    %107 = arith.truncf %106 : vector<8x256xf32> to vector<8x256xbf16>
    %c0_49 = arith.constant 0 : index
    %c1 = arith.constant 1 : index
    %c0_50 = arith.constant 0 : index
    %c0_51 = arith.constant 0 : index
    %108 = vector.load %arg8[%c0_49, %c1, %c0_50, %c0_51] : memref<1x2x3x256xf32, #tpu.memory_space<vmem>>, vector<1x1x3x256xf32>
    %109 = vector.shape_cast %108 : vector<1x1x3x256xf32> to vector<3x256xf32>
    %c0_52 = arith.constant 0 : index
    %c1_53 = arith.constant 1 : index
    %c0_54 = arith.constant 0 : index
    %c0_55 = arith.constant 0 : index
    %110 = vector.load %arg7[%c0_52, %c1_53, %c0_54, %c0_55] : memref<1x2x256x256xbf16, #tpu.memory_space<vmem>>, vector<1x1x256x256xbf16>
    %111 = vector.shape_cast %110 : vector<1x1x256x256xbf16> to vector<256x256xbf16>
    %cst_56 = arith.constant dense<0.000000e+00> : vector<8x256xf32>
    %112 = tpu.matmul %107, %111, %cst_56 {dimension_numbers = #tpu.dot_dimension_numbers<[1], [0], [0], [1], [0, 0, 1, 1], [], []>} : vector<8x256xbf16>, vector<256x256xbf16>, vector<8x256xf32> -> vector<8x256xf32>
    %113 = vector.extract_strided_slice %109 {offsets = [0, 0], sizes = [1, 256], strides = [1, 1]} : vector<3x256xf32> to vector<1x256xf32>
    %114 = vector.broadcast %113 : vector<1x256xf32> to vector<8x256xf32>
    %115 = arith.addf %112, %114 : vector<8x256xf32>
    %116 = vector.extract_strided_slice %109 {offsets = [1, 0], sizes = [1, 256], strides = [1, 1]} : vector<3x256xf32> to vector<1x256xf32>
    %117 = vector.extract_strided_slice %109 {offsets = [2, 0], sizes = [1, 256], strides = [1, 1]} : vector<3x256xf32> to vector<1x256xf32>
    %cst_57 = arith.constant 0.000000e+00 : f32
    %118 = vector.shape_cast %6 : vector<8x1xi1> to vector<8x1xi1>
    %119 = vector.broadcast %118 : vector<8x1xi1> to vector<8x256xi1>
    %120 = vector.broadcast %cst_57 : f32 to vector<8x256xf32>
    %121 = arith.select %119, %115, %120 : vector<8x256xi1>, vector<8x256xf32>
    %cst_58 = arith.constant dense<0.000000e+00> : vector<256xf32>
    %122 = vector.multi_reduction <add>, %121, %cst_58 [0] : vector<8x256xf32> to vector<256xf32>
    %123 = vector.shape_cast %122 : vector<256xf32> to vector<1x256xf32>
    %cst_59 = arith.constant 5.000000e-01 : f32
    %124 = vector.broadcast %cst_59 : f32 to vector<1x256xf32>
    %125 = arith.mulf %123, %124 : vector<1x256xf32>
    %126 = arith.mulf %121, %121 : vector<8x256xf32>
    %cst_60 = arith.constant dense<0.000000e+00> : vector<256xf32>
    %127 = vector.multi_reduction <add>, %126, %cst_60 [0] : vector<8x256xf32> to vector<256xf32>
    %128 = vector.shape_cast %127 : vector<256xf32> to vector<1x256xf32>
    %cst_61 = arith.constant 5.000000e-01 : f32
    %129 = vector.broadcast %cst_61 : f32 to vector<1x256xf32>
    %130 = arith.mulf %128, %129 : vector<1x256xf32>
    %131 = arith.mulf %125, %125 : vector<1x256xf32>
    %132 = arith.subf %130, %131 : vector<1x256xf32>
    %cst_62 = arith.constant 0.000000e+00 : f32
    %133 = vector.broadcast %cst_62 : f32 to vector<1x256xf32>
    %134 = arith.maximumf %132, %133 : vector<1x256xf32>
    %135 = vector.broadcast %125 : vector<1x256xf32> to vector<8x256xf32>
    %136 = arith.subf %115, %135 : vector<8x256xf32>
    %cst_63 = arith.constant 9.99999974E-6 : f32
    %137 = vector.broadcast %cst_63 : f32 to vector<1x256xf32>
    %138 = arith.addf %134, %137 : vector<1x256xf32>
    %139 = math.rsqrt %138 : vector<1x256xf32>
    %140 = vector.broadcast %139 : vector<1x256xf32> to vector<8x256xf32>
    %141 = arith.mulf %136, %140 : vector<8x256xf32>
    %142 = vector.broadcast %116 : vector<1x256xf32> to vector<8x256xf32>
    %143 = arith.mulf %141, %142 : vector<8x256xf32>
    %144 = vector.broadcast %117 : vector<1x256xf32> to vector<8x256xf32>
    %145 = arith.addf %143, %144 : vector<8x256xf32>
    %cst_64 = arith.constant 0.000000e+00 : f32
    %146 = vector.broadcast %cst_64 : f32 to vector<8x256xf32>
    %147 = arith.maximumf %145, %146 : vector<8x256xf32>
    %148 = arith.truncf %147 : vector<8x256xf32> to vector<8x256xbf16>
    %c0_65 = arith.constant 0 : index
    %c1_66 = arith.constant 1 : index
    %c0_67 = arith.constant 0 : index
    %c0_68 = arith.constant 0 : index
    %149 = vector.load %arg9[%c0_65, %c1_66, %c0_67, %c0_68] : memref<1x2x256x896xbf16, #tpu.memory_space<vmem>>, vector<1x1x256x896xbf16>
    %150 = vector.shape_cast %149 : vector<1x1x256x896xbf16> to vector<256x896xbf16>
    %cst_69 = arith.constant dense<0.000000e+00> : vector<8x896xf32>
    %151 = tpu.matmul %148, %150, %cst_69 {dimension_numbers = #tpu.dot_dimension_numbers<[1], [0], [0], [1], [0, 0, 1, 1], [], []>} : vector<8x256xbf16>, vector<256x896xbf16>, vector<8x896xf32> -> vector<8x896xf32>
    %c0_70 = arith.constant 0 : index
    %c1_71 = arith.constant 1 : index
    %c0_72 = arith.constant 0 : index
    %c0_73 = arith.constant 0 : index
    %152 = vector.load %arg10[%c0_70, %c1_71, %c0_72, %c0_73] : memref<1x2x1x896xf32, #tpu.memory_space<vmem>>, vector<1x1x1x896xf32>
    %153 = vector.shape_cast %152 : vector<1x1x1x896xf32> to vector<1x896xf32>
    %154 = vector.broadcast %153 : vector<1x896xf32> to vector<8x896xf32>
    %155 = arith.addf %151, %154 : vector<8x896xf32>
    %156 = vector.broadcast %10 : vector<1x896xf32> to vector<8x896xf32>
    %157 = arith.mulf %155, %156 : vector<8x896xf32>
    %158 = math.exp %105 : vector<8x896xf32>
    %159 = arith.mulf %3, %158 : vector<8x896xf32>
    %160 = arith.addf %159, %157 : vector<8x896xf32>
    %161 = vector.broadcast %10 : vector<1x896xf32> to vector<8x896xf32>
    %162 = arith.mulf %161, %160 : vector<8x896xf32>
    %163 = arith.addf %12, %162 : vector<8x896xf32>
    %c0_74 = arith.constant 0 : index
    %c0_75 = arith.constant 0 : index
    %164 = vector.load %arg12[%c0_74, %c0_75] : memref<8x896xf32, #tpu.memory_space<vmem>>, vector<8x896xf32>
    tpu.vector_store %arg12[%c0_74, %c0_75], %163 {strides = array<i32>} : memref<8x896xf32, #tpu.memory_space<vmem>>, vector<8x896xf32>,
    %c0_76 = arith.constant 0 : index
    %c0_77 = arith.constant 0 : index
    %165 = vector.load %arg13[%c0_76, %c0_77] : memref<8x128xf32, #tpu.memory_space<vmem>>, vector<8x128xf32>
    %cst_78 = arith.constant dense<0.000000e+00> : vector<8xf32>
    %166 = vector.multi_reduction <add>, %105, %cst_78 [1] : vector<8x896xf32> to vector<8xf32>
    %167 = vector.shape_cast %166 : vector<8xf32> to vector<8x1xf32>
    %168 = vector.broadcast %167 : vector<8x1xf32> to vector<8x128xf32>
    %169 = arith.addf %165, %168 : vector<8x128xf32>
    %c0_79 = arith.constant 0 : index
    %c0_80 = arith.constant 0 : index
    %170 = vector.load %arg13[%c0_79, %c0_80] : memref<8x128xf32, #tpu.memory_space<vmem>>, vector<8x128xf32>
    tpu.vector_store %arg13[%c0_79, %c0_80], %169 {strides = array<i32>} : memref<8x128xf32, #tpu.memory_space<vmem>>, vector<8x128xf32>,
    %c4_i32 = arith.constant 4 : i32
    %171 = arith.cmpi slt, %arg0, %c4_i32 : i32
    %172 = arith.extui %171 : i1 to i32
    %c0_i32_81 = arith.constant 0 : i32
    %173 = arith.cmpi ne, %172, %c0_i32_81 : i32
    scf.if %173 {
      %c3_i32 = arith.constant 3 : i32
      %174 = arith.minsi %arg0, %c3_i32 : i32
      %175 = arith.index_cast %174 : i32 to index
      %c0_82 = arith.constant 0 : index
      %c0_83 = arith.constant 0 : index
      %176 = vector.load %arg11[%175, %c0_82, %c0_83] : memref<4x2x896xf32, #tpu.memory_space<vmem>>, vector<1x2x896xf32>
      %177 = vector.shape_cast %176 : vector<1x2x896xf32> to vector<2x896xf32>
      %178 = vector.extract_strided_slice %177 {offsets = [0, 0], sizes = [1, 896], strides = [1, 1]} : vector<2x896xf32> to vector<1x896xf32>
      %179 = vector.extract_strided_slice %177 {offsets = [1, 0], sizes = [1, 896], strides = [1, 1]} : vector<2x896xf32> to vector<1x896xf32>
      %c0_84 = arith.constant 0 : index
      %c0_85 = arith.constant 0 : index
      %180 = vector.load %arg12[%c0_84, %c0_85] : memref<8x896xf32, #tpu.memory_space<vmem>>, vector<8x896xf32>
      %cst_86 = arith.constant 0.000000e+00 : f32
      %181 = vector.shape_cast %6 : vector<8x1xi1> to vector<8x1xi1>
      %182 = vector.broadcast %181 : vector<8x1xi1> to vector<8x896xi1>
      %183 = vector.broadcast %cst_86 : f32 to vector<8x896xf32>
      %184 = arith.select %182, %180, %183 : vector<8x896xi1>, vector<8x896xf32>
      %cst_87 = arith.constant dense<0.000000e+00> : vector<896xf32>
      %185 = vector.multi_reduction <add>, %184, %cst_87 [0] : vector<8x896xf32> to vector<896xf32>
      %186 = vector.shape_cast %185 : vector<896xf32> to vector<1x896xf32>
      %cst_88 = arith.constant 5.000000e-01 : f32
      %187 = vector.broadcast %cst_88 : f32 to vector<1x896xf32>
      %188 = arith.mulf %186, %187 : vector<1x896xf32>
      %189 = arith.mulf %184, %184 : vector<8x896xf32>
      %cst_89 = arith.constant dense<0.000000e+00> : vector<896xf32>
      %190 = vector.multi_reduction <add>, %189, %cst_89 [0] : vector<8x896xf32> to vector<896xf32>
      %191 = vector.shape_cast %190 : vector<896xf32> to vector<1x896xf32>
      %cst_90 = arith.constant 5.000000e-01 : f32
      %192 = vector.broadcast %cst_90 : f32 to vector<1x896xf32>
      %193 = arith.mulf %191, %192 : vector<1x896xf32>
      %194 = arith.mulf %188, %188 : vector<1x896xf32>
      %195 = arith.subf %193, %194 : vector<1x896xf32>
      %cst_91 = arith.constant 0.000000e+00 : f32
      %196 = vector.broadcast %cst_91 : f32 to vector<1x896xf32>
      %197 = arith.maximumf %195, %196 : vector<1x896xf32>
      %198 = vector.broadcast %188 : vector<1x896xf32> to vector<8x896xf32>
      %199 = arith.subf %180, %198 : vector<8x896xf32>
      %cst_92 = arith.constant 9.99999974E-6 : f32
      %200 = vector.broadcast %cst_92 : f32 to vector<1x896xf32>
      %201 = arith.addf %197, %200 : vector<1x896xf32>
      %202 = math.rsqrt %201 : vector<1x896xf32>
      %203 = vector.broadcast %202 : vector<1x896xf32> to vector<8x896xf32>
      %204 = arith.mulf %199, %203 : vector<8x896xf32>
      %205 = math.exp %178 : vector<1x896xf32>
      %206 = vector.broadcast %205 : vector<1x896xf32> to vector<8x896xf32>
      %207 = arith.mulf %204, %206 : vector<8x896xf32>
      %208 = vector.broadcast %179 : vector<1x896xf32> to vector<8x896xf32>
      %209 = arith.addf %207, %208 : vector<8x896xf32>
      %c0_93 = arith.constant 0 : index
      %c0_94 = arith.constant 0 : index
      %210 = vector.load %arg12[%c0_93, %c0_94] : memref<8x896xf32, #tpu.memory_space<vmem>>, vector<8x896xf32>
      tpu.vector_store %arg12[%c0_93, %c0_94], %209 {strides = array<i32>} : memref<8x896xf32, #tpu.memory_space<vmem>>, vector<8x896xf32>,
      %c0_95 = arith.constant 0 : index
      %c0_96 = arith.constant 0 : index
      %211 = vector.load %arg4[%c0_95, %c0_96] : memref<1x896xf32, #tpu.memory_space<vmem>>, vector<1x896xf32>
      %cst_97 = arith.constant 9.99999974E-6 : f32
      %212 = vector.broadcast %cst_97 : f32 to vector<1x896xf32>
      %213 = arith.addf %197, %212 : vector<1x896xf32>
      %214 = math.log %213 : vector<1x896xf32>
      %cst_98 = arith.constant 5.000000e-01 : f32
      %215 = vector.broadcast %cst_98 : f32 to vector<1x896xf32>
      %216 = arith.mulf %215, %214 : vector<1x896xf32>
      %217 = arith.subf %178, %216 : vector<1x896xf32>
      %218 = arith.mulf %211, %217 : vector<1x896xf32>
      %219 = vector.shape_cast %218 : vector<1x896xf32> to vector<1x1x896xf32>
      %cst_99 = arith.constant dense<0.000000e+00> : vector<1xf32>
      %220 = vector.multi_reduction <add>, %219, %cst_99 [1, 2] : vector<1x1x896xf32> to vector<1xf32>
      %221 = vector.shape_cast %220 : vector<1xf32> to vector<1x1x1xf32>
      %222 = vector.extract %221[0, 0, 0] : f32 from vector<1x1x1xf32>
      %c0_100 = arith.constant 0 : index
      %c0_101 = arith.constant 0 : index
      %223 = vector.load %arg13[%c0_100, %c0_101] : memref<8x128xf32, #tpu.memory_space<vmem>>, vector<8x128xf32>
      %224 = vector.broadcast %222 : f32 to vector<8x128xf32>
      %225 = arith.addf %223, %224 : vector<8x128xf32>
      %c0_102 = arith.constant 0 : index
      %c0_103 = arith.constant 0 : index
      %226 = vector.load %arg13[%c0_102, %c0_103] : memref<8x128xf32, #tpu.memory_space<vmem>>, vector<8x128xf32>
      tpu.vector_store %arg13[%c0_102, %c0_103], %225 {strides = array<i32>} : memref<8x128xf32, #tpu.memory_space<vmem>>, vector<8x128xf32>,
    } else {
    }
    return
  }
  func.func @transform_0(%arg0: i32) -> (i32, i32) {
    %c0_i32 = arith.constant 0 : i32
    %c0_i32_0 = arith.constant 0 : i32
    %c0_i32_1 = arith.constant 0 : i32
    return %c0_i32, %c0_i32_0 : i32, i32
  }
  func.func @transform_1(%arg0: i32) -> (i32, i32) {
    %c0_i32 = arith.constant 0 : i32
    %c0_i32_0 = arith.constant 0 : i32
    %c0_i32_1 = arith.constant 0 : i32
    return %c0_i32, %c0_i32_0 : i32, i32
  }
  func.func @transform_2(%arg0: i32) -> (i32, i32, i32) {
    %c0_i32 = arith.constant 0 : i32
    %c0_i32_0 = arith.constant 0 : i32
    %c0_i32_1 = arith.constant 0 : i32
    return %arg0, %c0_i32, %c0_i32_0 : i32, i32, i32
  }
  func.func @transform_3(%arg0: i32) -> (i32, i32) {
    %c0_i32 = arith.constant 0 : i32
    %c0_i32_0 = arith.constant 0 : i32
    %c0_i32_1 = arith.constant 0 : i32
    return %c0_i32, %c0_i32_0 : i32, i32
  }
  func.func @transform_4(%arg0: i32) -> (i32, i32, i32) {
    %c0_i32 = arith.constant 0 : i32
    %c0_i32_0 = arith.constant 0 : i32
    %c0_i32_1 = arith.constant 0 : i32
    return %arg0, %c0_i32, %c0_i32_0 : i32, i32, i32
  }
  func.func @transform_5(%arg0: i32) -> (i32, i32, i32) {
    %c0_i32 = arith.constant 0 : i32
    %c0_i32_0 = arith.constant 0 : i32
    %c0_i32_1 = arith.constant 0 : i32
    return %arg0, %c0_i32, %c0_i32_0 : i32, i32, i32
  }
  func.func @transform_6(%arg0: i32) -> (i32, i32, i32, i32) {
    %c0_i32 = arith.constant 0 : i32
    %c0_i32_0 = arith.constant 0 : i32
    %c0_i32_1 = arith.constant 0 : i32
    %c0_i32_2 = arith.constant 0 : i32
    return %arg0, %c0_i32, %c0_i32_0, %c0_i32_1 : i32, i32, i32, i32
  }
  func.func @transform_7(%arg0: i32) -> (i32, i32, i32, i32) {
    %c0_i32 = arith.constant 0 : i32
    %c0_i32_0 = arith.constant 0 : i32
    %c0_i32_1 = arith.constant 0 : i32
    %c0_i32_2 = arith.constant 0 : i32
    return %arg0, %c0_i32, %c0_i32_0, %c0_i32_1 : i32, i32, i32, i32
  }
  func.func @transform_8(%arg0: i32) -> (i32, i32, i32, i32) {
    %c0_i32 = arith.constant 0 : i32
    %c0_i32_0 = arith.constant 0 : i32
    %c0_i32_1 = arith.constant 0 : i32
    %c0_i32_2 = arith.constant 0 : i32
    return %arg0, %c0_i32, %c0_i32_0, %c0_i32_1 : i32, i32, i32, i32
  }
  func.func @transform_9(%arg0: i32) -> (i32, i32, i32, i32) {
    %c0_i32 = arith.constant 0 : i32
    %c0_i32_0 = arith.constant 0 : i32
    %c0_i32_1 = arith.constant 0 : i32
    %c0_i32_2 = arith.constant 0 : i32
    return %arg0, %c0_i32, %c0_i32_0, %c0_i32_1 : i32, i32, i32, i32
  }
  func.func @transform_10(%arg0: i32) -> (i32, i32, i32) {
    %c0_i32 = arith.constant 0 : i32
    %c0_i32_0 = arith.constant 0 : i32
    %c0_i32_1 = arith.constant 0 : i32
    %c0_i32_2 = arith.constant 0 : i32
    return %c0_i32, %c0_i32_0, %c0_i32_1 : i32, i32, i32
  }
  func.func @transform_11(%arg0: i32) -> (i32, i32) {
    %c0_i32 = arith.constant 0 : i32
    %c0_i32_0 = arith.constant 0 : i32
    %c0_i32_1 = arith.constant 0 : i32
    return %c0_i32, %c0_i32_0 : i32, i32
  }
  func.func @transform_12(%arg0: i32) -> (i32, i32) {
    %c0_i32 = arith.constant 0 : i32
    %c0_i32_0 = arith.constant 0 : i32
    %c0_i32_1 = arith.constant 0 : i32
    return %c0_i32, %c0_i32_0 : i32, i32
  }
}

</mosaic_0001>

<bundles_post_ra>
// kernel: stacked_affine_coupling_flow_forward.1
= control target key start
LH: loop header
LB: loop body
LE: loop exit
PB: predicated region body
PF: predicated region fallthrough
CT: control target
= control target key end

     0   :  { %s9504_s0 = inlined_call_operand.vmem [shape: f32[8,896], index: 0, kind: input, shape index: {}]   ;;  %s9505_s1 = inlined_call_operand.vmem [shape: f32[8,1], index: 1, kind: input, shape index: {}]   ;;  %s9506_s2 = inlined_call_operand.hbm [shape: f32[6,1,896], index: 2, kind: input, shape index: {}]   ;;  %s9507_s3 = inlined_call_operand.hbm [shape: f32[1,896], index: 3, kind: input, shape index: {}]   ;;  %s9508_s4 = inlined_call_operand.hbm [shape: bf16[6,896,512], index: 4, kind: input, shape index: {}]   ;;  %s9509_s5 = inlined_call_operand.hbm [shape: f32[6,3,512], index: 5, kind: input, shape index: {}]   ;;  %s9510_s6 = inlined_call_operand.hbm [shape: bf16[6,2,256,256], index: 6, kind: input, shape index: {}]   ;;  %s9511_s7 = inlined_call_operand.vmem [shape: f32[6,2,3,256], index: 7, kind: input, shape index: {}]   ;;  %s9512_s8 = inlined_call_operand.hbm [shape: bf16[6,2,256,896], index: 8, kind: input, shape index: {}]   ;;  %s9513_s9 = inlined_call_operand.hbm [shape: f32[6,2,1,896], index: 9, kind: input, shape index: {}]   ;;  %s9514_s10 = inlined_call_operand.hbm [shape: f32[4,2,896], index: 10, kind: input, shape index: {}]   ;;  %s9515_s11 = inlined_call_operand.vmem [shape: f32[8,896], index: 11, kind: output, shape index: {0}]   ;;  %s9516_s12 = inlined_call_operand.vmem [shape: f32[8,128], index: 12, kind: output, shape index: {1}]  }
   0x1   :  { %9532 = sst [smem:[#allocation19_spill]] %s9506_s2 }
   0x2   :  { %9533 = sst [smem:[#allocation20_spill]] %s9507_s3 }
   0x3   :  { %9534 = sst [smem:[#allocation21_spill]] %s9508_s4 }
   0x4   :  { %9535 = sst [smem:[#allocation22_spill]] %s9509_s5 }
   0x5   :  { %9536 = sst [smem:[#allocation23_spill]] %s9510_s6 }
   0x6   :  { %18 = vsyncpa [#allocation3], 0 }
   0x7   :  { %20 = vsyncpa [#allocation3 + $0x1], 0 }
   0x8   :  { %21 = vsyncpa [#allocation5], 0  ;;  %s7975_s21 = smov 0   ;;  %s7977_s22 = smov 0  }
   0x9   :  { %s7979_s23 = smov 0   ;;  %s7981_s24 = smov 0  }
   0xa LB: > { %9537 = sst [smem:[#allocation16_spill]] %s7882_s23  ;;  %s7996_s25 = sadd.s32 1, %s7886_s24   ;;  %s7886_s24 = sphi %s7981_s24, %s9566_s24   ;;  %s7882_s23 = sphi %s7979_s23, %s9568_s23   ;;  %s7878_s22 = sphi %s7977_s22, %s9570_s22   ;;  %s7874_s21 = sphi %s7975_s21, %s9569_s21  }
   0xb   : > { %9538 = sst [smem:[#allocation17_spill]] %s7996_s25  ;;  %s76_s26 = sadd.s32 1, %s7882_s23 }
   0xc   : > { %s73_s27 = ssub.s32 %s7886_s24, %s7996_s25  ;;  %p83_p0 = scmp.ne.s32.totalorder %s7882_s23, %s7878_s22 }
   0xd   : > { %p74_p1 = scmp.eq.s32.totalorder %s73_s27, 0  ;;  %p84_p2 = scmp.eq.s32.totalorder %s7886_s24, 0 }
   0xe   : > { %p6729_p3 = scmp.lt.s32.totalorder %s7886_s24, 6  ;;  %s383_s29 = sand.u32 1, %s7886_s24  }
   0xf   : > { %s8006_s28 = scalar_select %p74_p1, %s7882_s23, %s76_s26  }
  0x10   : > { %p85_p4 = por %p84_p2, %p83_p0  ;;  %s8010_s30 = sand.u32 1, %s7882_s23  }
  0x11   : > { %9539 = sst [smem:[#allocation18_spill]] %s8006_s28  ;;  %s6668_s13 = smul.u32 7, %s8010_s30 }
  0x12   : > { %p8013_p5 = pnand %p6729_p3, %p85_p4  ;;  %s6669_s15 = smul.u32 112, %s7886_s24 }
  0x13   : > { %s9541_s2 = sld [smem:[#allocation19_spill]]  ;;  %s387_s19 = scalar_lea.vmem [#allocation2], %s6668_s13 }
  0x14   : > { %s9540_s14 = scalar_select %p8013_p5, 1, 0 }
  0x15   : > { %s395_s20 = sshll.u32 %s387_s19, 4  ;;  %s9518_s26 = smul.u32 1792, %s8010_s30  ;;  %s8023_s20 = int_to_ptr.vmem [resolvable:$true] %s395_s20 }
  0x16   : > { %s8026_s27 = scalar_lea.sflag [#allocation3], %s383_s29  ;;  %p8032_p7 = pneg %p8013_p5 }
  0x18   : > { %s9542_s23 = scalar_select %p8032_p7, 1, 0 }
  0x19   : > { %s8021_s18 = scalar_lea.hbm %s9541_s2, %s6669_s15  ;;  %s7609_s13 = scalar_lea.hbm %s9541_s2, 672 }
  0x1a   : > { %s7604_s28 = scalar_lea.hbm %s8021_s18, 112  ;;  %p7610_p10 = scmp.lt.u32.totalorder %s8021_s18, %s9541_s2 }
  0x1b   : > { %p7605_p6 = scmp.ne.s32.totalorder %s8021_s18, %s7604_s28  ;;  %p7611_p11 = scmp.lt.u32.totalorder %s7609_s13, %s7604_s28 }
  0x1c   : > { %p7613_p13 = scmp.lt.u32.totalorder %s7604_s28, %s8021_s18 }
  0x1d   : > { %p7607_p8 = pnand %p8032_p7, %p7605_p6  ;;  %p7612_p12 = por %p7611_p11, %p7610_p10 }
  0x1f   : > { %p7608_p9 = pneg %p7607_p8  ;;  %p7614_p0 = por %p7613_p13, %p7612_p12 }
  0x21   : > { %p7615_p1 = pnand %p7614_p0, %p7608_p9 }
  0x23   : > { %7618 = shalt.err (!%p7615_p1)
}
  0x24   : > { %s7619_s29 = scalar_lea.vmem %s8023_s20, 112  ;;  %s7888_s15 = smov [#allocation2]  }
  0x25   : > { %p7620_p2 = scmp.ne.s32.totalorder %s8023_s20, %s7619_s29  ;;  %s7624_s16 = sshll.u32 %s7888_s15, 4  ;;  %s7625_s16 = int_to_ptr.vmem [resolvable:$false] %s7624_s16 }
  0x26   : > { %s7626_s17 = scalar_lea.vmem %s7625_s16, 224  ;;  %p7627_p6 = scmp.lt.s32.totalorder %s8023_s20, %s7625_s16 }
  0x27   : > { %p7622_p3 = pnand %p7620_p2, %p8032_p7  ;;  %p7628_p8 = scmp.lt.s32.totalorder %s7626_s17, %s7619_s29 }
  0x29   : > { %p7623_p4 = pneg %p7622_p3  ;;  %p7629_p10 = por %p7628_p8, %p7627_p6 }
  0x2b   : > { %p7630_p11 = pnand %p7629_p10, %p7623_p4 }
  0x2d   : > { %7633 = shalt.err (!%p7630_p11)
}
  0x2e   : > { %6711 = dma.hbm_to_vmem [thread:$0]  (!%p8013_p5), %s8021_s18, 112, %s8023_s20, %s8026_s27  }
  0x2f   : > { %s9519_s28 = smul.u32 28672, %s7886_s24  ;;  %s406_s13 = scalar_lea.vmem [#allocation6], %s9518_s26 }
  0x30   : > { %s413_s19 = sshll.u32 %s406_s13, 4  ;;  %s9543_s4 = sld [smem:[#allocation21_spill]]  ;;  %s8066_s19 = int_to_ptr.vmem [resolvable:$true] %s413_s19 }
  0x36   : > { %s8064_s16 = scalar_lea.hbm %s9543_s4, %s9519_s28  ;;  %s7639_s13 = scalar_lea.hbm %s9543_s4, 172032 }
  0x37   : > { %s7634_s17 = scalar_lea.hbm %s8064_s16, 28672  ;;  %p7640_p0 = scmp.lt.u32.totalorder %s8064_s16, %s9543_s4 }
  0x38   : > { %p7635_p9 = scmp.ne.s32.totalorder %s8064_s16, %s7634_s17  ;;  %p7641_p1 = scmp.lt.u32.totalorder %s7639_s13, %s7634_s17 }
  0x39   : > { %p7643_p3 = scmp.lt.u32.totalorder %s7634_s17, %s8064_s16 }
  0x3a   : > { %p7637_p12 = pnand %p7635_p9, %p8032_p7  ;;  %p7642_p2 = por %p7641_p1, %p7640_p0 }
  0x3c   : > { %p7638_p13 = pneg %p7637_p12  ;;  %p7644_p4 = por %p7643_p3, %p7642_p2 }
  0x3e   : > { %p7645_p6 = pnand %p7644_p4, %p7638_p13 }
  0x40   : > { %7648 = shalt.err (!%p7645_p6)
}
  0x41   : > { %s7649_s15 = scalar_lea.vmem %s8066_s19, 28672  ;;  %s7889_s29 = smov [#allocation6]  }
  0x42   : > { %p7650_p8 = scmp.ne.s32.totalorder %s8066_s19, %s7649_s15  ;;  %s7654_s18 = sshll.u32 %s7889_s29, 4  ;;  %s7655_s18 = int_to_ptr.vmem [resolvable:$false] %s7654_s18 }
  0x43   : > { %s7656_s2 = scalar_lea.vmem %s7655_s18, 57344  ;;  %p7657_p9 = scmp.lt.s32.totalorder %s8066_s19, %s7655_s18 }
  0x44   : > { %p7652_p10 = pnand %p7650_p8, %p8032_p7  ;;  %p7658_p12 = scmp.lt.s32.totalorder %s7656_s2, %s7649_s15 }
  0x46   : > { %p7653_p11 = pneg %p7652_p10  ;;  %p7659_p0 = por %p7658_p12, %p7657_p9 }
  0x48   : > { %p7660_p1 = pnand %p7659_p0, %p7653_p11 }
  0x4a   : > { %7663 = shalt.err (!%p7660_p1)
}
  0x4b   : > { %s7890_s26 = smov 256   ;;  %s7891_s17 = smov 16  }
  0x4c   : > { %6714 = dma.hbm_to_vmem [thread:$0]  (!%p8013_p5), %s8064_s16, 28672, %s8066_s19, %s8026_s27, %s7890_s26, %s7890_s26, %s7891_s17  }
  0x4d   : > { %s5898_s20 = sshll.u32 %s8010_s30, 4  ;;  %s6592_s13 = sshll.u32 %s7886_s24, 8 }
  0x4e   : > { %s9544_s5 = sld [smem:[#allocation22_spill]]  ;;  %s427_s2 = scalar_lea.vmem [#allocation7], %s5898_s20 }
  0x4f   : > { %s435_s28 = sshll.u32 %s427_s2, 4  ;;  %s5901_s4 = sshll.u32 %s8010_s30, 9  ;;  %s436_s28 = int_to_ptr.vmem [resolvable:$true] %s435_s28 }
  0x54   : > { %s8095_s15 = scalar_lea.hbm %s9544_s5, %s6592_s13  ;;  %s7669_s26 = scalar_lea.hbm %s9544_s5, 1536 }
  0x55   : > { %s7664_s25 = scalar_lea.hbm %s8095_s15, 256  ;;  %p7670_p4 = scmp.lt.u32.totalorder %s8095_s15, %s9544_s5 }
  0x56   : > { %p7665_p13 = scmp.ne.s32.totalorder %s8095_s15, %s7664_s25  ;;  %p7671_p6 = scmp.lt.u32.totalorder %s7669_s26, %s7664_s25 }
  0x57   : > { %p7673_p10 = scmp.lt.u32.totalorder %s7664_s25, %s8095_s15 }
  0x58   : > { %p7667_p2 = pnand %p7665_p13, %p8032_p7  ;;  %p7672_p8 = por %p7671_p6, %p7670_p4 }
  0x5a   : > { %p7668_p3 = pneg %p7667_p2  ;;  %p7674_p11 = por %p7673_p10, %p7672_p8 }
  0x5c   : > { %p7675_p9 = pnand %p7674_p11, %p7668_p3 }
  0x5e   : > { %7678 = shalt.err (!%p7675_p9)
}
  0x5f   : > { %s7679_s20 = scalar_lea.vmem %s436_s28, 256  ;;  %s7892_s29 = smov [#allocation7]  }
  0x60   : > { %p7680_p12 = scmp.ne.s32.totalorder %s436_s28, %s7679_s20  ;;  %s7684_s18 = sshll.u32 %s7892_s29, 4  ;;  %s7685_s18 = int_to_ptr.vmem [resolvable:$false] %s7684_s18 }
  0x61   : > { %s7686_s2 = scalar_lea.vmem %s7685_s18, 512  ;;  %p7687_p13 = scmp.lt.s32.totalorder %s436_s28, %s7685_s18 }
  0x62   : > { %p7682_p0 = pnand %p7680_p12, %p8032_p7  ;;  %p7688_p2 = scmp.lt.s32.totalorder %s7686_s2, %s7679_s20 }
  0x64   : > { %p7683_p1 = pneg %p7682_p0  ;;  %p7689_p5 = por %p7688_p2, %p7687_p13 }
  0x66   : > { %p7690_p4 = pnand %p7689_p5, %p7683_p1 }
  0x68   : > { %7693 = shalt.err (!%p7690_p4)
}
  0x69   : > { %p9545_p6 = scmp.ne.s32.totalorder %s9540_s14, 0  ;;  %s6593_s25 = sshll.u32 %s7886_s24, 13 }
  0x6a   : > { %s446_s19 = scalar_lea.vmem [#allocation8], %s5901_s4  ;;  %s9546_s6 = sld [smem:[#allocation23_spill]] }
  0x6b   : > { %6717 = dma.hbm_to_vmem [thread:$0]  (!%p9545_p6), %s8095_s15, 256, %s436_s28, %s8026_s27  }
  0x6c   : > { %s453_s16 = sshll.u32 %s446_s19, 4  ;;  %s8124_s16 = int_to_ptr.vmem [resolvable:$true] %s453_s16 }
  0x70   : > { %s8122_s13 = scalar_lea.hbm %s9546_s6, %s6593_s25  ;;  %s7699_s4 = scalar_lea.hbm %s9546_s6, 49152 }
  0x71   : > { %s7694_s20 = scalar_lea.hbm %s8122_s13, 8192  ;;  %p7700_p10 = scmp.lt.u32.totalorder %s8122_s13, %s9546_s6 }
  0x72   : > { %p7695_p5 = scmp.ne.s32.totalorder %s8122_s13, %s7694_s20  ;;  %p7701_p11 = scmp.lt.u32.totalorder %s7699_s4, %s7694_s20 }
  0x73   : > { %p7703_p12 = scmp.lt.u32.totalorder %s7694_s20, %s8122_s13 }
  0x74   : > { %p7697_p3 = pnand %p7695_p5, %p8032_p7  ;;  %p7702_p9 = por %p7701_p11, %p7700_p10 }
  0x76   : > { %p7698_p8 = pneg %p7697_p3  ;;  %p7704_p0 = por %p7703_p12, %p7702_p9 }
  0x78   : > { %p7705_p1 = pnand %p7704_p0, %p7698_p8 }
  0x7a   : > { %7708 = shalt.err (!%p7705_p1)
}
  0x7b   : > { %s7709_s2 = scalar_lea.vmem %s8124_s16, 8192  ;;  %s7893_s25 = smov [#allocation8]  }
  0x7c   : > { %p7710_p13 = scmp.ne.s32.totalorder %s8124_s16, %s7709_s2  ;;  %s7714_s19 = sshll.u32 %s7893_s25, 4  ;;  %s7715_s19 = int_to_ptr.vmem [resolvable:$false] %s7714_s19 }
  0x7d   : > { %s7716_s26 = scalar_lea.vmem %s7715_s19, 16384  ;;  %p7717_p5 = scmp.lt.s32.totalorder %s8124_s16, %s7715_s19 }
  0x7e   : > { %p7712_p2 = pnand %p7710_p13, %p8032_p7  ;;  %p7718_p3 = scmp.lt.s32.totalorder %s7716_s26, %s7709_s2 }
  0x80   : > { %p7713_p4 = pneg %p7712_p2  ;;  %p7719_p10 = por %p7718_p3, %p7717_p5 }
  0x82   : > { %p7720_p11 = pnand %p7719_p10, %p7713_p4 }
  0x84   : > { %7723 = shalt.err (!%p7720_p11)
}
  0x85   : > { %s7894_s17 = smov 128   ;;  %s7895_s20 = smov 8  }
  0x86   : > { %6720 = dma.hbm_to_vmem [thread:$0]  (!%p9545_p6), %s8122_s13, 8192, %s8124_s16, %s8026_s27, %s7894_s17, %s7894_s17, %s7895_s20  }
  0x87   : > { %s8149_s28 = sadd.s32 4294967295, %s7886_s24   ;;  %p89_p9 = scmp.ne.s32.totalorder %s7878_s22, %s7874_s21 }
  0x88   : > { %p9524_p8 = scmp.eq.s32.totalorder %s8149_s28, 0  ;;  %p5892_p12 = scmp.ge.s32.totalorder %s7886_s24, 1 }
  0x89   : > { %p340_p0 = scmp.lt.s32.totalorder %s7886_s24, 7  ;;  %s7896_s16 = smov [#allocation4]  }
  0x8a   : > { %p8159_p13 = por %p9524_p8, %p89_p9  ;;  %s359_s13 = sshll.u32 %s7896_s16, 4  ;;  %s360_s13 = int_to_ptr.vmem [resolvable:$true] %s359_s13 }
  0x8b   : > { %p8163_p2 = pnand %p5892_p12, %p340_p0  ;;  %s9549_s29 = smul.u32 28672, %s7886_s24 }
  0x8c   : > { %s9547_s15 = scalar_select %p8159_p13, 1, 0 }
  0x8d   : > { %s9548_s4 = scalar_select %p8163_p2, 1, 0 }
  0x8e   : > { %p6701_p4 = pneg %p8163_p2  ;;  %s8174_s2 = scalar_lea.hbm %s9512_s8, %s9549_s29 }
  0x8f   : > { %s9550_s25 = smul.u32 1792, %s8010_s30  ;;  %s7897_s20 = smov [#allocation11]  }
  0x90   : > { %p8180_p5 = pnand %p6701_p4, %p9524_p8  ;;  %s8186_s16 = sshll.u32 %s7897_s20, 4  ;;  %s370_s16 = int_to_ptr.vmem [resolvable:$true] %s8186_s16 }
  0x91   : > { %s475_s19 = scalar_lea.vmem [#allocation9], %s9550_s25  ;;  %s9552_s3 = sld [smem:[#allocation20_spill]] }
  0x92   : > { %s482_s26 = sshll.u32 %s475_s19, 4  ;;  %p9530_p10 = pneg %p8180_p5  ;;  %s8184_s26 = int_to_ptr.vmem [resolvable:$true] %s482_s26 }
  0x97   : > { %s7724_s29 = scalar_lea.hbm %s9552_s3, 112 }
  0x98   : > { %p7725_p3 = scmp.ne.s32.totalorder %s9552_s3, %s7724_s29  ;;  %p7731_p12 = scmp.lt.u32.totalorder %s7724_s29, %s9552_s3 }
  0x9a   : > { %p7727_p11 = pnand %p9530_p10, %p7725_p3 }
  0x9c   : > { %p7728_p9 = pneg %p7727_p11 }
  0x9e   : > { %p7733_p0 = pnand %p7731_p12, %p7728_p9 }
  0xa0   : > { %7736 = shalt.err (!%p7733_p0)
}
  0xa1   : > { %s7737_s20 = scalar_lea.vmem %s360_s13, 112  ;;  %s7744_s5 = scalar_lea.vmem %s360_s13, 128 }
  0xa2   : > { %p7738_p4 = scmp.ne.s32.totalorder %s360_s13, %s7737_s20  ;;  %p7745_p13 = scmp.lt.s32.totalorder %s360_s13, %s360_s13 }
  0xa3   : > { %p7746_p2 = scmp.lt.s32.totalorder %s7744_s5, %s7737_s20 }
  0xa4   : > { %p7740_p1 = pnand %p7738_p4, %p9530_p10 }
  0xa5   : > { %p7747_p6 = por %p7746_p2, %p7745_p13 }
  0xa6   : > { %p7741_p8 = pneg %p7740_p1 }
  0xa8   : > { %p7748_p7 = pnand %p7747_p6, %p7741_p8 }
  0xaa   : > { %7751 = shalt.err (!%p7748_p7)
}
  0xab   : > { %6704 = dma.hbm_to_vmem [thread:$0]  (!%p8180_p5), %s9552_s3, 112, %s360_s13, [#allocation5]  }
  0xac   : > { %s7752_s29 = scalar_lea.hbm %s8174_s2, 28672  ;;  %p9553_p1 = scmp.ne.s32.totalorder %s9542_s23, 0 }
  0xad   : > { %p7753_p3 = scmp.ne.s32.totalorder %s8174_s2, %s7752_s29  ;;  %s7757_s19 = scalar_lea.hbm %s9512_s8, 172032 }
  0xae   : > { %p7758_p7 = scmp.lt.u32.totalorder %s8174_s2, %s9512_s8  ;;  %p7759_p6 = scmp.lt.u32.totalorder %s7757_s19, %s7752_s29 }
  0xaf   : > { %p7755_p11 = pnand %p7753_p3, %p9553_p1  ;;  %p7761_p13 = scmp.lt.u32.totalorder %s7752_s29, %s8174_s2 }
  0xb0   : > { %p7760_p8 = por %p7759_p6, %p7758_p7 }
  0xb1   : > { %p7756_p9 = pneg %p7755_p11 }
  0xb2   : > { %p7762_p2 = por %p7761_p13, %p7760_p8 }
  0xb4   : > { %p7763_p12 = pnand %p7762_p2, %p7756_p9 }
  0xb6   : > { %7766 = shalt.err (!%p7763_p12)
}
  0xb7   : > { %s7767_s13 = scalar_lea.vmem %s8184_s26, 28672  ;;  %s7898_s6 = smov [#allocation9]  }
  0xb8   : > { %p7768_p0 = scmp.ne.s32.totalorder %s8184_s26, %s7767_s13  ;;  %s7772_s21 = sshll.u32 %s7898_s6, 4  ;;  %s7773_s21 = int_to_ptr.vmem [resolvable:$false] %s7772_s21 }
  0xb9   : > { %s7774_s18 = scalar_lea.vmem %s7773_s21, 57344  ;;  %p7775_p11 = scmp.lt.s32.totalorder %s8184_s26, %s7773_s21 }
  0xba   : > { %p7770_p4 = pnand %p7768_p0, %p9553_p1  ;;  %p7776_p10 = scmp.lt.s32.totalorder %s7774_s18, %s7767_s13 }
  0xbc   : > { %p7771_p3 = pneg %p7770_p4  ;;  %p7777_p7 = por %p7776_p10, %p7775_p11 }
  0xbe   : > { %p7778_p6 = pnand %p7777_p7, %p7771_p3 }
  0xc0   : > { %7781 = shalt.err (!%p7778_p6)
}
  0xc1   : > { %s7899_s29 = smov 448   ;;  %s7900_s25 = smov 28  }
  0xc2   : > { %p9554_p9 = scmp.ne.s32.totalorder %s9540_s14, 0  ;;  %s6674_s19 = smul.u32 14, %s8010_s30 }
  0xc3   : > { %s7782_s13 = scalar_lea.hbm %s9514_s10, 896  ;;  %p9555_p8 = pneg %p8180_p5 }
  0xc4   : > { %6723 = dma.hbm_to_vmem [thread:$0]  (!%p9554_p9), %s8174_s2, 28672, %s8184_s26, %s8026_s27, %s7899_s29, %s7899_s29, %s7900_s25  }
  0xc5   : > { %p7783_p10 = scmp.ne.s32.totalorder %s9514_s10, %s7782_s13  ;;  %p7789_p12 = scmp.lt.u32.totalorder %s7782_s13, %s9514_s10 }
  0xc7   : > { %p7785_p13 = pnand %p7783_p10, %p9555_p8 }
  0xc9   : > { %p7786_p2 = pneg %p7785_p13 }
  0xcb   : > { %p7791_p0 = pnand %p7789_p12, %p7786_p2 }
  0xcd   : > { %7794 = shalt.err (!%p7791_p0)
}
  0xce   : > { %s7795_s2 = scalar_lea.vmem %s370_s16, 896  ;;  %p9556_p3 = pmov %p9555_p8 }
  0xcf   : > { %p7796_p4 = scmp.ne.s32.totalorder %s370_s16, %s7795_s2  ;;  %p7803_p6 = scmp.lt.s32.totalorder %s370_s16, %s370_s16 }
  0xd0   : > { %p7804_p9 = scmp.lt.s32.totalorder %s7795_s2, %s7795_s2 }
  0xd1   : > { %p7798_p11 = pnand %p7796_p4, %p9556_p3 }
  0xd2   : > { %p7805_p1 = por %p7804_p9, %p7803_p6 }
  0xd3   : > { %p7799_p7 = pneg %p7798_p11 }
  0xd5   : > { %p7806_p8 = pnand %p7805_p1, %p7799_p7 }
  0xd7   : > { %7809 = shalt.err (!%p7806_p8)
}
  0xd8   : > { %s7901_s30 = smov 224   ;;  %s7902_s3 = smov 14  }
  0xd9   : > { %6707 = dma.hbm_to_vmem [thread:$0]  (!%p8180_p5), %s9514_s10, 896, %s370_s16, [#allocation5], %s7901_s30, %s7901_s30, %s7902_s3  }
  0xda   : > { %s6675_s25 = smul.u32 224, %s7886_s24  ;;  %s496_s20 = scalar_lea.vmem [#allocation10], %s6674_s19 }
  0xdb   : > { %s503_s5 = sshll.u32 %s496_s20, 4  ;;  %p9557_p9 = scmp.ne.s32.totalorder %s9542_s23, 0  ;;  %s8260_s5 = int_to_ptr.vmem [resolvable:$true] %s503_s5 }
  0xdc   : > { %s8258_s21 = scalar_lea.hbm %s9513_s9, %s6675_s25  ;;  %s7815_s16 = scalar_lea.hbm %s9513_s9, 1344 }
  0xdd   : > { %s7810_s18 = scalar_lea.hbm %s8258_s21, 224  ;;  %p7816_p5 = scmp.lt.u32.totalorder %s8258_s21, %s9513_s9 }
  0xde   : > { %p7811_p1 = scmp.ne.s32.totalorder %s8258_s21, %s7810_s18  ;;  %p7817_p2 = scmp.lt.u32.totalorder %s7815_s16, %s7810_s18 }
  0xdf   : > { %p7819_p0 = scmp.lt.u32.totalorder %s7810_s18, %s8258_s21 }
  0xe0   : > { %p7813_p10 = pnand %p7811_p1, %p9557_p9  ;;  %p7818_p12 = por %p7817_p2, %p7816_p5 }
  0xe2   : > { %p7814_p13 = pneg %p7813_p10  ;;  %p7820_p4 = por %p7819_p0, %p7818_p12 }
  0xe4   : > { %p7821_p3 = pnand %p7820_p4, %p7814_p13 }
  0xe6   : > { %7824 = shalt.err (!%p7821_p3)
}
  0xe7   : > { %s7825_s30 = scalar_lea.vmem %s8260_s5, 224  ;;  %s7903_s3 = smov [#allocation10]  }
  0xe8   : > { %p7826_p11 = scmp.ne.s32.totalorder %s8260_s5, %s7825_s30  ;;  %s7830_s26 = sshll.u32 %s7903_s3, 4  ;;  %s7831_s26 = int_to_ptr.vmem [resolvable:$false] %s7830_s26 }
  0xe9   : > { %s7832_s29 = scalar_lea.vmem %s7831_s26, 448  ;;  %p7833_p8 = scmp.lt.s32.totalorder %s8260_s5, %s7831_s26 }
  0xea   : > { %p7828_p7 = pnand %p7826_p11, %p9557_p9  ;;  %p7834_p1 = scmp.lt.s32.totalorder %s7832_s29, %s7825_s30 }
  0xec   : > { %p7829_p6 = pneg %p7828_p7  ;;  %p7835_p10 = por %p7834_p1, %p7833_p8 }
  0xee   : > { %p7836_p5 = pnand %p7835_p10, %p7829_p6 }
  0xf0   : > { %7839 = shalt.err (!%p7836_p5)
}
  0xf1   : > { %s7904_s25 = smov 112   ;;  %s7905_s20 = smov 7  }
  0xf2   : > { %p9558_p13 = scmp.ne.s32.totalorder %s9540_s14, 0  ;;  %p9559_p9 = scmp.ne.s32.totalorder %s9548_s4, 0 }
  0xf3   : > { %s517_s23 = sand.u32 (!%p9559_p9), 1, %s8149_s28   ;;  %s519_s13 = sand.u32 (!%p9559_p9), 1, %s7878_s22  }
  0xf4   : > { %6726 = dma.hbm_to_vmem [thread:$0]  (!%p9558_p13), %s8258_s21, 224, %s8260_s5, %s8026_s27, %s7904_s25, %s7904_s25, %s7905_s20  }
  0xf5   : > { %515 = sbr.rel (%p9559_p9) target bundleno = 1999 (0x7cf), region = 64  ;;  %s518_s18 = scalar_lea.sflag (!%p9559_p9), [#allocation3], %s517_s23 }
  0xf6   : > { %s6676_s6 = smul.u32 (!%p9559_p9), 7, %s519_s13  ;;  %p9560_p2 = scmp.ne.s32.totalorder (!%p9559_p9), %s9547_s15, 0 }
  0xf8   : > { %s8288_s17 = scalar_lea.vmem (!%p9559_p9), [#allocation2], %s6676_s6 }
  0xfc   : > { %7857 = dma.done.wait (%p9560_p2), %s518_s18, 112  }
  0xfd   : > { %7859 = vsyncadd (%p9560_p2), %s518_s18, 4294967184  ;;  %p9561_p12 = scmp.eq.s32.totalorder %s8149_s28, 0 }
  0xff   : > { %7861 = dma.done.wait (%p9561_p12), [#allocation5], 112   ;;  %p9562_p0 = pmov %p9561_p12 }
 0x100   : > { %s6677_s14 = smul.u32 1792, %s519_s13 }
 0x101   : > { %7863 = vsyncadd (%p9562_p0), [#allocation5], 4294967184 }
 0x102   : > { %s8298_s27 = scalar_lea.vmem [#allocation6], %s6677_s14 }
 0x103   : > { %7865 = dma.done.wait (%p9560_p2), %s518_s18, 66016  }
 0x104   : > { %7867 = vsyncadd (%p9560_p2), %s518_s18, 4294901280  ;;  %s5908_s4 = sshll.u32 %s519_s13, 4  ;;  %s5909_s5 = sshll.u32 %s519_s13, 9 }
 0x105   : > { %s6678_s21 = smul.u32 14, %s519_s13  ;;  %s8304_s24 = scalar_lea.vmem [#allocation7], %s5908_s4 }
 0x106   : > { %s8306_s16 = scalar_lea.vmem [#allocation8], %s5909_s5  ;;  %s8308_s19 = scalar_lea.vmem [#allocation9], %s6677_s14 }
 0x107   : > { %s8310_s2 = scalar_lea.vmem [#allocation10], %s6678_s21  ;;  %p9563_p4 = pmov %p9562_p0 }
 0x108   : > { %p9564_p3 = pmov %p9562_p0 }
 0x109   : > { %7869 = dma.done.wait (%p9563_p4), [#allocation5], 896  }
 0x10a   : > { %7871 = vsyncadd (%p9564_p3), [#allocation5], 4294966400  ;;  %p640_p11 = scmp.lt.s32.totalorder %s8149_s28, 5  ;;  %p9565_p7 = scmp.ne.s32.totalorder %s8149_s28, 0 }
 0x10b   : > { %v650_v0 = vld [vmem:[%s9504_s0] sm:$0xff] (!%p9565_p7)  ;;  %v651_v1 = vld [vmem:[%s9504_s0 + $0x8] sm:$0xff] (!%p9565_p7)  ;;  %v652_v2 = vld [vmem:[%s9504_s0 + $0x10] sm:$0xff] (!%p9565_p7)  ;;  %v7906_v6 = vmov (!%p9565_p7), 0.0  }
 0x10c   : > { %s641_s15 = scalar_select %p640_p11, %s8149_s28, 5 }
 0x10d   : > { %649 = sbr.rel (%p9565_p7) target bundleno = 276 (0x114), region = 100  ;;  %657 = vst [vmem:[%s9515_s11] sm:$0xff] (!%p9565_p7), %v650_v0  ;;  %658 = vst [vmem:[%s9515_s11 + $0x8] sm:$0xff] (!%p9565_p7), %v651_v1  ;;  %v653_v3 = vld [vmem:[%s9504_s0 + $0x18] sm:$0xff] (!%p9565_p7)  ;;  %v654_v4 = vld [vmem:[%s9504_s0 + $0x20] sm:$0xff] (!%p9565_p7) }
 0x10e   : > { %s6594_s30 = sshll.u32 %s641_s15, 4  ;;  %659 = vst [vmem:[%s9515_s11 + $0x10] sm:$0xff] (!%p9565_p7), %v652_v2  ;;  %v655_v5 = vld [vmem:[%s9504_s0 + $0x28] sm:$0xff] (!%p9565_p7)  ;;  %664 = vst [vmem:[%s9516_s12] sm:$0xff] (!%p9565_p7), %v7906_v6  ;;  %v656_v7 = vld [vmem:[%s9504_s0 + $0x30] sm:$0xff] (!%p9565_p7) }
 0x10f   : > { %s8321_s29 = scalar_lea.vmem %s9511_s7, %s6594_s30  ;;  %660 = vst [vmem:[%s9515_s11 + $0x18] sm:$0xff] (!%p9565_p7), %v653_v3  ;;  %661 = vst [vmem:[%s9515_s11 + $0x20] sm:$0xff] (!%p9565_p7), %v654_v4 }
 0x110   : > { %662 = vst [vmem:[%s9515_s11 + $0x28] sm:$0xff] (!%p9565_p7), %v655_v5  ;;  %663 = vst [vmem:[%s9515_s11 + $0x30] sm:$0xff] (!%p9565_p7), %v656_v7 }
 0x114 PF: > { %v6781_v8 = vld [vmem:[%s8298_s27 + $0x4] ss:$16 sps:$4 sm:$0xff]   ;;  %v6783_v9 = vld [vmem:[%s8298_s27 + $0xc] ss:$16 sps:$4 sm:$0xff]   ;;  %v6785_v10 = vld [vmem:[%s8298_s27] ss:$16 sps:$4 sm:$0xff]   ;;  %v677_v45 = vlaneseq }
 0x115   : > { %2110 = vmatprep.subr.bf16.mxu0 %v6781_v8  ;;  %v6786_v11 = vld [vmem:[%s8298_s27 + $0x8] ss:$16 sps:$4 sm:$0xff]   ;;  %2274 = vmatprep.subr.bf16.mxu1 %v6783_v9  ;;  %v6787_v12 = vld [vmem:[%s8298_s27 + $0x24] ss:$16 sps:$4 sm:$0xff]   ;;  %v6789_v13 = vld [vmem:[%s8298_s27 + $0x2c] ss:$16 sps:$4 sm:$0xff]  }
 0x116   : > { %2111 = vmatpush1.bf16.msra.mxu0 %v6785_v10  ;;  %2275 = vmatpush1.bf16.msra.mxu1 %v6786_v11  ;;  %v6791_v14 = vld [vmem:[%s8298_s27 + $0x20] ss:$16 sps:$4 sm:$0xff]   ;;  %v6792_v15 = vld [vmem:[%s8298_s27 + $0x28] ss:$16 sps:$4 sm:$0xff]   ;;  %v6793_v16 = vld [vmem:[%s8298_s27 + $0x44] ss:$16 sps:$4 sm:$0xff]  }
 0x117   : > { %2112 = vmatprep.subr.bf16.mxu0 %v6787_v12  ;;  %2276 = vmatprep.subr.bf16.mxu1 %v6789_v13  ;;  %v6795_v17 = vld [vmem:[%s8298_s27 + $0x4c] ss:$16 sps:$4 sm:$0xff]   ;;  %v6797_v18 = vld [vmem:[%s8298_s27 + $0x40] ss:$16 sps:$4 sm:$0xff]   ;;  %v6798_v19 = vld [vmem:[%s8298_s27 + $0x48] ss:$16 sps:$4 sm:$0xff]  }
 0x118   : > { %v6799_v20 = vld [vmem:[%s8298_s27 + $0x64] ss:$16 sps:$4 sm:$0xff]   ;;  %v6801_v21 = vld [vmem:[%s8298_s27 + $0x6c] ss:$16 sps:$4 sm:$0xff]   ;;  %v6803_v22 = vld [vmem:[%s8298_s27 + $0x60] ss:$16 sps:$4 sm:$0xff]  }
 0x119   : > { %v6804_v23 = vld [vmem:[%s8298_s27 + $0x68] ss:$16 sps:$4 sm:$0xff]   ;;  %v6805_v24 = vld [vmem:[%s8298_s27 + $0x84] ss:$16 sps:$4 sm:$0xff]   ;;  %v6807_v25 = vld [vmem:[%s8298_s27 + $0x8c] ss:$16 sps:$4 sm:$0xff]  }
 0x11a   : > { %2113 = vmatpush1.bf16.msra.mxu0 %v6791_v14  ;;  %2277 = vmatpush1.bf16.msra.mxu1 %v6792_v15  ;;  %v6809_v26 = vld [vmem:[%s8298_s27 + $0x80] ss:$16 sps:$4 sm:$0xff]   ;;  %v6810_v27 = vld [vmem:[%s8298_s27 + $0x88] ss:$16 sps:$4 sm:$0xff]   ;;  %v6811_v28 = vld [vmem:[%s8298_s27 + $0xa4] ss:$16 sps:$4 sm:$0xff]  }
 0x11b   : > { %2114 = vmatprep.subr.bf16.mxu0 %v6793_v16  ;;  %2278 = vmatprep.subr.bf16.mxu1 %v6795_v17  ;;  %v6813_v29 = vld [vmem:[%s8298_s27 + $0xac] ss:$16 sps:$4 sm:$0xff]   ;;  %v6815_v30 = vld [vmem:[%s8298_s27 + $0xa0] ss:$16 sps:$4 sm:$0xff]   ;;  %v6816_v31 = vld [vmem:[%s8298_s27 + $0xa8] ss:$16 sps:$4 sm:$0xff]  }
 0x11c   : > { %v6817_v32 = vld [vmem:[%s8298_s27 + $0xc4] ss:$16 sps:$4 sm:$0xff]   ;;  %v6819_v33 = vld [vmem:[%s8298_s27 + $0xcc] ss:$16 sps:$4 sm:$0xff]   ;;  %v6821_v34 = vld [vmem:[%s8298_s27 + $0xc0] ss:$16 sps:$4 sm:$0xff]  }
 0x11d   : > { %v6822_v35 = vld [vmem:[%s8298_s27 + $0xc8] ss:$16 sps:$4 sm:$0xff]   ;;  %v6823_v36 = vld [vmem:[%s8298_s27 + $0xe4] ss:$16 sps:$4 sm:$0xff]   ;;  %v6825_v37 = vld [vmem:[%s8298_s27 + $0xec] ss:$16 sps:$4 sm:$0xff]  }
 0x11e   : > { %2115 = vmatpush1.bf16.msra.mxu0 %v6797_v18  ;;  %2279 = vmatpush1.bf16.msra.mxu1 %v6798_v19  ;;  %v6827_v38 = vld [vmem:[%s8298_s27 + $0xe0] ss:$16 sps:$4 sm:$0xff]   ;;  %v6828_v39 = vld [vmem:[%s8298_s27 + $0xe8] ss:$16 sps:$4 sm:$0xff]   ;;  %v6829_v40 = vld [vmem:[%s8298_s27 + $0x104] ss:$16 sps:$4 sm:$0xff]  }
 0x11f   : > { %2116 = vmatprep.subr.bf16.mxu0 %v6799_v20  ;;  %2280 = vmatprep.subr.bf16.mxu1 %v6801_v21  ;;  %v6831_v41 = vld [vmem:[%s8298_s27 + $0x10c] ss:$16 sps:$4 sm:$0xff]   ;;  %v6833_v42 = vld [vmem:[%s8298_s27 + $0x100] ss:$16 sps:$4 sm:$0xff]   ;;  %v6834_v43 = vld [vmem:[%s8298_s27 + $0x108] ss:$16 sps:$4 sm:$0xff]  }
 0x120   : > { %v6835_v44 = vld [vmem:[%s8298_s27 + $0x124] ss:$16 sps:$4 sm:$0xff]   ;;  %v6837_v46 = vld [vmem:[%s8298_s27 + $0x12c] ss:$16 sps:$4 sm:$0xff]   ;;  %v6839_v47 = vld [vmem:[%s8298_s27 + $0x120] ss:$16 sps:$4 sm:$0xff]  }
 0x121   : > { %v6840_v48 = vld [vmem:[%s8298_s27 + $0x128] ss:$16 sps:$4 sm:$0xff]   ;;  %v6841_v49 = vld [vmem:[%s8298_s27 + $0x144] ss:$16 sps:$4 sm:$0xff]   ;;  %v8411_v50 = vshrl.u32 %v677_v45, 7  ;;  %p6588_p6 = scmp.ge.s32.totalorder %s8149_s28, 4 }
 0x122   : > { %2117 = vmatpush1.bf16.msra.mxu0 %v6803_v22  ;;  %2281 = vmatpush1.bf16.msra.mxu1 %v6804_v23  ;;  %v6843_v51 = vld [vmem:[%s8298_s27 + $0x14c] ss:$16 sps:$4 sm:$0xff]   ;;  %v6845_v52 = vld [vmem:[%s8298_s27 + $0x140] ss:$16 sps:$4 sm:$0xff]   ;;  %v6846_v53 = vld [vmem:[%s8298_s27 + $0x148] ss:$16 sps:$4 sm:$0xff]  }
 0x123   : > { %2118 = vmatprep.subr.bf16.mxu0 %v6805_v24  ;;  %2282 = vmatprep.subr.bf16.mxu1 %v6807_v25  ;;  %v6847_v54 = vld [vmem:[%s8298_s27 + $0x164] ss:$16 sps:$4 sm:$0xff]   ;;  %v8418_v55 = vsub.s32 1, %v8411_v50  ;;  %v6849_v56 = vld [vmem:[%s8298_s27 + $0x16c] ss:$16 sps:$4 sm:$0xff]   ;;  %v8443_v7 = vsub.s32 0, %v8411_v50 }
 0x124   : > { %v666_v57 = vld [vmem:[%s9515_s11 + $0x8] sm:$0xff]  ;;  %v6855_v63 = vld [vmem:[%s8298_s27 + $0x18c] ss:$16 sps:$4 sm:$0xff]   ;;  %p5235_p8 = scmp.lt.s32.totalorder (!%p6588_p6), %s8149_s28, 3  ;;  %vm5686_vm2 = vcmask (!%p6588_p6), 1040384  }
 0x125   : > { %v8425_v58 = vld [vmem:[%s8288_s17] sm:$0xff] }
 0x126   : > { %2119 = vmatpush1.bf16.msra.mxu0 %v6809_v26  ;;  %2283 = vmatpush1.bf16.msra.mxu1 %v6810_v27  ;;  %v6851_v59 = vld [vmem:[%s8298_s27 + $0x160] ss:$16 sps:$4 sm:$0xff]   ;;  %v6852_v60 = vld [vmem:[%s8298_s27 + $0x168] ss:$16 sps:$4 sm:$0xff]   ;;  %v684_v61 = vrot.slane %v8425_v58, %v8418_v55  ;;  %v6853_v62 = vld [vmem:[%s8298_s27 + $0x184] ss:$16 sps:$4 sm:$0xff]   ;;  %v680_v13 = vrot.slane %v8425_v58, %v8443_v7 }
 0x127   : > { %2120 = vmatprep.subr.bf16.mxu0 %v6811_v28  ;;  %2284 = vmatprep.subr.bf16.mxu1 %v6813_v29  ;;  %v6857_v1 = vld [vmem:[%s8298_s27 + $0x180] ss:$16 sps:$4 sm:$0xff]   ;;  %v6858_v2 = vld [vmem:[%s8298_s27 + $0x188] ss:$16 sps:$4 sm:$0xff]   ;;  %v6859_v3 = vld [vmem:[%s8298_s27 + $0x1a4] ss:$16 sps:$4 sm:$0xff]  }
 0x128   : > { %v8433_v0 = vmul.f32 %v684_v61, %v666_v57  ;;  %v6861_v5 = vld [vmem:[%s8298_s27 + $0x1ac] ss:$16 sps:$4 sm:$0xff]   ;;  %v6863_v6 = vld [vmem:[%s8298_s27 + $0x1a0] ss:$16 sps:$4 sm:$0xff]   ;;  %v6864_v8 = vld [vmem:[%s8298_s27 + $0x1a8] ss:$16 sps:$4 sm:$0xff]  }
 0x129   : > { %v6865_v9 = vld [vmem:[%s8298_s27 + $0x1c4] ss:$16 sps:$4 sm:$0xff]   ;;  %v6867_v10 = vld [vmem:[%s8298_s27 + $0x1cc] ss:$16 sps:$4 sm:$0xff]   ;;  %v6869_v11 = vld [vmem:[%s8298_s27 + $0x1c0] ss:$16 sps:$4 sm:$0xff]  }
 0x12a   : > { %2121 = vmatpush1.bf16.msra.mxu0 %v6815_v30  ;;  %2285 = vmatpush1.bf16.msra.mxu1 %v6816_v31  ;;  %v720_v4 = vpack.c.bf16 %v8433_v0, %v8433_v0  ;;  %v6870_v12 = vld [vmem:[%s8298_s27 + $0x1c8] ss:$16 sps:$4 sm:$0xff]   ;;  %v6871_v14 = vld [vmem:[%s8298_s27 + $0x1e4] ss:$16 sps:$4 sm:$0xff]   ;;  %v6873_v16 = vld [vmem:[%s8298_s27 + $0x1ec] ss:$16 sps:$4 sm:$0xff]  }
 0x12b   : > { %2122 = vmatprep.subr.bf16.mxu0 %v6817_v32  ;;  %2286 = vmatprep.subr.bf16.mxu1 %v6819_v33  ;;  %v665_v15 = vld [vmem:[%s9515_s11] sm:$0xff]  ;;  %v6879_v20 = vld [vmem:[%s8298_s27 + $0x204] ss:$16 sps:$4 sm:$0xff]  }
 0x12c   : > { %2142 = vmatprep.mubr.bf16.mxu0 %v720_v4  ;;  %2306 = vmatprep.mubr.bf16.mxu1 %v720_v4  ;;  %v6875_v17 = vld [vmem:[%s8298_s27 + $0x1e0] ss:$16 sps:$4 sm:$0xff]   ;;  %v8458_v18 = vmul.f32 %v680_v13, %v665_v15  ;;  %v6876_v19 = vld [vmem:[%s8298_s27 + $0x1e8] ss:$16 sps:$4 sm:$0xff]   ;;  %v6882_v21 = vld [vmem:[%s8298_s27 + $0x20c] ss:$16 sps:$4 sm:$0xff]  }
 0x12d   : > { %v6877_v22 = vld [vmem:[%s8298_s27 + $0x200] ss:$16 sps:$4 sm:$0xff]   ;;  %v6880_v24 = vld [vmem:[%s8298_s27 + $0x208] ss:$16 sps:$4 sm:$0xff]   ;;  %v6885_v25 = vld [vmem:[%s8298_s27 + $0x224] ss:$16 sps:$4 sm:$0xff]  }
 0x12e   : > { %2123 = vmatpush1.bf16.msra.mxu0 %v6821_v34  ;;  %2287 = vmatpush1.bf16.msra.mxu1 %v6822_v35  ;;  %v719_v23 = vpack.c.bf16 %v8458_v18, %v8458_v18  ;;  %v6888_v26 = vld [vmem:[%s8298_s27 + $0x22c] ss:$16 sps:$4 sm:$0xff]   ;;  %v6883_v27 = vld [vmem:[%s8298_s27 + $0x220] ss:$16 sps:$4 sm:$0xff]   ;;  %v6886_v28 = vld [vmem:[%s8298_s27 + $0x228] ss:$16 sps:$4 sm:$0xff]  }
 0x12f   : > { %2124 = vmatprep.subr.bf16.mxu0 %v6823_v36  ;;  %2288 = vmatprep.subr.bf16.mxu1 %v6825_v37  ;;  %v6891_v29 = vld [vmem:[%s8298_s27 + $0x244] ss:$16 sps:$4 sm:$0xff]   ;;  %v6894_v30 = vld [vmem:[%s8298_s27 + $0x24c] ss:$16 sps:$4 sm:$0xff]   ;;  %v6889_v31 = vld [vmem:[%s8298_s27 + $0x240] ss:$16 sps:$4 sm:$0xff]  }
 0x130   : > { %v6892_v32 = vld [vmem:[%s8298_s27 + $0x248] ss:$16 sps:$4 sm:$0xff]   ;;  %v6897_v33 = vld [vmem:[%s8298_s27 + $0x264] ss:$16 sps:$4 sm:$0xff]   ;;  %v6900_v34 = vld [vmem:[%s8298_s27 + $0x26c] ss:$16 sps:$4 sm:$0xff]  }
 0x131   : > { %v6895_v35 = vld [vmem:[%s8298_s27 + $0x260] ss:$16 sps:$4 sm:$0xff]   ;;  %v6898_v36 = vld [vmem:[%s8298_s27 + $0x268] ss:$16 sps:$4 sm:$0xff]   ;;  %v6903_v37 = vld [vmem:[%s8298_s27 + $0x284] ss:$16 sps:$4 sm:$0xff]  }
 0x132   : > { %2125 = vmatpush1.bf16.msra.mxu0 %v6827_v38  ;;  %2289 = vmatpush1.bf16.msra.mxu1 %v6828_v39  ;;  %v6906_v38 = vld [vmem:[%s8298_s27 + $0x28c] ss:$16 sps:$4 sm:$0xff]   ;;  %v6901_v39 = vld [vmem:[%s8298_s27 + $0x280] ss:$16 sps:$4 sm:$0xff]   ;;  %v6927_v61 = vld [vmem:[%s8298_s27 + $0x304] ss:$16 sps:$4 sm:$0xff]  }
 0x133   : > { %2126 = vmatprep.subr.bf16.mxu0 %v6829_v40  ;;  %2290 = vmatprep.subr.bf16.mxu1 %v6831_v41  ;;  %v8483_v40 = vsub.s32 3, %v8411_v50  ;;  %v6904_v41 = vld [vmem:[%s8298_s27 + $0x288] ss:$16 sps:$4 sm:$0xff]   ;;  %v7907_v4 = vmov 0   ;;  %v6948_v13 = vld [vmem:[%s8298_s27 + $0x36c] ss:$16 sps:$4 sm:$0xff]  }
 0x134   : > { %6780 = vset.pattern.permute.xlu0 %v7907_v4  ;;  %v6946_v15 = vld [vmem:[%s8298_s27 + $0x368] ss:$16 sps:$4 sm:$0xff]  }
 0x135   : > { %v692_v45 = vrot.slane %v8425_v58, %v8483_v40 }
 0x136   : > { %2127 = vmatpush1.bf16.msra.mxu0 %v6833_v42  ;;  %2291 = vmatpush1.bf16.msra.mxu1 %v6834_v43  ;;  %v6909_v42 = vld [vmem:[%s8298_s27 + $0x2a4] ss:$16 sps:$4 sm:$0xff]   ;;  %v6912_v43 = vld [vmem:[%s8298_s27 + $0x2ac] ss:$16 sps:$4 sm:$0xff]  }
 0x137   : > { %2128 = vmatprep.subr.bf16.mxu0 %v6835_v44  ;;  %2292 = vmatprep.subr.bf16.mxu1 %v6837_v46  ;;  %v6907_v44 = vld [vmem:[%s8298_s27 + $0x2a0] ss:$16 sps:$4 sm:$0xff]   ;;  %v6910_v46 = vld [vmem:[%s8298_s27 + $0x2a8] ss:$16 sps:$4 sm:$0xff]  }
 0x13a   : > { %2129 = vmatpush1.bf16.msra.mxu0 %v6839_v47  ;;  %2293 = vmatpush1.bf16.msra.mxu1 %v6840_v48  ;;  %v6915_v47 = vld [vmem:[%s8298_s27 + $0x2c4] ss:$16 sps:$4 sm:$0xff]   ;;  %v6918_v48 = vld [vmem:[%s8298_s27 + $0x2cc] ss:$16 sps:$4 sm:$0xff]  }
 0x13b   : > { %2130 = vmatprep.subr.bf16.mxu0 %v6841_v49  ;;  %2294 = vmatprep.subr.bf16.mxu1 %v6843_v51  ;;  %v668_v49 = vld [vmem:[%s9515_s11 + $0x18] sm:$0xff] }
 0x13c   : > { %v6913_v51 = vld [vmem:[%s8298_s27 + $0x2c0] ss:$16 sps:$4 sm:$0xff]  }
 0x13e   : > { %2131 = vmatpush1.bf16.msra.mxu0 %v6845_v52  ;;  %2295 = vmatpush1.bf16.msra.mxu1 %v6846_v53  ;;  %v8498_v52 = vmul.f32 %v692_v45, %v668_v49  ;;  %v6916_v53 = vld [vmem:[%s8298_s27 + $0x2c8] ss:$16 sps:$4 sm:$0xff]   ;;  %v6981_v45 = vld [vmem:[%s8298_s27 + $0x424] ss:$16 sps:$4 sm:$0xff]  }
 0x13f   : > { %2132 = vmatprep.subr.bf16.mxu0 %v6847_v54  ;;  %2296 = vmatprep.subr.bf16.mxu1 %v6849_v56  ;;  %v6921_v54 = vld [vmem:[%s8298_s27 + $0x2e4] ss:$16 sps:$4 sm:$0xff]   ;;  %v6924_v56 = vld [vmem:[%s8298_s27 + $0x2ec] ss:$16 sps:$4 sm:$0xff]   ;;  %v6982_v49 = vld [vmem:[%s8298_s27 + $0x428] ss:$16 sps:$4 sm:$0xff]  }
 0x140   : > { %v722_v57 = vpack.c.bf16 %v8498_v52, %v8498_v52 }
 0x142   : > { %2133 = vmatpush1.bf16.msra.mxu0 %v6851_v59  ;;  %2297 = vmatpush1.bf16.msra.mxu1 %v6852_v60  ;;  %v6919_v59 = vld [vmem:[%s8298_s27 + $0x2e0] ss:$16 sps:$4 sm:$0xff]   ;;  %v6922_v60 = vld [vmem:[%s8298_s27 + $0x2e8] ss:$16 sps:$4 sm:$0xff]  }
 0x143   : > { %2134 = vmatprep.subr.bf16.mxu0 %v6853_v62  ;;  %2298 = vmatprep.subr.bf16.mxu1 %v6855_v63  ;;  %v6930_v62 = vld [vmem:[%s8298_s27 + $0x30c] ss:$16 sps:$4 sm:$0xff]   ;;  %v6925_v63 = vld [vmem:[%s8298_s27 + $0x300] ss:$16 sps:$4 sm:$0xff]  }
 0x146   : > { %2135 = vmatpush1.bf16.msra.mxu0 %v6857_v1  ;;  %2299 = vmatpush1.bf16.msra.mxu1 %v6858_v2  ;;  %v6928_v1 = vld [vmem:[%s8298_s27 + $0x308] ss:$16 sps:$4 sm:$0xff]   ;;  %v6933_v2 = vld [vmem:[%s8298_s27 + $0x324] ss:$16 sps:$4 sm:$0xff]  }
 0x147   : > { %2136 = vmatprep.subr.bf16.mxu0 %v6859_v3  ;;  %2300 = vmatprep.subr.bf16.mxu1 %v6861_v5  ;;  %v6936_v3 = vld [vmem:[%s8298_s27 + $0x32c] ss:$16 sps:$4 sm:$0xff]   ;;  %v6931_v5 = vld [vmem:[%s8298_s27 + $0x320] ss:$16 sps:$4 sm:$0xff]  }
 0x14a   : > { %2137 = vmatpush1.bf16.msra.mxu0 %v6863_v6  ;;  %2301 = vmatpush1.bf16.msra.mxu1 %v6864_v8  ;;  %v6934_v6 = vld [vmem:[%s8298_s27 + $0x328] ss:$16 sps:$4 sm:$0xff]   ;;  %v6939_v8 = vld [vmem:[%s8298_s27 + $0x344] ss:$16 sps:$4 sm:$0xff]  }
 0x14b   : > { %2138 = vmatprep.subr.bf16.mxu0 %v6865_v9  ;;  %2302 = vmatprep.subr.bf16.mxu1 %v6867_v10  ;;  %v6942_v9 = vld [vmem:[%s8298_s27 + $0x34c] ss:$16 sps:$4 sm:$0xff]   ;;  %v6937_v10 = vld [vmem:[%s8298_s27 + $0x340] ss:$16 sps:$4 sm:$0xff]  }
 0x14e   : > { %2139 = vmatpush1.bf16.msra.mxu0 %v6869_v11  ;;  %2303 = vmatpush1.bf16.msra.mxu1 %v6870_v12  ;;  %v6940_v11 = vld [vmem:[%s8298_s27 + $0x348] ss:$16 sps:$4 sm:$0xff]   ;;  %v6945_v12 = vld [vmem:[%s8298_s27 + $0x364] ss:$16 sps:$4 sm:$0xff]  }
 0x14f   : > { %2140 = vmatprep.subr.bf16.mxu0 %v6871_v14  ;;  %2304 = vmatprep.subr.bf16.mxu1 %v6873_v16  ;;  %v6943_v14 = vld [vmem:[%s8298_s27 + $0x360] ss:$16 sps:$4 sm:$0xff]   ;;  %v6951_v16 = vld [vmem:[%s8298_s27 + $0x384] ss:$16 sps:$4 sm:$0xff]  }
 0x152   : > { %2141 = vmatpush1.bf16.msra.mxu0 %v6875_v17  ;;  %2305 = vmatpush1.bf16.msra.mxu1 %v6876_v19  ;;  %v6954_v17 = vld [vmem:[%s8298_s27 + $0x38c] ss:$16 sps:$4 sm:$0xff]   ;;  %v6949_v19 = vld [vmem:[%s8298_s27 + $0x380] ss:$16 sps:$4 sm:$0xff]  }
 0x153   : > { %2151 = vmatprep.subr.bf16.mxu0 %v6879_v20  ;;  %2315 = vmatprep.subr.bf16.mxu1 %v6882_v21  ;;  %v6952_v20 = vld [vmem:[%s8298_s27 + $0x388] ss:$16 sps:$4 sm:$0xff]   ;;  %v6957_v21 = vld [vmem:[%s8298_s27 + $0x3a4] ss:$16 sps:$4 sm:$0xff]  }
 0x155   : > { %2143 = vmatmul.mubr.bf16.vlgmr.msra.gmra.mrb[0].mxu0 %v719_v23  ;;  %2307 = vmatmul.mubr.bf16.vlgmr.msra.gmra.mrb[0].mxu1 %v719_v23  ;;  %v6955_v23 = vld [vmem:[%s8298_s27 + $0x3a0] ss:$16 sps:$4 sm:$0xff]  }
 0x156   : > { %2152 = vmatpush1.bf16.msra.mxu0 %v6877_v22  ;;  %2316 = vmatpush1.bf16.msra.mxu1 %v6880_v24  ;;  %v6960_v22 = vld [vmem:[%s8298_s27 + $0x3ac] ss:$16 sps:$4 sm:$0xff]   ;;  %v8532_v24 = vsub.s32 2, %v8411_v50 }
 0x157   : > { %2153 = vmatprep.subr.bf16.mxu0 %v6885_v25  ;;  %2317 = vmatprep.subr.bf16.mxu1 %v6888_v26  ;;  %v6958_v25 = vld [vmem:[%s8298_s27 + $0x3a8] ss:$16 sps:$4 sm:$0xff]   ;;  %v6963_v26 = vld [vmem:[%s8298_s27 + $0x3c4] ss:$16 sps:$4 sm:$0xff]  }
 0x158   : > { %2183 = vmatprep.mubr.bf16.mxu0 %v722_v57  ;;  %2347 = vmatprep.mubr.bf16.mxu1 %v722_v57  ;;  %v6988_v57 = vld [vmem:[%s8298_s27 + $0x448] ss:$16 sps:$4 sm:$0xff]  }
 0x15a   : > { %2154 = vmatpush1.bf16.msra.mxu0 %v6883_v27  ;;  %2318 = vmatpush1.bf16.msra.mxu1 %v6886_v28  ;;  %v6966_v27 = vld [vmem:[%s8298_s27 + $0x3cc] ss:$16 sps:$4 sm:$0xff]   ;;  %v6961_v28 = vld [vmem:[%s8298_s27 + $0x3c0] ss:$16 sps:$4 sm:$0xff]  }
 0x15b   : > { %2155 = vmatprep.subr.bf16.mxu0 %v6891_v29  ;;  %2319 = vmatprep.subr.bf16.mxu1 %v6894_v30  ;;  %v6964_v29 = vld [vmem:[%s8298_s27 + $0x3c8] ss:$16 sps:$4 sm:$0xff]   ;;  %v688_v30 = vrot.slane %v8425_v58, %v8532_v24 }
 0x15e   : > { %2156 = vmatpush1.bf16.msra.mxu0 %v6889_v31  ;;  %2320 = vmatpush1.bf16.msra.mxu1 %v6892_v32  ;;  %v667_v31 = vld [vmem:[%s9515_s11 + $0x10] sm:$0xff]  ;;  %v6969_v32 = vld [vmem:[%s8298_s27 + $0x3e4] ss:$16 sps:$4 sm:$0xff]  }
 0x15f   : > { %2157 = vmatprep.subr.bf16.mxu0 %v6897_v33  ;;  %2321 = vmatprep.subr.bf16.mxu1 %v6900_v34  ;;  %v6972_v33 = vld [vmem:[%s8298_s27 + $0x3ec] ss:$16 sps:$4 sm:$0xff]   ;;  %v8547_v34 = vsub.s32 5, %v8411_v50 }
 0x162   : > { %2158 = vmatpush1.bf16.msra.mxu0 %v6895_v35  ;;  %2322 = vmatpush1.bf16.msra.mxu1 %v6898_v36  ;;  %v6967_v35 = vld [vmem:[%s8298_s27 + $0x3e0] ss:$16 sps:$4 sm:$0xff]   ;;  %v8550_v36 = vmul.f32 %v688_v30, %v667_v31  ;;  %v7035_v30 = vld [vmem:[%s8298_s27 + $0x544] ss:$16 sps:$4 sm:$0xff]   ;;  %v7038_v31 = vld [vmem:[%s8298_s27 + $0x54c] ss:$16 sps:$4 sm:$0xff]  }
 0x163   : > { %2159 = vmatprep.subr.bf16.mxu0 %v6903_v37  ;;  %2323 = vmatprep.subr.bf16.mxu1 %v6906_v38  ;;  %v6970_v37 = vld [vmem:[%s8298_s27 + $0x3e8] ss:$16 sps:$4 sm:$0xff]   ;;  %v6975_v38 = vld [vmem:[%s8298_s27 + $0x404] ss:$16 sps:$4 sm:$0xff]  }
 0x166   : > { %2160 = vmatpush1.bf16.msra.mxu0 %v6901_v39  ;;  %2324 = vmatpush1.bf16.msra.mxu1 %v6904_v41  ;;  %v6978_v39 = vld [vmem:[%s8298_s27 + $0x40c] ss:$16 sps:$4 sm:$0xff]   ;;  %v700_v41 = vrot.slane %v8425_v58, %v8547_v34  ;;  %v670_v58 = vld [vmem:[%s9515_s11 + $0x28] sm:$0xff] }
 0x167   : > { %2161 = vmatprep.subr.bf16.mxu0 %v6909_v42  ;;  %2325 = vmatprep.subr.bf16.mxu1 %v6912_v43  ;;  %v6973_v42 = vld [vmem:[%s8298_s27 + $0x400] ss:$16 sps:$4 sm:$0xff]   ;;  %v721_v43 = vpack.c.bf16 %v8550_v36, %v8550_v36 }
 0x16a   : > { %2162 = vmatpush1.bf16.msra.mxu0 %v6907_v44  ;;  %2326 = vmatpush1.bf16.msra.mxu1 %v6910_v46  ;;  %v6976_v44 = vld [vmem:[%s8298_s27 + $0x408] ss:$16 sps:$4 sm:$0xff]   ;;  %v6984_v46 = vld [vmem:[%s8298_s27 + $0x42c] ss:$16 sps:$4 sm:$0xff]  }
 0x16b   : > { %2163 = vmatprep.subr.bf16.mxu0 %v6915_v47  ;;  %2327 = vmatprep.subr.bf16.mxu1 %v6918_v48  ;;  %v8566_v47 = vmul.f32 %v700_v41, %v670_v58  ;;  %v6979_v48 = vld [vmem:[%s8298_s27 + $0x420] ss:$16 sps:$4 sm:$0xff]   ;;  %v7047_v41 = vld [vmem:[%s8298_s27 + $0x584] ss:$16 sps:$4 sm:$0xff]  }
 0x16c   : > { %v7051_v58 = vld [vmem:[%s8298_s27 + $0x5a0] ss:$16 sps:$4 sm:$0xff]  }
 0x16e   : > { %2164 = vmatpush1.bf16.msra.mxu0 %v6913_v51  ;;  %2328 = vmatpush1.bf16.msra.mxu1 %v6916_v53  ;;  %v6987_v51 = vld [vmem:[%s8298_s27 + $0x444] ss:$16 sps:$4 sm:$0xff]   ;;  %v724_v53 = vpack.c.bf16 %v8566_v47, %v8566_v47 }
 0x16f   : > { %2165 = vmatprep.subr.bf16.mxu0 %v6921_v54  ;;  %2329 = vmatprep.subr.bf16.mxu1 %v6924_v56  ;;  %v6990_v54 = vld [vmem:[%s8298_s27 + $0x44c] ss:$16 sps:$4 sm:$0xff]   ;;  %v6985_v56 = vld [vmem:[%s8298_s27 + $0x440] ss:$16 sps:$4 sm:$0xff]  }
 0x172   : > { %2166 = vmatpush1.bf16.msra.mxu0 %v6919_v59  ;;  %2330 = vmatpush1.bf16.msra.mxu1 %v6922_v60  ;;  %v6993_v59 = vld [vmem:[%s8298_s27 + $0x464] ss:$16 sps:$4 sm:$0xff]   ;;  %v6996_v60 = vld [vmem:[%s8298_s27 + $0x46c] ss:$16 sps:$4 sm:$0xff]  }
 0x173   : > { %2167 = vmatprep.subr.bf16.mxu0 %v6927_v61  ;;  %2331 = vmatprep.subr.bf16.mxu1 %v6930_v62  ;;  %v6991_v61 = vld [vmem:[%s8298_s27 + $0x460] ss:$16 sps:$4 sm:$0xff]   ;;  %v6994_v62 = vld [vmem:[%s8298_s27 + $0x468] ss:$16 sps:$4 sm:$0xff]  }
 0x176   : > { %2168 = vmatpush1.bf16.msra.mxu0 %v6925_v63  ;;  %2332 = vmatpush1.bf16.msra.mxu1 %v6928_v1  ;;  %v6999_v63 = vld [vmem:[%s8298_s27 + $0x484] ss:$16 sps:$4 sm:$0xff]   ;;  %v7002_v1 = vld [vmem:[%s8298_s27 + $0x48c] ss:$16 sps:$4 sm:$0xff]  }
 0x177   : > { %2169 = vmatprep.subr.bf16.mxu0 %v6933_v2  ;;  %2333 = vmatprep.subr.bf16.mxu1 %v6936_v3  ;;  %v6997_v2 = vld [vmem:[%s8298_s27 + $0x480] ss:$16 sps:$4 sm:$0xff]   ;;  %v7000_v3 = vld [vmem:[%s8298_s27 + $0x488] ss:$16 sps:$4 sm:$0xff]  }
 0x17a   : > { %2170 = vmatpush1.bf16.msra.mxu0 %v6931_v5  ;;  %2334 = vmatpush1.bf16.msra.mxu1 %v6934_v6  ;;  %v7005_v5 = vld [vmem:[%s8298_s27 + $0x4a4] ss:$16 sps:$4 sm:$0xff]   ;;  %v7008_v6 = vld [vmem:[%s8298_s27 + $0x4ac] ss:$16 sps:$4 sm:$0xff]  }
 0x17b   : > { %2171 = vmatprep.subr.bf16.mxu0 %v6939_v8  ;;  %2335 = vmatprep.subr.bf16.mxu1 %v6942_v9  ;;  %v7003_v8 = vld [vmem:[%s8298_s27 + $0x4a0] ss:$16 sps:$4 sm:$0xff]   ;;  %v7006_v9 = vld [vmem:[%s8298_s27 + $0x4a8] ss:$16 sps:$4 sm:$0xff]  }
 0x17e   : > { %2172 = vmatpush1.bf16.msra.mxu0 %v6937_v10  ;;  %2336 = vmatpush1.bf16.msra.mxu1 %v6940_v11  ;;  %v7011_v10 = vld [vmem:[%s8298_s27 + $0x4c4] ss:$16 sps:$4 sm:$0xff]   ;;  %v7014_v11 = vld [vmem:[%s8298_s27 + $0x4cc] ss:$16 sps:$4 sm:$0xff]  }
 0x17f   : > { %2173 = vmatprep.subr.bf16.mxu0 %v6945_v12  ;;  %2337 = vmatprep.subr.bf16.mxu1 %v6948_v13  ;;  %v7009_v12 = vld [vmem:[%s8298_s27 + $0x4c0] ss:$16 sps:$4 sm:$0xff]   ;;  %v7012_v13 = vld [vmem:[%s8298_s27 + $0x4c8] ss:$16 sps:$4 sm:$0xff]  }
 0x182   : > { %2174 = vmatpush1.bf16.msra.mxu0 %v6943_v14  ;;  %2338 = vmatpush1.bf16.msra.mxu1 %v6946_v15  ;;  %v672_v14 = vld [vmem:[%s9505_s1] sm:$0xff]  ;;  %v7017_v15 = vld [vmem:[%s8298_s27 + $0x4e4] ss:$16 sps:$4 sm:$0xff]  }
 0x183   : > { %2175 = vmatprep.subr.bf16.mxu0 %v6951_v16  ;;  %2339 = vmatprep.subr.bf16.mxu1 %v6954_v17  ;;  %v7020_v16 = vld [vmem:[%s8298_s27 + $0x4ec] ss:$16 sps:$4 sm:$0xff]   ;;  %vm673_vm0 = vcmp.gt.f32.partialorder %v672_v14, 0.0  ;;  %v7083_v14 = vld [vmem:[%s8298_s27 + $0x644] ss:$16 sps:$4 sm:$0xff]  }
 0x184   : > { %v2438_v17 = vsel %vm673_vm0, 1, %v7907_v4 }
 0x185   : > { %2440 = vperm.xlu0 %6780, %v2438_v17   ;;  %v7084_v17 = vld [vmem:[%s8298_s27 + $0x648] ss:$16 sps:$4 sm:$0xff]  }
 0x186   : > { %2176 = vmatpush1.bf16.msra.mxu0 %v6949_v19  ;;  %2340 = vmatpush1.bf16.msra.mxu1 %v6952_v20  ;;  %v7015_v19 = vld [vmem:[%s8298_s27 + $0x4e0] ss:$16 sps:$4 sm:$0xff]   ;;  %v7018_v20 = vld [vmem:[%s8298_s27 + $0x4e8] ss:$16 sps:$4 sm:$0xff]  }
 0x187   : > { %2177 = vmatprep.subr.bf16.mxu0 %v6957_v21  ;;  %2341 = vmatprep.subr.bf16.mxu1 %v6960_v22  ;;  %v7023_v21 = vld [vmem:[%s8298_s27 + $0x504] ss:$16 sps:$4 sm:$0xff]   ;;  %v7026_v22 = vld [vmem:[%s8298_s27 + $0x50c] ss:$16 sps:$4 sm:$0xff]  }
 0x18a   : > { %2178 = vmatpush1.bf16.msra.mxu0 %v6955_v23  ;;  %2342 = vmatpush1.bf16.msra.mxu1 %v6958_v25  ;;  %v7021_v23 = vld [vmem:[%s8298_s27 + $0x500] ss:$16 sps:$4 sm:$0xff]   ;;  %v7024_v25 = vld [vmem:[%s8298_s27 + $0x508] ss:$16 sps:$4 sm:$0xff]  }
 0x18b   : > { %2179 = vmatprep.subr.bf16.mxu0 %v6963_v26  ;;  %2343 = vmatprep.subr.bf16.mxu1 %v6966_v27  ;;  %v7029_v26 = vld [vmem:[%s8298_s27 + $0x524] ss:$16 sps:$4 sm:$0xff]   ;;  %v7032_v27 = vld [vmem:[%s8298_s27 + $0x52c] ss:$16 sps:$4 sm:$0xff]  }
 0x18e   : > { %2180 = vmatpush1.bf16.msra.mxu0 %v6961_v28  ;;  %2344 = vmatpush1.bf16.msra.mxu1 %v6964_v29  ;;  %v7027_v28 = vld [vmem:[%s8298_s27 + $0x520] ss:$16 sps:$4 sm:$0xff]   ;;  %v7030_v29 = vld [vmem:[%s8298_s27 + $0x528] ss:$16 sps:$4 sm:$0xff]  }
 0x18f   : > { %2181 = vmatprep.subr.bf16.mxu0 %v6969_v32  ;;  %2345 = vmatprep.subr.bf16.mxu1 %v6972_v33  ;;  %v7033_v32 = vld [vmem:[%s8298_s27 + $0x540] ss:$16 sps:$4 sm:$0xff]   ;;  %v7036_v33 = vld [vmem:[%s8298_s27 + $0x548] ss:$16 sps:$4 sm:$0xff]  }
 0x192   : > { %2182 = vmatpush1.bf16.msra.mxu0 %v6967_v35  ;;  %2346 = vmatpush1.bf16.msra.mxu1 %v6970_v37  ;;  %v7041_v35 = vld [vmem:[%s8298_s27 + $0x564] ss:$16 sps:$4 sm:$0xff]   ;;  %v7044_v37 = vld [vmem:[%s8298_s27 + $0x56c] ss:$16 sps:$4 sm:$0xff]  }
 0x193   : > { %2192 = vmatprep.subr.bf16.mxu0 %v6975_v38  ;;  %2356 = vmatprep.subr.bf16.mxu1 %v6978_v39  ;;  %v7039_v38 = vld [vmem:[%s8298_s27 + $0x560] ss:$16 sps:$4 sm:$0xff]   ;;  %v7042_v39 = vld [vmem:[%s8298_s27 + $0x568] ss:$16 sps:$4 sm:$0xff]  }
 0x195   : > { %2184 = vmatmul.mubr.bf16.vlgmr.msra.gmra.mrb[0].mxu0 %v721_v43  ;;  %2348 = vmatmul.mubr.bf16.vlgmr.msra.gmra.mrb[0].mxu1 %v721_v43  ;;  %v7045_v43 = vld [vmem:[%s8298_s27 + $0x580] ss:$16 sps:$4 sm:$0xff]  }
 0x196   : > { %2193 = vmatpush1.bf16.msra.mxu0 %v6973_v42  ;;  %2357 = vmatpush1.bf16.msra.mxu1 %v6976_v44  ;;  %v7050_v42 = vld [vmem:[%s8298_s27 + $0x58c] ss:$16 sps:$4 sm:$0xff]   ;;  %v7048_v44 = vld [vmem:[%s8298_s27 + $0x588] ss:$16 sps:$4 sm:$0xff]  }
 0x197   : > { %2194 = vmatprep.subr.bf16.mxu0 %v6981_v45  ;;  %2358 = vmatprep.subr.bf16.mxu1 %v6984_v46  ;;  %v7053_v45 = vld [vmem:[%s8298_s27 + $0x5a4] ss:$16 sps:$4 sm:$0xff]   ;;  %v7056_v46 = vld [vmem:[%s8298_s27 + $0x5ac] ss:$16 sps:$4 sm:$0xff]  }
 0x198   : > { %2224 = vmatprep.mubr.bf16.mxu0 %v724_v53  ;;  %2388 = vmatprep.mubr.bf16.mxu1 %v724_v53  ;;  %v8627_v53 = vsub.s32 4, %v8411_v50 }
 0x19a   : > { %2195 = vmatpush1.bf16.msra.mxu0 %v6979_v48  ;;  %2359 = vmatpush1.bf16.msra.mxu1 %v6982_v49  ;;  %v7054_v48 = vld [vmem:[%s8298_s27 + $0x5a8] ss:$16 sps:$4 sm:$0xff]   ;;  %v7059_v49 = vld [vmem:[%s8298_s27 + $0x5c4] ss:$16 sps:$4 sm:$0xff]  }
 0x19b   : > { %2196 = vmatprep.subr.bf16.mxu0 %v6987_v51  ;;  %2360 = vmatprep.subr.bf16.mxu1 %v6990_v54  ;;  %v7062_v51 = vld [vmem:[%s8298_s27 + $0x5cc] ss:$16 sps:$4 sm:$0xff]   ;;  %v7057_v54 = vld [vmem:[%s8298_s27 + $0x5c0] ss:$16 sps:$4 sm:$0xff]  }
 0x19e   : > { %2197 = vmatpush1.bf16.msra.mxu0 %v6985_v56  ;;  %2361 = vmatpush1.bf16.msra.mxu1 %v6988_v57  ;;  %v7060_v56 = vld [vmem:[%s8298_s27 + $0x5c8] ss:$16 sps:$4 sm:$0xff]  }
 0x19f   : > { %2198 = vmatprep.subr.bf16.mxu0 %v6993_v59  ;;  %2362 = vmatprep.subr.bf16.mxu1 %v6996_v60  ;;  %v669_v57 = vld [vmem:[%s9515_s11 + $0x20] sm:$0xff]  ;;  %v7065_v59 = vld [vmem:[%s8298_s27 + $0x5e4] ss:$16 sps:$4 sm:$0xff]  }
 0x1a0   : > { %v7068_v60 = vld [vmem:[%s8298_s27 + $0x5ec] ss:$16 sps:$4 sm:$0xff]  }
 0x1a2   : > { %2199 = vmatpush1.bf16.msra.mxu0 %v6991_v61  ;;  %2363 = vmatpush1.bf16.msra.mxu1 %v6994_v62  ;;  %v8637_v61 = vld [vmem:[%s8288_s17] sm:$0xff] }
 0x1a3   : > { %2200 = vmatprep.subr.bf16.mxu0 %v6999_v63  ;;  %2364 = vmatprep.subr.bf16.mxu1 %v7002_v1  ;;  %v696_v62 = vrot.slane %v8637_v61, %v8627_v53  ;;  %v7063_v63 = vld [vmem:[%s8298_s27 + $0x5e0] ss:$16 sps:$4 sm:$0xff]   ;;  %v7066_v1 = vld [vmem:[%s8298_s27 + $0x5e8] ss:$16 sps:$4 sm:$0xff]  }
 0x1a6   : > { %2201 = vmatpush1.bf16.msra.mxu0 %v6997_v2  ;;  %2365 = vmatpush1.bf16.msra.mxu1 %v7000_v3  ;;  %v7071_v2 = vld [vmem:[%s8298_s27 + $0x604] ss:$16 sps:$4 sm:$0xff]   ;;  %v7074_v3 = vld [vmem:[%s8298_s27 + $0x60c] ss:$16 sps:$4 sm:$0xff]  }
 0x1a7   : > { %2202 = vmatprep.subr.bf16.mxu0 %v7005_v5  ;;  %2366 = vmatprep.subr.bf16.mxu1 %v7008_v6  ;;  %v8645_v5 = vmul.f32 %v696_v62, %v669_v57  ;;  %v7069_v6 = vld [vmem:[%s8298_s27 + $0x600] ss:$16 sps:$4 sm:$0xff]   ;;  %v7128_v57 = vld [vmem:[%s8306_s16 + $0x34] ss:$8 sps:$4 sm:$0xff]  }
 0x1a8   : > { %v7134_v62 = vld [vmem:[%s8306_s16 + $0x54] ss:$8 sps:$4 sm:$0xff]  }
 0x1aa   : > { %2203 = vmatpush1.bf16.msra.mxu0 %v7003_v8  ;;  %2367 = vmatpush1.bf16.msra.mxu1 %v7006_v9  ;;  %v7072_v8 = vld [vmem:[%s8298_s27 + $0x608] ss:$16 sps:$4 sm:$0xff]   ;;  %v723_v9 = vpack.c.bf16 %v8645_v5, %v8645_v5 }
 0x1ab   : > { %2204 = vmatprep.subr.bf16.mxu0 %v7011_v10  ;;  %2368 = vmatprep.subr.bf16.mxu1 %v7014_v11  ;;  %v7077_v10 = vld [vmem:[%s8298_s27 + $0x624] ss:$16 sps:$4 sm:$0xff]   ;;  %v7080_v11 = vld [vmem:[%s8298_s27 + $0x62c] ss:$16 sps:$4 sm:$0xff]  }
 0x1ae   : > { %2205 = vmatpush1.bf16.msra.mxu0 %v7009_v12  ;;  %2369 = vmatpush1.bf16.msra.mxu1 %v7012_v13  ;;  %v7075_v12 = vld [vmem:[%s8298_s27 + $0x620] ss:$16 sps:$4 sm:$0xff]   ;;  %v7078_v13 = vld [vmem:[%s8298_s27 + $0x628] ss:$16 sps:$4 sm:$0xff]  }
 0x1af   : > { %2206 = vmatprep.subr.bf16.mxu0 %v7017_v15  ;;  %2370 = vmatprep.subr.bf16.mxu1 %v7020_v16  ;;  %v7086_v15 = vld [vmem:[%s8298_s27 + $0x64c] ss:$16 sps:$4 sm:$0xff]   ;;  %v7081_v16 = vld [vmem:[%s8298_s27 + $0x640] ss:$16 sps:$4 sm:$0xff]  }
 0x1b2   : > { %2207 = vmatpush1.bf16.msra.mxu0 %v7015_v19  ;;  %2371 = vmatpush1.bf16.msra.mxu1 %v7018_v20  ;;  %v7089_v19 = vld [vmem:[%s8298_s27 + $0x664] ss:$16 sps:$4 sm:$0xff]   ;;  %v7092_v20 = vld [vmem:[%s8298_s27 + $0x66c] ss:$16 sps:$4 sm:$0xff]  }
 0x1b3   : > { %2208 = vmatprep.subr.bf16.mxu0 %v7023_v21  ;;  %2372 = vmatprep.subr.bf16.mxu1 %v7026_v22  ;;  %v7087_v21 = vld [vmem:[%s8298_s27 + $0x660] ss:$16 sps:$4 sm:$0xff]   ;;  %v7090_v22 = vld [vmem:[%s8298_s27 + $0x668] ss:$16 sps:$4 sm:$0xff]  }
 0x1b6   : > { %2209 = vmatpush1.bf16.msra.mxu0 %v7021_v23  ;;  %2373 = vmatpush1.bf16.msra.mxu1 %v7024_v25  ;;  %v7095_v23 = vld [vmem:[%s8298_s27 + $0x684] ss:$16 sps:$4 sm:$0xff]   ;;  %v7098_v25 = vld [vmem:[%s8298_s27 + $0x68c] ss:$16 sps:$4 sm:$0xff]  }
 0x1b7   : > { %2210 = vmatprep.subr.bf16.mxu0 %v7029_v26  ;;  %2374 = vmatprep.subr.bf16.mxu1 %v7032_v27  ;;  %v7096_v26 = vld [vmem:[%s8298_s27 + $0x688] ss:$16 sps:$4 sm:$0xff]   ;;  %v7101_v27 = vld [vmem:[%s8298_s27 + $0x6a4] ss:$16 sps:$4 sm:$0xff]  }
 0x1ba   : > { %2211 = vmatpush1.bf16.msra.mxu0 %v7027_v28  ;;  %2375 = vmatpush1.bf16.msra.mxu1 %v7030_v29  ;;  %v7104_v28 = vld [vmem:[%s8298_s27 + $0x6ac] ss:$16 sps:$4 sm:$0xff]   ;;  %v7099_v29 = vld [vmem:[%s8298_s27 + $0x6a0] ss:$16 sps:$4 sm:$0xff]  }
 0x1bb   : > { %2212 = vmatprep.subr.bf16.mxu0 %v7035_v30  ;;  %2376 = vmatprep.subr.bf16.mxu1 %v7038_v31  ;;  %v7102_v30 = vld [vmem:[%s8298_s27 + $0x6a8] ss:$16 sps:$4 sm:$0xff]   ;;  %v7107_v31 = vld [vmem:[%s8298_s27 + $0x6c4] ss:$16 sps:$4 sm:$0xff]  }
 0x1be   : > { %2213 = vmatpush1.bf16.msra.mxu0 %v7033_v32  ;;  %2377 = vmatpush1.bf16.msra.mxu1 %v7036_v33  ;;  %v7110_v32 = vld [vmem:[%s8298_s27 + $0x6cc] ss:$16 sps:$4 sm:$0xff]   ;;  %v8676_v33 = vsub.s32 6, %v8411_v50 }
 0x1bf   : > { %2214 = vmatprep.subr.bf16.mxu0 %v7041_v35  ;;  %2378 = vmatprep.subr.bf16.mxu1 %v7044_v37  ;;  %v7105_v35 = vld [vmem:[%s8298_s27 + $0x6c0] ss:$16 sps:$4 sm:$0xff]   ;;  %v7108_v37 = vld [vmem:[%s8298_s27 + $0x6c8] ss:$16 sps:$4 sm:$0xff]  }
 0x1c2   : > { %2215 = vmatpush1.bf16.msra.mxu0 %v7039_v38  ;;  %2379 = vmatpush1.bf16.msra.mxu1 %v7042_v39  ;;  %v671_v38 = vld [vmem:[%s9515_s11 + $0x30] sm:$0xff]  ;;  %v7113_v39 = vld [vmem:[%s8298_s27 + $0x6e4] ss:$16 sps:$4 sm:$0xff]  }
 0x1c3   : > { %2216 = vmatprep.subr.bf16.mxu0 %v7047_v41  ;;  %2380 = vmatprep.subr.bf16.mxu1 %v7050_v42  ;;  %v7116_v41 = vld [vmem:[%s8298_s27 + $0x6ec] ss:$16 sps:$4 sm:$0xff]   ;;  %v704_v42 = vrot.slane %v8637_v61, %v8676_v33  ;;  %v7129_v61 = vld [vmem:[%s8306_s16 + $0x40] ss:$8 sps:$4 sm:$0xff]  }
 0x1c6   : > { %2217 = vmatpush1.bf16.msra.mxu0 %v7045_v43  ;;  %2381 = vmatpush1.bf16.msra.mxu1 %v7048_v44  ;;  %v7111_v43 = vld [vmem:[%s8298_s27 + $0x6e0] ss:$16 sps:$4 sm:$0xff]   ;;  %v7114_v44 = vld [vmem:[%s8298_s27 + $0x6e8] ss:$16 sps:$4 sm:$0xff]  }
 0x1c7   : > { %2218 = vmatprep.subr.bf16.mxu0 %v7053_v45  ;;  %2382 = vmatprep.subr.bf16.mxu1 %v7056_v46  ;;  %v8689_v45 = vmul.f32 %v704_v42, %v671_v38  ;;  %v7119_v46 = vld [vmem:[%s8306_s16 + $0x4] ss:$8 sps:$4 sm:$0xff]  }
 0x1c8   : > { %v8738_v38 = vld [vmem:[%s8304_s24 + $0x8] sm:$0x77] }
 0x1ca   : > { %2219 = vmatpush1.bf16.msra.mxu0 %v7051_v58  ;;  %2383 = vmatpush1.bf16.msra.mxu1 %v7054_v48  ;;  %v7117_v58 = vld [vmem:[%s8306_s16] ss:$8 sps:$4 sm:$0xff]   ;;  %v725_v48 = vpack.c.bf16 %v8689_v45, %v8689_v45 }
 0x1cb   : > { %2220 = vmatprep.subr.bf16.mxu0 %v7059_v49  ;;  %2384 = vmatprep.subr.bf16.mxu1 %v7062_v51  ;;  %v7122_v49 = vld [vmem:[%s8306_s16 + $0x14] ss:$8 sps:$4 sm:$0xff]   ;;  %v7120_v51 = vld [vmem:[%s8306_s16 + $0x10] ss:$8 sps:$4 sm:$0xff]  }
 0x1ce   : > { %2221 = vmatpush1.bf16.msra.mxu0 %v7057_v54  ;;  %2385 = vmatpush1.bf16.msra.mxu1 %v7060_v56  ;;  %v7125_v54 = vld [vmem:[%s8306_s16 + $0x24] ss:$8 sps:$4 sm:$0xff]   ;;  %v7123_v56 = vld [vmem:[%s8306_s16 + $0x20] ss:$8 sps:$4 sm:$0xff]  }
 0x1cf   : > { %2222 = vmatprep.subr.bf16.mxu0 %v7065_v59  ;;  %2386 = vmatprep.subr.bf16.mxu1 %v7068_v60  ;;  %v7126_v59 = vld [vmem:[%s8306_s16 + $0x30] ss:$8 sps:$4 sm:$0xff]   ;;  %v7131_v60 = vld [vmem:[%s8306_s16 + $0x44] ss:$8 sps:$4 sm:$0xff]  }
 0x1d2   : > { %2223 = vmatpush1.bf16.msra.mxu0 %v7063_v63  ;;  %2387 = vmatpush1.bf16.msra.mxu1 %v7066_v1  ;;  %v7132_v63 = vld [vmem:[%s8306_s16 + $0x50] ss:$8 sps:$4 sm:$0xff]   ;;  %v7137_v1 = vld [vmem:[%s8306_s16 + $0x64] ss:$8 sps:$4 sm:$0xff]  }
 0x1d3   : > { %2233 = vmatprep.subr.bf16.mxu0 %v7071_v2  ;;  %2397 = vmatprep.subr.bf16.mxu1 %v7074_v3  ;;  %v7135_v2 = vld [vmem:[%s8306_s16 + $0x60] ss:$8 sps:$4 sm:$0xff]   ;;  %v7140_v3 = vld [vmem:[%s8306_s16 + $0x74] ss:$8 sps:$4 sm:$0xff]  }
 0x1d5   : > { %2225 = vmatmul.mubr.bf16.vlgmr.msra.gmra.mrb[0].mxu0 %v723_v9  ;;  %2389 = vmatmul.mubr.bf16.vlgmr.msra.gmra.mrb[0].mxu1 %v723_v9  ;;  %v7141_v9 = vld [vmem:[%s8306_s16 + $0x80] ss:$8 sps:$4 sm:$0xff]  }
 0x1d6   : > { %2234 = vmatpush1.bf16.msra.mxu0 %v7069_v6  ;;  %2398 = vmatpush1.bf16.msra.mxu1 %v7072_v8  ;;  %v7138_v6 = vld [vmem:[%s8306_s16 + $0x70] ss:$8 sps:$4 sm:$0xff]   ;;  %v7143_v8 = vld [vmem:[%s8306_s16 + $0x84] ss:$8 sps:$4 sm:$0xff]  }
 0x1d7   : > { %2235 = vmatprep.subr.bf16.mxu0 %v7077_v10  ;;  %2399 = vmatprep.subr.bf16.mxu1 %v7080_v11  ;;  %v7146_v10 = vld [vmem:[%s8306_s16 + $0x94] ss:$8 sps:$4 sm:$0xff]   ;;  %v7144_v11 = vld [vmem:[%s8306_s16 + $0x90] ss:$8 sps:$4 sm:$0xff]  }
 0x1d8   : > { %2265 = vmatprep.mubr.bf16.mxu0 %v7907_v4  ;;  %2429 = vmatprep.mubr.bf16.mxu1 %v7907_v4  ;;  %v7093_v4 = vld [vmem:[%s8298_s27 + $0x680] ss:$16 sps:$4 sm:$0xff]  }
 0x1da   : > { %2236 = vmatpush1.bf16.msra.mxu0 %v7075_v12  ;;  %2400 = vmatpush1.bf16.msra.mxu1 %v7078_v13  ;;  %v7149_v12 = vld [vmem:[%s8306_s16 + $0xa4] ss:$8 sps:$4 sm:$0xff]   ;;  %v7147_v13 = vld [vmem:[%s8306_s16 + $0xa0] ss:$8 sps:$4 sm:$0xff]  }
 0x1db   : > { %2237 = vmatprep.subr.bf16.mxu0 %v7083_v14  ;;  %2401 = vmatprep.subr.bf16.mxu1 %v7086_v15  ;;  %v7152_v14 = vld [vmem:[%s8306_s16 + $0xb4] ss:$8 sps:$4 sm:$0xff]   ;;  %v7150_v15 = vld [vmem:[%s8306_s16 + $0xb0] ss:$8 sps:$4 sm:$0xff]  }
 0x1de   : > { %2238 = vmatpush1.bf16.msra.mxu0 %v7081_v16  ;;  %2402 = vmatpush1.bf16.msra.mxu1 %v7084_v17  ;;  %v7155_v16 = vld [vmem:[%s8306_s16 + $0xc4] ss:$8 sps:$4 sm:$0xff]   ;;  %v7153_v17 = vld [vmem:[%s8306_s16 + $0xc0] ss:$8 sps:$4 sm:$0xff]  }
 0x1df   : > { %2239 = vmatprep.subr.bf16.mxu0 %v7089_v19  ;;  %2403 = vmatprep.subr.bf16.mxu1 %v7092_v20  ;;  %v7158_v19 = vld [vmem:[%s8306_s16 + $0xd4] ss:$8 sps:$4 sm:$0xff]   ;;  %v7156_v20 = vld [vmem:[%s8306_s16 + $0xd0] ss:$8 sps:$4 sm:$0xff]  }
 0x1e2   : > { %2240 = vmatpush1.bf16.msra.mxu0 %v7087_v21  ;;  %2404 = vmatpush1.bf16.msra.mxu1 %v7090_v22  ;;  %v7161_v21 = vld [vmem:[%s8306_s16 + $0xe4] ss:$8 sps:$4 sm:$0xff]   ;;  %v7159_v22 = vld [vmem:[%s8306_s16 + $0xe0] ss:$8 sps:$4 sm:$0xff]  }
 0x1e3   : > { %2241 = vmatprep.subr.bf16.mxu0 %v7095_v23  ;;  %2405 = vmatprep.subr.bf16.mxu1 %v7098_v25  ;;  %v7164_v23 = vld [vmem:[%s8306_s16 + $0xf4] ss:$8 sps:$4 sm:$0xff]   ;;  %v7162_v25 = vld [vmem:[%s8306_s16 + $0xf0] ss:$8 sps:$4 sm:$0xff]  }
 0x1e6   : > { %2242 = vmatpush1.bf16.msra.mxu0 %v7093_v4  ;;  %2406 = vmatpush1.bf16.msra.mxu1 %v7096_v26  ;;  %v7165_v4 = vld [vmem:[%s8308_s19] ss:$28 sps:$4 sm:$0xff]  }
 0x1e7   : > { %2243 = vmatprep.subr.bf16.mxu0 %v7101_v27  ;;  %2407 = vmatprep.subr.bf16.mxu1 %v7104_v28  ;;  %v7167_v26 = vld [vmem:[%s8308_s19 + $0x4] ss:$28 sps:$4 sm:$0xff]   ;;  %v7170_v27 = vld [vmem:[%s8308_s19 + $0xc] ss:$28 sps:$4 sm:$0xff]   ;;  %v7173_v28 = vld [vmem:[%s8308_s19 + $0x3c] ss:$28 sps:$4 sm:$0xff]  }
 0x1ea   : > { %2244 = vmatpush1.bf16.msra.mxu0 %v7099_v29  ;;  %2408 = vmatpush1.bf16.msra.mxu1 %v7102_v30  ;;  %v7171_v29 = vld [vmem:[%s8308_s19 + $0x38] ss:$28 sps:$4 sm:$0xff]  }
 0x1eb   : > { %2245 = vmatprep.subr.bf16.mxu0 %v7107_v31  ;;  %2409 = vmatprep.subr.bf16.mxu1 %v7110_v32  ;;  %v7179_v30 = vld [vmem:[%s8308_s19 + $0x74] ss:$28 sps:$4 sm:$0xff]   ;;  %v7185_v32 = vld [vmem:[%s8308_s19 + $0xac] ss:$28 sps:$4 sm:$0xff]  }
 0x1ec   : > { %v7177_v31 = vld [vmem:[%s8308_s19 + $0x70] ss:$28 sps:$4 sm:$0xff]  }
 0x1ee   : > { %2246 = vmatpush1.bf16.msra.mxu0 %v7105_v35  ;;  %2410 = vmatpush1.bf16.msra.mxu1 %v7108_v37  ;;  %v7183_v35 = vld [vmem:[%s8308_s19 + $0xa8] ss:$28 sps:$4 sm:$0xff]  }
 0x1ef   : > { %2247 = vmatprep.subr.bf16.mxu0 %v7113_v39  ;;  %2411 = vmatprep.subr.bf16.mxu1 %v7116_v41  ;;  %v8735_v37 = vld [vmem:[%s8304_s24] sm:$0x77]  ;;  %v965_v41 = vrot.slane %v8738_v38, %v8443_v7 }
 0x1f0   : > { %v957_v39 = vrot.slane %v8735_v37, %v8443_v7  ;;  %v961_v42 = vrot.slane %v8735_v37, %v8627_v53 }
 0x1f2   : > { %2248 = vmatpush1.bf16.msra.mxu0 %v7111_v43  ;;  %2412 = vmatpush1.bf16.msra.mxu1 %v7114_v44  ;;  %v977_v43 = vrot.slane %v957_v39, %v8443_v7  ;;  %v985_v44 = vrot.slane %v965_v41, %v8443_v7 }
 0x1f3   : > { %2833 = vmatprep.subr.bf16.mxu0 %v7119_v46  ;;  %3705 = vmatprep.subr.bf16.mxu1 %v7167_v26 }
 0x1f5   : > { %2266 = vmatmul.mubr.bf16.vlgmr.msra.gmra.mrb[0].mxu0 %v725_v48  ;;  %2430 = vmatmul.mubr.bf16.vlgmr.msra.gmra.mrb[0].mxu1 %v725_v48 }
 0x1f6   : > { %2834 = vmatpush1.bf16.msra.mxu0 %v7117_v58  ;;  %3706 = vmatpush1.bf16.msra.mxu1 %v7165_v4  ;;  %v981_v58 = vrot.slane %v961_v42, %v8443_v7 }
 0x1f7   : > { %2835 = vmatprep.subr.bf16.mxu0 %v7122_v49  ;;  %3707 = vmatprep.subr.bf16.mxu1 %v7173_v28 }
 0x1fa   : > { %2836 = vmatpush1.bf16.msra.mxu0 %v7120_v51  ;;  %3708 = vmatpush1.bf16.msra.mxu1 %v7171_v29 }
 0x1fb   : > { %2837 = vmatprep.subr.bf16.mxu0 %v7125_v54  ;;  %3709 = vmatprep.subr.bf16.mxu1 %v7179_v30 }
 0x1fe   : > { %2838 = vmatpush1.bf16.msra.mxu0 %v7123_v56  ;;  %3710 = vmatpush1.bf16.msra.mxu1 %v7177_v31 }
 0x1ff   : > { %2839 = vmatprep.subr.bf16.mxu0 %v7128_v57  ;;  %3711 = vmatprep.subr.bf16.mxu1 %v7185_v32 }
 0x202   : > { %2840 = vmatpush1.bf16.msra.mxu0 %v7126_v59  ;;  %3712 = vmatpush1.bf16.msra.mxu1 %v7183_v35 }
 0x203   : > { %2841 = vmatprep.subr.bf16.mxu0 %v7131_v60 }
 0x204   : > { %v8748_v46 = vpop.permute.xlu0 %2440 }
 0x205   : > { %vm2442_vm1 = vcmp.eq.s32.totalorder %v8748_v46, 1 }
 0x206   : > { %2842 = vmatpush1.bf16.msra.mxu0 %v7129_v61 }
 0x207   : > { %2843 = vmatprep.subr.bf16.mxu0 %v7134_v62 }
 0x20a   : > { %2844 = vmatpush1.bf16.msra.mxu0 %v7132_v63 }
 0x20b   : > { %2845 = vmatprep.subr.bf16.mxu0 %v7137_v1 }
 0x20e   : > { %2846 = vmatpush1.bf16.msra.mxu0 %v7135_v2 }
 0x20f   : > { %2847 = vmatprep.subr.bf16.mxu0 %v7140_v3 }
 0x212   : > { %2848 = vmatpush1.bf16.msra.mxu0 %v7138_v6 }
 0x213   : > { %2849 = vmatprep.subr.bf16.mxu0 %v7143_v8 }
 0x216   : > { %2850 = vmatpush1.bf16.msra.mxu0 %v7141_v9 }
 0x217   : > { %2851 = vmatprep.subr.bf16.mxu0 %v7146_v10 }
 0x21a   : > { %2852 = vmatpush1.bf16.msra.mxu0 %v7144_v11 }
 0x21b   : > { %2853 = vmatprep.subr.bf16.mxu0 %v7149_v12 }
 0x21e   : > { %2854 = vmatpush1.bf16.msra.mxu0 %v7147_v13 }
 0x21f   : > { %2855 = vmatprep.subr.bf16.mxu0 %v7152_v14 }
 0x222   : > { %2856 = vmatpush1.bf16.msra.mxu0 %v7150_v15 }
 0x223   : > { %2857 = vmatprep.subr.bf16.mxu0 %v7155_v16 }
 0x226   : > { %2858 = vmatpush1.bf16.msra.mxu0 %v7153_v17 }
 0x227   : > { %2859 = vmatprep.subr.bf16.mxu0 %v7158_v19 }
 0x22a   : > { %2860 = vmatpush1.bf16.msra.mxu0 %v7156_v20 }
 0x22b   : > { %2861 = vmatprep.subr.bf16.mxu0 %v7161_v21 }
 0x22e   : > { %2862 = vmatpush1.bf16.msra.mxu0 %v7159_v22 }
 0x22f   : > { %2863 = vmatprep.subr.bf16.mxu0 %v7164_v23 }
 0x232   : > { %2864 = vmatpush1.bf16.msra.mxu0 %v7162_v25 }
 0x233   : > { %3746 = vmatprep.subr.bf16.mxu0 %v7170_v27 }
 0x2c8   : > { %v2267_v48 = vpop.f32.mrb[0].mxu0  ;;  %v2431_v49 = vpop.f32.mrb[0].mxu1 }
 0x2c9   : > { %v8752_v51 = vadd.f32 %v2267_v48, %v977_v43  ;;  %v8754_v54 = vadd.f32 %v2431_v49, %v985_v44  ;;  %v2269_v56 = vpop.f32.mrb[1].mxu0  ;;  %v8756_v57 = vpop.f32.mrb[1].mxu1 }
 0x2ca   : > { %v8758_v59 = vadd.f32 %v2269_v56, %v981_v58  ;;  %v2271_v60 = vpop.f32.mrb[2].mxu0  ;;  %v2435_v61 = vpop.f32.mrb[2].mxu1 }
 0x2cb   : > { %v2443_v62 = vsel %vm2442_vm1, %v8752_v51, 0.0  ;;  %v2445_v63 = vsel %vm2442_vm1, %v8754_v54, 0.0  ;;  %v2272_v1 = vpop.f32.mrb[3].mxu0  ;;  %v2436_v2 = vpop.f32.mrb[3].mxu1 }
 0x2cc   : > { %v2447_v3 = vrot.slane %v2443_v62, 4  ;;  %v2459_v6 = vrot.slane %v2445_v63, 4  ;;  %v2475_v8 = vmul.f32 %v2443_v62, %v2443_v62  ;;  %v2477_v9 = vmul.f32 %v2445_v63, %v2445_v63 }
 0x2cd   : > { %v2444_v10 = vsel %vm2442_vm1, %v8758_v59, 0.0 }
 0x2ce   : > { %v2448_v11 = vadd.f32 %v2447_v3, %v2443_v62  ;;  %v2460_v12 = vadd.f32 %v2459_v6, %v2445_v63  ;;  %v2479_v13 = vrot.slane %v2475_v8, 4  ;;  %v2491_v14 = vrot.slane %v2477_v9, 4 }
 0x2cf   : > { %v2453_v15 = vrot.slane %v2444_v10, 4  ;;  %v2476_v16 = vmul.f32 %v2444_v10, %v2444_v10 }
 0x2d0   : > { %v2449_v17 = vrot.slane %v2448_v11, 2  ;;  %v2461_v19 = vrot.slane %v2460_v12, 2  ;;  %v2480_v20 = vadd.f32 %v2479_v13, %v2475_v8  ;;  %v2492_v21 = vadd.f32 %v2491_v14, %v2477_v9 }
 0x2d1   : > { %v2454_v22 = vadd.f32 %v2453_v15, %v2444_v10  ;;  %v2485_v23 = vrot.slane %v2476_v16, 4 }
 0x2d2   : > { %v2481_v25 = vrot.slane %v2480_v20, 2  ;;  %v2493_v4 = vrot.slane %v2492_v21, 2  ;;  %v2450_v26 = vadd.f32 %v2449_v17, %v2448_v11  ;;  %v2462_v27 = vadd.f32 %v2461_v19, %v2460_v12 }
 0x2d3   : > { %v2455_v28 = vrot.slane %v2454_v22, 2  ;;  %v2486_v29 = vadd.f32 %v2485_v23, %v2476_v16  ;;  %v2538_v23 = vrot.slane %v8735_v37, %v8418_v55 }
 0x2d4   : > { %v2482_v30 = vadd.f32 %v2481_v25, %v2480_v20  ;;  %v2494_v31 = vadd.f32 %v2493_v4, %v2492_v21  ;;  %v2451_v32 = vrot.slane %v2450_v26, 1  ;;  %v2463_v35 = vrot.slane %v2462_v27, 1 }
 0x2d5   : > { %v2456_v39 = vadd.f32 %v2455_v28, %v2454_v22  ;;  %v2487_v41 = vrot.slane %v2486_v29, 2  ;;  %v2578_v25 = vrot.slane %v8735_v37, %v8532_v24  ;;  %v2546_v4 = vrot.slane %v8738_v38, %v8418_v55 }
 0x2d6   : > { %v2483_v42 = vrot.slane %v2482_v30, 1  ;;  %v2495_v43 = vrot.slane %v2494_v31, 1  ;;  %v2452_v44 = vadd.f32 %v2451_v32, %v2450_v26  ;;  %v2464_v58 = vadd.f32 %v2463_v35, %v2462_v27 }
 0x2d7   : > { %v2457_v48 = vrot.slane %v2456_v39, 1  ;;  %v2488_v49 = vadd.f32 %v2487_v41, %v2486_v29  ;;  %v2542_v26 = vrot.slane %v8735_v37, %v8547_v34  ;;  %v2558_v28 = vrot.slane %v2538_v23, %v8418_v55  ;;  %v7203_v23 = vld [vmem:[%s8308_s19 + $0x154] ss:$28 sps:$4 sm:$0xff]  }
 0x2d8   : > { %v2471_v56 = vmul.f32 0.5, %v2452_v44  ;;  %v2484_v60 = vadd.f32 %v2483_v42, %v2482_v30  ;;  %v2473_v61 = vmul.f32 0.5, %v2464_v58  ;;  %v2496_v62 = vadd.f32 %v2495_v43, %v2494_v31 }
 0x2d9   : > { %v2458_v63 = vadd.f32 %v2457_v48, %v2456_v39  ;;  %v2489_v1 = vrot.slane %v2488_v49, 1  ;;  %v2586_v29 = vrot.slane %v8738_v38, %v8532_v24  ;;  %v2582_v31 = vrot.slane %v8735_v37, %v8676_v33 }
 0x2da   : > { %v2503_v2 = vmul.f32 0.5, %v2484_v60  ;;  %v2507_v3 = vmul.f32 %v2471_v56, %v2471_v56  ;;  %v2505_v6 = vmul.f32 0.5, %v2496_v62  ;;  %v2509_v11 = vmul.f32 %v2473_v61, %v2473_v61 }
 0x2db   : > { %v2472_v8 = vmul.f32 0.5, %v2458_v63  ;;  %v2490_v9 = vadd.f32 %v2489_v1, %v2488_v49  ;;  %v2519_v27 = vsub.f32 %v8752_v51, %v2471_v56  ;;  %v2598_v35 = vrot.slane %v2578_v25, %v8532_v24  ;;  %v7206_v25 = vld [vmem:[%s8308_s19 + $0x15c] ss:$28 sps:$4 sm:$0xff]  }
 0x2dc   : > { %v2511_v10 = vsub.f32 %v2503_v2, %v2507_v3  ;;  %v2513_v15 = vsub.f32 %v2505_v6, %v2509_v11  ;;  %v2521_v39 = vsub.f32 %v8754_v54, %v2473_v61  ;;  %v2566_v41 = vrot.slane %v2546_v4, %v8418_v55  ;;  %v7168_v3 = vld [vmem:[%s8308_s19 + $0x8] ss:$28 sps:$4 sm:$0xff]   ;;  %v7180_v11 = vld [vmem:[%s8308_s19 + $0x78] ss:$28 sps:$4 sm:$0xff]   ;;  %v7201_v4 = vld [vmem:[%s8308_s19 + $0x150] ss:$28 sps:$4 sm:$0xff]  }
 0x2dd   : > { %v2504_v12 = vmul.f32 0.5, %v2490_v9  ;;  %v2508_v13 = vmul.f32 %v2472_v8, %v2472_v8  ;;  %v2520_v43 = vsub.f32 %v8758_v59, %v2472_v8  ;;  %v2562_v51 = vrot.slane %v2542_v26, %v8418_v55  ;;  %v7176_v8 = vld [vmem:[%s8308_s19 + $0x44] ss:$28 sps:$4 sm:$0xff]   ;;  %v7204_v26 = vld [vmem:[%s8308_s19 + $0x158] ss:$28 sps:$4 sm:$0xff]  }
 0x2de   : > { %v2515_v14 = vmax.f32 %v2511_v10, 0.0  ;;  %v2517_v19 = vmax.f32 %v2513_v15, 0.0  ;;  %v2606_v49 = vrot.slane %v2586_v29, %v8532_v24  ;;  %v2602_v56 = vrot.slane %v2582_v31, %v8532_v24  ;;  %v7174_v9 = vld [vmem:[%s8308_s19 + $0x40] ss:$28 sps:$4 sm:$0xff]   ;;  %v7194_v15 = vld [vmem:[%s8308_s19 + $0xec] ss:$28 sps:$4 sm:$0xff]  }
 0x2df   : > { %v2512_v16 = vsub.f32 %v2504_v12, %v2508_v13  ;;  %v7182_v10 = vld [vmem:[%s8308_s19 + $0x7c] ss:$28 sps:$4 sm:$0xff]   ;;  %v7188_v12 = vld [vmem:[%s8308_s19 + $0xb4] ss:$28 sps:$4 sm:$0xff]   ;;  %v7207_v29 = vld [vmem:[%s8308_s19 + $0x188] ss:$28 sps:$4 sm:$0xff]  }
 0x2e0   : > { %v2523_v17 = vadd.f32 1e-05, %v2515_v14  ;;  %v2525_v21 = vadd.f32 1e-05, %v2517_v19  ;;  %v7186_v13 = vld [vmem:[%s8308_s19 + $0xb0] ss:$28 sps:$4 sm:$0xff]  }
 0x2e1   : > { %v2516_v20 = vmax.f32 %v2512_v16, 0.0  ;;  %v7191_v14 = vld [vmem:[%s8308_s19 + $0xe4] ss:$28 sps:$4 sm:$0xff]   ;;  %v7197_v19 = vld [vmem:[%s8308_s19 + $0x11c] ss:$28 sps:$4 sm:$0xff]  }
 0x2e2   : > { %7533 = vrsqrt.f32 %v2523_v17  ;;  %v7189_v16 = vld [vmem:[%s8308_s19 + $0xe0] ss:$28 sps:$4 sm:$0xff]   ;;  %v7192_v17 = vld [vmem:[%s8308_s19 + $0xe8] ss:$28 sps:$4 sm:$0xff]   ;;  %3713 = vmatprep.subr.bf16.mxu1 %v7191_v14  ;;  %v7260_v14 = vld [vmem:[%s8308_s19 + $0x354] ss:$28 sps:$4 sm:$0xff]  }
 0x2e3   : > { %v2524_v22 = vadd.f32 1e-05, %v2516_v20  ;;  %7535 = vrsqrt.f32 %v2525_v21  ;;  %3714 = vmatpush1.bf16.msra.mxu1 %v7189_v16  ;;  %v7200_v20 = vld [vmem:[%s8308_s19 + $0x124] ss:$28 sps:$4 sm:$0xff]   ;;  %v7195_v21 = vld [vmem:[%s8308_s19 + $0x118] ss:$28 sps:$4 sm:$0xff]  }
 0x2e4   : > { %3715 = vmatprep.subr.bf16.mxu1 %v7197_v19  ;;  %v7215_v31 = vld [vmem:[%s8308_s19 + $0x1c4] ss:$28 sps:$4 sm:$0xff]   ;;  %v7258_v16 = vld [vmem:[%s8308_s19 + $0x350] ss:$28 sps:$4 sm:$0xff]   ;;  %v7264_v19 = vld [vmem:[%s8308_s19 + $0x1d8] ss:$28 sps:$4 sm:$0xff]  }
 0x2e5   : > { %7537 = vrsqrt.f32 %v2524_v22  ;;  %v7198_v22 = vld [vmem:[%s8308_s19 + $0x120] ss:$28 sps:$4 sm:$0xff]  }
 0x2e7   : > { %3716 = vmatpush1.bf16.msra.mxu1 %v7195_v21 }
 0x2e8   : > { %3717 = vmatprep.subr.bf16.mxu1 %v7203_v23 }
 0x2eb   : > { %3718 = vmatpush1.bf16.msra.mxu1 %v7201_v4 }
 0x2ec   : > { %v7534_v30 = vpop.eup %7533 }
 0x2ed   : > { %v2531_v32 = vmul.f32 %v7534_v30, %v2519_v27  ;;  %v7536_v42 = vpop.eup %7535  ;;  %v7209_v27 = vld [vmem:[%s8308_s19 + $0x18c] ss:$28 sps:$4 sm:$0xff]  }
 0x2ee   : > { %v2533_v48 = vmul.f32 %v7536_v42, %v2521_v39  ;;  %v7210_v30 = vld [vmem:[%s8308_s19 + $0x190] ss:$28 sps:$4 sm:$0xff]   ;;  %3719 = vmatprep.subr.bf16.mxu1 %v7209_v27  ;;  %v7216_v39 = vld [vmem:[%s8308_s19 + $0x1c8] ss:$28 sps:$4 sm:$0xff]  }
 0x2ef   : > { %v7538_v44 = vpop.eup %7537  ;;  %v2571_v58 = vmul.f32 %v2558_v28, %v2531_v32  ;;  %v7212_v28 = vld [vmem:[%s8308_s19 + $0x194] ss:$28 sps:$4 sm:$0xff]   ;;  %3720 = vmatpush1.bf16.msra.mxu1 %v7207_v29  ;;  %v7218_v32 = vld [vmem:[%s8308_s19 + $0x1cc] ss:$28 sps:$4 sm:$0xff]   ;;  %v7224_v42 = vld [vmem:[%s8308_s19 + $0x204] ss:$28 sps:$4 sm:$0xff]  }
 0x2f0   : > { %v2532_v37 = vmul.f32 %v7538_v44, %v2520_v43  ;;  %v2573_v54 = vmul.f32 %v2566_v41, %v2533_v48  ;;  %3721 = vmatprep.subr.bf16.mxu1 %v7215_v31  ;;  %v7221_v41 = vld [vmem:[%s8308_s19 + $0x1fc] ss:$28 sps:$4 sm:$0xff]   ;;  %v7227_v44 = vld [vmem:[%s8308_s19 + $0x234] ss:$28 sps:$4 sm:$0xff]  }
 0x2f1   : > { %v2611_v60 = vadd.f32 %v2598_v35, %v2571_v58  ;;  %v7213_v35 = vld [vmem:[%s8308_s19 + $0x1c0] ss:$28 sps:$4 sm:$0xff]   ;;  %v7219_v43 = vld [vmem:[%s8308_s19 + $0x1f8] ss:$28 sps:$4 sm:$0xff]   ;;  %v7225_v48 = vld [vmem:[%s8308_s19 + $0x230] ss:$28 sps:$4 sm:$0xff]  }
 0x2f2   : > { %v2572_v61 = vmul.f32 %v2562_v51, %v2532_v37  ;;  %v8790_v62 = vadd.f32 %v2606_v49, %v2573_v54  ;;  %v7222_v51 = vld [vmem:[%s8308_s19 + $0x200] ss:$28 sps:$4 sm:$0xff]   ;;  %v7228_v49 = vld [vmem:[%s8308_s19 + $0x238] ss:$28 sps:$4 sm:$0xff]   ;;  %v7233_v37 = vld [vmem:[%s8308_s19 + $0x26c] ss:$28 sps:$4 sm:$0xff]  }
 0x2f3   : > { %v2615_v63 = vmax.f32 %v2611_v60, 0.0  ;;  %3722 = vmatpush1.bf16.msra.mxu1 %v7213_v35  ;;  %v7230_v58 = vld [vmem:[%s8308_s19 + $0x23c] ss:$28 sps:$4 sm:$0xff]   ;;  %v7231_v60 = vld [vmem:[%s8308_s19 + $0x268] ss:$28 sps:$4 sm:$0xff]  }
 0x2f4   : > { %v2612_v59 = vadd.f32 %v2602_v56, %v2572_v61  ;;  %3723 = vmatprep.subr.bf16.mxu1 %v7221_v41  ;;  %v7236_v56 = vld [vmem:[%s8308_s19 + $0x274] ss:$28 sps:$4 sm:$0xff]   ;;  %v7239_v61 = vld [vmem:[%s8308_s19 + $0x2a4] ss:$28 sps:$4 sm:$0xff]  }
 0x2f5   : > { %v2619_v6 = vpack.c.bf16 %v2615_v63, %v2615_v63  ;;  %v7234_v54 = vld [vmem:[%s8308_s19 + $0x270] ss:$28 sps:$4 sm:$0xff]   ;;  %v7237_v63 = vld [vmem:[%s8308_s19 + $0x2a0] ss:$28 sps:$4 sm:$0xff]  }
 0x2f6   : > { %v2616_v1 = vmax.f32 %v2612_v59, 0.0  ;;  %v7242_v59 = vld [vmem:[%s8308_s19 + $0x2ac] ss:$28 sps:$4 sm:$0xff]  }
 0x2f7   : > { %3724 = vmatpush1.bf16.msra.mxu1 %v7219_v43 }
 0x2f8   : > { %v2620_v2 = vpack.c.bf16 %v2616_v1, %v2616_v1  ;;  %3725 = vmatprep.subr.bf16.mxu1 %v7227_v44  ;;  %v7240_v1 = vld [vmem:[%s8308_s19 + $0x2a8] ss:$28 sps:$4 sm:$0xff]  }
 0x2fa   : > { %2865 = vmatprep.mubr.bf16.mxu0 %v2620_v2  ;;  %v7245_v2 = vld [vmem:[%s8308_s19 + $0x2dc] ss:$28 sps:$4 sm:$0xff]  }
 0x2fb   : > { %2866 = vmatmul.mubr.bf16.vlgmr.msra.gmra.mrb[4].mxu0 %v2619_v6  ;;  %3726 = vmatpush1.bf16.msra.mxu1 %v7225_v48  ;;  %v7243_v6 = vld [vmem:[%s8308_s19 + $0x2d8] ss:$28 sps:$4 sm:$0xff]  }
 0x2fc   : > { %3747 = vmatpush1.bf16.msra.mxu0 %v7168_v3  ;;  %3727 = vmatprep.subr.bf16.mxu1 %v7233_v37  ;;  %v7248_v3 = vld [vmem:[%s8308_s19 + $0x2e4] ss:$28 sps:$4 sm:$0xff]  }
 0x2fd   : > { %3748 = vmatprep.subr.bf16.mxu0 %v7176_v8  ;;  %v7246_v8 = vld [vmem:[%s8308_s19 + $0x2e0] ss:$28 sps:$4 sm:$0xff]  }
 0x2ff   : > { %3728 = vmatpush1.bf16.msra.mxu1 %v7231_v60 }
 0x300   : > { %3749 = vmatpush1.bf16.msra.mxu0 %v7174_v9  ;;  %3729 = vmatprep.subr.bf16.mxu1 %v7239_v61  ;;  %v7251_v9 = vld [vmem:[%s8308_s19 + $0x314] ss:$28 sps:$4 sm:$0xff]  }
 0x301   : > { %3750 = vmatprep.subr.bf16.mxu0 %v7182_v10  ;;  %v7254_v10 = vld [vmem:[%s8308_s19 + $0x31c] ss:$28 sps:$4 sm:$0xff]  }
 0x303   : > { %3730 = vmatpush1.bf16.msra.mxu1 %v7237_v63 }
 0x304   : > { %3751 = vmatpush1.bf16.msra.mxu0 %v7180_v11  ;;  %3731 = vmatprep.subr.bf16.mxu1 %v7245_v2  ;;  %v7249_v11 = vld [vmem:[%s8308_s19 + $0x310] ss:$28 sps:$4 sm:$0xff]  }
 0x305   : > { %3752 = vmatprep.subr.bf16.mxu0 %v7188_v12  ;;  %v7252_v12 = vld [vmem:[%s8308_s19 + $0x318] ss:$28 sps:$4 sm:$0xff]  }
 0x307   : > { %3732 = vmatpush1.bf16.msra.mxu1 %v7243_v6 }
 0x308   : > { %3753 = vmatpush1.bf16.msra.mxu0 %v7186_v13  ;;  %3733 = vmatprep.subr.bf16.mxu1 %v7251_v9  ;;  %v7257_v13 = vld [vmem:[%s8308_s19 + $0x34c] ss:$28 sps:$4 sm:$0xff]  }
 0x309   : > { %3754 = vmatprep.subr.bf16.mxu0 %v7194_v15  ;;  %v7255_v15 = vld [vmem:[%s8308_s19 + $0x348] ss:$28 sps:$4 sm:$0xff]  }
 0x30b   : > { %3734 = vmatpush1.bf16.msra.mxu1 %v7249_v11 }
 0x30c   : > { %3755 = vmatpush1.bf16.msra.mxu0 %v7192_v17  ;;  %3735 = vmatprep.subr.bf16.mxu1 %v7257_v13  ;;  %v7263_v17 = vld [vmem:[%s8308_s19 + $0x14] ss:$28 sps:$4 sm:$0xff]  }
 0x30d   : > { %3756 = vmatprep.subr.bf16.mxu0 %v7200_v20  ;;  %v8850_v20 = vld [vmem:[%s8321_s29] sm:$0x77] }
 0x30e   : > { %v2658_v21 = vrot.slane %v8850_v20, %v8443_v7 }
 0x30f   : > { %3736 = vmatpush1.bf16.msra.mxu1 %v7255_v15 }
 0x310   : > { %3757 = vmatpush1.bf16.msra.mxu0 %v7198_v22  ;;  %3787 = vmatprep.subr.bf16.mxu1 %v7263_v17  ;;  %v2662_v22 = vrot.slane %v8850_v20, %v8627_v53  ;;  %v2668_v23 = vrot.slane %v2658_v21, %v8443_v7 }
 0x311   : > { %3758 = vmatprep.subr.bf16.mxu0 %v7206_v25 }
 0x312   : > { %v2672_v25 = vrot.slane %v2662_v22, %v8443_v7 }
 0x314   : > { %3759 = vmatpush1.bf16.msra.mxu0 %v7204_v26 }
 0x315   : > { %3760 = vmatprep.subr.bf16.mxu0 %v7212_v28 }
 0x318   : > { %3761 = vmatpush1.bf16.msra.mxu0 %v7210_v30 }
 0x319   : > { %3762 = vmatprep.subr.bf16.mxu0 %v7218_v32 }
 0x31c   : > { %3763 = vmatpush1.bf16.msra.mxu0 %v7216_v39 }
 0x31d   : > { %3764 = vmatprep.subr.bf16.mxu0 %v7224_v42 }
 0x320   : > { %3765 = vmatpush1.bf16.msra.mxu0 %v7222_v51 }
 0x321   : > { %3766 = vmatprep.subr.bf16.mxu0 %v7230_v58 }
 0x324   : > { %3767 = vmatpush1.bf16.msra.mxu0 %v7228_v49 }
 0x325   : > { %3768 = vmatprep.subr.bf16.mxu0 %v7236_v56 }
 0x328   : > { %3769 = vmatpush1.bf16.msra.mxu0 %v7234_v54 }
 0x329   : > { %3770 = vmatprep.subr.bf16.mxu0 %v7242_v59 }
 0x32c   : > { %3771 = vmatpush1.bf16.msra.mxu0 %v7240_v1 }
 0x32d   : > { %3772 = vmatprep.subr.bf16.mxu0 %v7248_v3 }
 0x330   : > { %3773 = vmatpush1.bf16.msra.mxu0 %v7246_v8 }
 0x331   : > { %3774 = vmatprep.subr.bf16.mxu0 %v7254_v10 }
 0x334   : > { %3775 = vmatpush1.bf16.msra.mxu0 %v7252_v12 }
 0x335   : > { %3776 = vmatprep.subr.bf16.mxu0 %v7260_v14 }
 0x338   : > { %3777 = vmatpush1.bf16.msra.mxu0 %v7258_v16 }
 0x339   : > { %6596 = vmatprep.subr.bf16.mxu0 %v7264_v19 }
 0x3ce   : > { %v2867_v4 = vpop.f32.mrb[4].mxu0 }
 0x3cf   : > { %v2868_v26 = vadd.f32 %v2867_v4, %v2668_v23  ;;  %v2869_v27 = vpop.f32.mrb[5].mxu0  ;;  %v969_v4 = vrot.slane %v8738_v38, %v8627_v53 }
 0x3d0   : > { %v2870_v28 = vadd.f32 %v2869_v27, %v2672_v25  ;;  %v2871_v29 = vpop.f32.mrb[6].mxu0 }
 0x3d1   : > { %v2874_v30 = vsel %vm2442_vm1, %v2868_v26, 0.0  ;;  %v2872_v31 = vpop.f32.mrb[7].mxu0 }
 0x3d2   : > { %v2876_v32 = vrot.slane %v2874_v30, 4  ;;  %v2890_v35 = vmul.f32 %v2874_v30, %v2874_v30  ;;  %v2875_v39 = vsel %vm2442_vm1, %v2870_v28, 0.0  ;;  %v2923_v31 = vrot.slane %v8850_v20, %v8418_v55 }
 0x3d3   : > { %v2882_v41 = vrot.slane %v2875_v39, 4  ;;  %v2891_v42 = vmul.f32 %v2875_v39, %v2875_v39 }
 0x3d4   : > { %v2877_v43 = vadd.f32 %v2876_v32, %v2874_v30  ;;  %v2892_v51 = vrot.slane %v2890_v35, 4  ;;  %v989_v30 = vrot.slane %v969_v4, %v8443_v7 }
 0x3d5   : > { %v2883_v44 = vadd.f32 %v2882_v41, %v2875_v39  ;;  %v2898_v58 = vrot.slane %v2891_v42, 4  ;;  %v2943_v39 = vrot.slane %v8850_v20, %v8532_v24  ;;  %v2947_v41 = vrot.slane %v8850_v20, %v8676_v33 }
 0x3d6   : > { %v2878_v48 = vrot.slane %v2877_v43, 2  ;;  %v2893_v49 = vadd.f32 %v2892_v51, %v2890_v35  ;;  %v8868_v32 = vadd.f32 %v8756_v57, %v989_v30  ;;  %v2927_v35 = vrot.slane %v8850_v20, %v8547_v34  ;;  %v7279_v30 = vld [vmem:[%s8308_s19 + $0x280] ss:$28 sps:$4 sm:$0xff]  }
 0x3d7   : > { %v2884_v37 = vrot.slane %v2883_v44, 2  ;;  %v2899_v56 = vadd.f32 %v2898_v58, %v2891_v42  ;;  %v2957_v20 = vrot.slane %v2947_v41, %v8532_v24 }
 0x3d8   : > { %v2879_v60 = vadd.f32 %v2878_v48, %v2877_v43  ;;  %v2894_v54 = vrot.slane %v2893_v49, 2  ;;  %v2933_v43 = vrot.slane %v2923_v31, %v8418_v55  ;;  %v2937_v57 = vrot.slane %v2927_v35, %v8418_v55  ;;  %v7276_v31 = vld [vmem:[%s8308_s19 + $0xb8] ss:$28 sps:$4 sm:$0xff]   ;;  %v7280_v35 = vld [vmem:[%s8308_s19 + $0xc0] ss:$28 sps:$4 sm:$0xff]  }
 0x3d9   : > { %v2885_v61 = vadd.f32 %v2884_v37, %v2883_v44  ;;  %v2900_v59 = vrot.slane %v2899_v56, 2  ;;  %v2446_v44 = vsel %vm2442_vm1, %v8868_v32, 0.0  ;;  %v2953_v37 = vrot.slane %v2943_v39, %v8532_v24 }
 0x3da   : > { %v2880_v63 = vrot.slane %v2879_v60, 1  ;;  %v2895_v1 = vadd.f32 %v2894_v54, %v2893_v49 }
 0x3db   : > { %v2886_v2 = vrot.slane %v2885_v61, 1  ;;  %v2901_v3 = vadd.f32 %v2900_v59, %v2899_v56 }
 0x3dc   : > { %v2881_v6 = vadd.f32 %v2880_v63, %v2879_v60  ;;  %v2896_v8 = vrot.slane %v2895_v1, 1  ;;  %v2478_v60 = vmul.f32 %v2446_v44, %v2446_v44 }
 0x3dd   : > { %v2887_v9 = vadd.f32 %v2886_v2, %v2885_v61  ;;  %v2902_v10 = vrot.slane %v2901_v3, 1 }
 0x3de   : > { %v2888_v11 = vmul.f32 0.5, %v2881_v6  ;;  %v2897_v12 = vadd.f32 %v2896_v8, %v2895_v1  ;;  %v2497_v1 = vrot.slane %v2478_v60, 4  ;;  %v7261_v8 = vld [vmem:[%s8308_s19 + $0x10] ss:$28 sps:$4 sm:$0xff]  }
 0x3df   : > { %v2889_v13 = vmul.f32 0.5, %v2887_v9  ;;  %v2903_v14 = vadd.f32 %v2902_v10, %v2901_v3  ;;  %v7265_v9 = vld [vmem:[%s8308_s19 + $0x18] ss:$28 sps:$4 sm:$0xff]  }
 0x3e0   : > { %v2904_v15 = vmul.f32 0.5, %v2897_v12  ;;  %v2906_v16 = vmul.f32 %v2888_v11, %v2888_v11  ;;  %v2912_v42 = vsub.f32 %v2868_v26, %v2888_v11  ;;  %v2465_v26 = vrot.slane %v2446_v44, 4 }
 0x3e1   : > { %v2905_v17 = vmul.f32 0.5, %v2903_v14  ;;  %v2907_v19 = vmul.f32 %v2889_v13, %v2889_v13  ;;  %v2913_v58 = vsub.f32 %v2870_v28, %v2889_v13  ;;  %v2498_v11 = vadd.f32 %v2497_v1, %v2478_v60  ;;  %v7268_v13 = vld [vmem:[%s8308_s19 + $0x4c] ss:$28 sps:$4 sm:$0xff]   ;;  %v7293_v60 = vld [vmem:[%s8308_s19 + $0x164] ss:$28 sps:$4 sm:$0xff]  }
 0x3e2   : > { %v2908_v21 = vsub.f32 %v2904_v15, %v2906_v16  ;;  %v2466_v28 = vadd.f32 %v2465_v26, %v2446_v44  ;;  %v7269_v14 = vld [vmem:[%s8308_s19 + $0x210] ss:$28 sps:$4 sm:$0xff]   ;;  %v7266_v15 = vld [vmem:[%s8308_s19 + $0x48] ss:$28 sps:$4 sm:$0xff]   ;;  %v7285_v44 = vld [vmem:[%s8308_s19 + $0xf8] ss:$28 sps:$4 sm:$0xff]  }
 0x3e3   : > { %v2909_v22 = vsub.f32 %v2905_v17, %v2907_v19  ;;  %v7270_v16 = vld [vmem:[%s8308_s19 + $0x50] ss:$28 sps:$4 sm:$0xff]   ;;  %v2499_v19 = vrot.slane %v2498_v11, 2  ;;  %v7299_v1 = vld [vmem:[%s8308_s19 + $0x360] ss:$28 sps:$4 sm:$0xff]  }
 0x3e4   : > { %v2910_v23 = vmax.f32 %v2908_v21, 0.0  ;;  %v2467_v10 = vrot.slane %v2466_v28, 2  ;;  %v7273_v21 = vld [vmem:[%s8308_s19 + $0x84] ss:$28 sps:$4 sm:$0xff]  }
 0x3e5   : > { %v2911_v25 = vmax.f32 %v2909_v22, 0.0  ;;  %v7274_v22 = vld [vmem:[%s8308_s19 + $0x248] ss:$28 sps:$4 sm:$0xff]  }
 0x3e6   : > { %v2914_v27 = vadd.f32 1e-05, %v2910_v23  ;;  %v2468_v17 = vadd.f32 %v2467_v10, %v2466_v28  ;;  %v7271_v23 = vld [vmem:[%s8308_s19 + $0x80] ss:$28 sps:$4 sm:$0xff]  }
 0x3e7   : > { %v2915_v29 = vadd.f32 1e-05, %v2911_v25  ;;  %v7275_v25 = vld [vmem:[%s8308_s19 + $0x88] ss:$28 sps:$4 sm:$0xff]   ;;  %v7298_v28 = vld [vmem:[%s8308_s19 + $0x19c] ss:$28 sps:$4 sm:$0xff]  }
 0x3e8   : > { %7539 = vrsqrt.f32 %v2914_v27  ;;  %v2469_v4 = vrot.slane %v2468_v17, 1  ;;  %v2500_v27 = vadd.f32 %v2499_v19, %v2498_v11  ;;  %v7306_v11 = vld [vmem:[%s8308_s19 + $0x20c] ss:$28 sps:$4 sm:$0xff]   ;;  %v7315_v19 = vld [vmem:[%s8308_s19 + $0x2b4] ss:$28 sps:$4 sm:$0xff]  }
 0x3e9   : > { %7541 = vrsqrt.f32 %v2915_v29  ;;  %v7278_v29 = vld [vmem:[%s8308_s19 + $0xbc] ss:$28 sps:$4 sm:$0xff]  }
 0x3ea   : > { %v2470_v39 = vadd.f32 %v2469_v4, %v2468_v17  ;;  %v2501_v41 = vrot.slane %v2500_v27, 1  ;;  %v7310_v17 = vld [vmem:[%s8308_s19 + $0x278] ss:$28 sps:$4 sm:$0xff]   ;;  %v7318_v4 = vld [vmem:[%s8308_s19 + $0x2ec] ss:$28 sps:$4 sm:$0xff]  }
 0x3f2   : > { %v7540_v51 = vpop.eup %7539 }
 0x3f3   : > { %v7542_v48 = vpop.eup %7541  ;;  %v2918_v49 = vmul.f32 %v7540_v51, %v2912_v42  ;;  %v7283_v42 = vld [vmem:[%s8308_s19 + $0xf4] ss:$28 sps:$4 sm:$0xff]  }
 0x3f4   : > { %v2919_v56 = vmul.f32 %v7542_v48, %v2913_v58  ;;  %v7281_v51 = vld [vmem:[%s8308_s19 + $0xf0] ss:$28 sps:$4 sm:$0xff]   ;;  %v2474_v58 = vmul.f32 0.5, %v2470_v39 }
 0x3f5   : > { %v2938_v54 = vmul.f32 %v2933_v43, %v2918_v49  ;;  %v7284_v43 = vld [vmem:[%s8308_s19 + $0x2b8] ss:$28 sps:$4 sm:$0xff]   ;;  %v7288_v48 = vld [vmem:[%s8308_s19 + $0x12c] ss:$28 sps:$4 sm:$0xff]  }
 0x3f6   : > { %v2939_v61 = vmul.f32 %v2937_v57, %v2919_v56  ;;  %v2502_v57 = vadd.f32 %v2501_v41, %v2500_v27  ;;  %v7289_v49 = vld [vmem:[%s8308_s19 + $0x2f0] ss:$28 sps:$4 sm:$0xff]   ;;  %v2510_v26 = vmul.f32 %v2474_v58, %v2474_v58  ;;  %v7319_v41 = vld [vmem:[%s8308_s19 + $0x320] ss:$28 sps:$4 sm:$0xff]  }
 0x3f7   : > { %v2958_v59 = vadd.f32 %v2953_v37, %v2938_v54  ;;  %v7286_v37 = vld [vmem:[%s8308_s19 + $0x128] ss:$28 sps:$4 sm:$0xff]   ;;  %v7290_v56 = vld [vmem:[%s8308_s19 + $0x130] ss:$28 sps:$4 sm:$0xff]  }
 0x3f8   : > { %v2959_v63 = vadd.f32 %v2957_v20, %v2939_v61  ;;  %v2506_v20 = vmul.f32 0.5, %v2502_v57  ;;  %v7294_v54 = vld [vmem:[%s8308_s19 + $0x328] ss:$28 sps:$4 sm:$0xff]   ;;  %v7291_v61 = vld [vmem:[%s8308_s19 + $0x160] ss:$28 sps:$4 sm:$0xff]  }
 0x3f9   : > { %v2960_v2 = vmax.f32 %v2958_v59, 0.0  ;;  %v7295_v59 = vld [vmem:[%s8308_s19 + $0x168] ss:$28 sps:$4 sm:$0xff]   ;;  %v7330_v57 = vld [vmem:[%s8306_s16 + $0x114] ss:$8 sps:$4 sm:$0xff]  }
 0x3fa   : > { %v2961_v3 = vmax.f32 %v2959_v63, 0.0  ;;  %v2514_v63 = vsub.f32 %v2506_v20, %v2510_v26  ;;  %v7336_v20 = vld [vmem:[%s8306_s16 + $0x134] ss:$8 sps:$4 sm:$0xff]   ;;  %v7334_v26 = vld [vmem:[%s8306_s16 + $0x130] ss:$8 sps:$4 sm:$0xff]  }
 0x3fb   : > { %v8885_v12 = vpack.c.bf16 %v2960_v2, %v2960_v2  ;;  %v7296_v2 = vld [vmem:[%s8308_s19 + $0x198] ss:$28 sps:$4 sm:$0xff]  }
 0x3fc   : > { %v2963_v6 = vpack.c.bf16 %v2961_v3, %v2961_v3  ;;  %v7300_v3 = vld [vmem:[%s8308_s19 + $0x1a0] ss:$28 sps:$4 sm:$0xff]  }
 0x3fe   : > { %3737 = vmatprep.mubr.bf16.mxu1 %v2963_v6  ;;  %3778 = vmatprep.mubr.bf16.mxu0 %v2963_v6 }
 0x3ff   : > { %3738 = vmatmul.mubr.bf16.vlgmr.msra.gmra.mrb[4].mxu1 %v8885_v12  ;;  %3779 = vmatmul.mubr.bf16.vlgmr.msra.gmra.mrb[8].mxu0 %v8885_v12 }
 0x400   : > { %3788 = vmatpush1.bf16.msra.mxu1 %v7261_v8  ;;  %6597 = vmatpush3.bf16.msra.mxu0 %v7265_v9  ;;  %v7303_v8 = vld [vmem:[%s8308_s19 + $0x1d4] ss:$28 sps:$4 sm:$0xff]  }
 0x401   : > { %3819 = vmatprep.mubr.bf16.mxu1 %v2963_v6  ;;  %3860 = vmatprep.mubr.bf16.mxu0 %v2963_v6  ;;  %v2518_v6 = vmax.f32 %v2514_v63, 0.0  ;;  %v7301_v9 = vld [vmem:[%s8308_s19 + $0x1d0] ss:$28 sps:$4 sm:$0xff]   ;;  %v7343_v63 = vld [vmem:[%s8306_s16 + $0x160] ss:$8 sps:$4 sm:$0xff]  }
 0x402   : > { %3789 = vmatprep.subr.bf16.mxu1 %v7268_v13  ;;  %6598 = vmatprep.subr.bf16.mxu0 %v7269_v14  ;;  %v7304_v13 = vld [vmem:[%s8308_s19 + $0x208] ss:$28 sps:$4 sm:$0xff]  }
 0x403   : > { %v2526_v10 = vadd.f32 1e-05, %v2518_v6  ;;  %v7309_v14 = vld [vmem:[%s8308_s19 + $0x244] ss:$28 sps:$4 sm:$0xff]   ;;  %v7354_v6 = vld [vmem:[%s8306_s16 + $0x194] ss:$8 sps:$4 sm:$0xff]  }
 0x404   : > { %3790 = vmatpush1.bf16.msra.mxu1 %v7266_v15  ;;  %6599 = vmatpush3.bf16.msra.mxu0 %v7270_v16  ;;  %v7307_v15 = vld [vmem:[%s8308_s19 + $0x240] ss:$28 sps:$4 sm:$0xff]  }
 0x405   : > { %3791 = vmatprep.subr.bf16.mxu1 %v7273_v21  ;;  %6600 = vmatprep.subr.bf16.mxu0 %v7274_v22  ;;  %7543 = vrsqrt.f32 %v2526_v10  ;;  %v7312_v16 = vld [vmem:[%s8308_s19 + $0x27c] ss:$28 sps:$4 sm:$0xff]   ;;  %v2550_v21 = vrot.slane %v8738_v38, %v8547_v34  ;;  %v7355_v10 = vld [vmem:[%s8306_s16 + $0x1a0] ss:$8 sps:$4 sm:$0xff]  }
 0x408   : > { %3792 = vmatpush1.bf16.msra.mxu1 %v7271_v23  ;;  %6601 = vmatpush3.bf16.msra.mxu0 %v7275_v25  ;;  %v2522_v23 = vsub.f32 %v8868_v32, %v2474_v58  ;;  %v7313_v25 = vld [vmem:[%s8308_s19 + $0x2b0] ss:$28 sps:$4 sm:$0xff]   ;;  %v7325_v58 = vld [vmem:[%s8306_s16 + $0x100] ss:$8 sps:$4 sm:$0xff]  }
 0x409   : > { %3793 = vmatprep.subr.bf16.mxu1 %v7278_v29  ;;  %6602 = vmatprep.subr.bf16.mxu0 %v7279_v30  ;;  %v2570_v29 = vrot.slane %v2550_v21, %v8418_v55  ;;  %v2590_v30 = vrot.slane %v8738_v38, %v8676_v33  ;;  %v7327_v38 = vld [vmem:[%s8306_s16 + $0x104] ss:$8 sps:$4 sm:$0xff]   ;;  %v7367_v21 = vld [vmem:[%s8306_s16 + $0x1e0] ss:$8 sps:$4 sm:$0xff]  }
 0x40b   : > { %v2610_v39 = vrot.slane %v2590_v30, %v8532_v24  ;;  %v7376_v30 = vld [vmem:[%s8308_s19 + $0x388] ss:$28 sps:$4 sm:$0xff]  }
 0x40c   : > { %3794 = vmatpush1.bf16.msra.mxu1 %v7276_v31  ;;  %6603 = vmatpush3.bf16.msra.mxu0 %v7280_v35  ;;  %v7316_v31 = vld [vmem:[%s8308_s19 + $0x2e8] ss:$28 sps:$4 sm:$0xff]  }
 0x40d   : > { %3795 = vmatprep.subr.bf16.mxu1 %v7283_v42  ;;  %6604 = vmatprep.subr.bf16.mxu0 %v7284_v43  ;;  %v7321_v35 = vld [vmem:[%s8308_s19 + $0x324] ss:$28 sps:$4 sm:$0xff]   ;;  %v7324_v42 = vld [vmem:[%s8308_s19 + $0x35c] ss:$28 sps:$4 sm:$0xff]  }
 0x40f   : > { %v7544_v22 = vpop.eup %7543 }
 0x410   : > { %3796 = vmatpush1.bf16.msra.mxu1 %v7281_v51  ;;  %6605 = vmatpush3.bf16.msra.mxu0 %v7285_v44  ;;  %v2534_v27 = vmul.f32 %v7544_v22, %v2522_v23  ;;  %v7322_v51 = vld [vmem:[%s8308_s19 + $0x358] ss:$28 sps:$4 sm:$0xff]  }
 0x411   : > { %3797 = vmatprep.subr.bf16.mxu1 %v7288_v48  ;;  %6606 = vmatprep.subr.bf16.mxu0 %v7289_v49  ;;  %v7328_v49 = vld [vmem:[%s8306_s16 + $0x110] ss:$8 sps:$4 sm:$0xff]   ;;  %v7372_v22 = vld [vmem:[%s8306_s16 + $0x1f4] ss:$8 sps:$4 sm:$0xff]  }
 0x412   : > { %v2574_v32 = vmul.f32 %v2570_v29, %v2534_v27  ;;  %v7370_v23 = vld [vmem:[%s8306_s16 + $0x1f0] ss:$8 sps:$4 sm:$0xff]   ;;  %v7373_v27 = vld [vmem:[%s8308_s19 + $0x380] ss:$28 sps:$4 sm:$0xff]  }
 0x413   : > { %v7375_v29 = vld [vmem:[%s8308_s19 + $0x384] ss:$28 sps:$4 sm:$0xff]  }
 0x414   : > { %3798 = vmatpush1.bf16.msra.mxu1 %v7286_v37  ;;  %6607 = vmatpush3.bf16.msra.mxu0 %v7290_v56  ;;  %v2614_v43 = vadd.f32 %v2610_v39, %v2574_v32  ;;  %v7333_v37 = vld [vmem:[%s8306_s16 + $0x124] ss:$8 sps:$4 sm:$0xff]   ;;  %v7331_v56 = vld [vmem:[%s8306_s16 + $0x120] ss:$8 sps:$4 sm:$0xff]  }
 0x415   : > { %3799 = vmatprep.subr.bf16.mxu1 %v7293_v60  ;;  %6608 = vmatprep.subr.bf16.mxu0 %v7294_v54  ;;  %v7339_v60 = vld [vmem:[%s8306_s16 + $0x144] ss:$8 sps:$4 sm:$0xff]   ;;  %v7342_v54 = vld [vmem:[%s8306_s16 + $0x154] ss:$8 sps:$4 sm:$0xff]  }
 0x416   : > { %v2618_v44 = vmax.f32 %v2614_v43, 0.0  ;;  %v7384_v32 = vld [vmem:[%s8308_s19 + $0x3c4] ss:$28 sps:$4 sm:$0xff]   ;;  %v7385_v43 = vld [vmem:[%s8308_s19 + $0x3f0] ss:$28 sps:$4 sm:$0xff]  }
 0x417   : > { %v7382_v39 = vld [vmem:[%s8308_s19 + $0x3c0] ss:$28 sps:$4 sm:$0xff]  }
 0x418   : > { %3800 = vmatpush1.bf16.msra.mxu1 %v7291_v61  ;;  %6609 = vmatpush3.bf16.msra.mxu0 %v7295_v59  ;;  %v3912_v48 = vpack.c.bf16 %v2618_v44, %v2618_v44  ;;  %v7340_v61 = vld [vmem:[%s8306_s16 + $0x150] ss:$8 sps:$4 sm:$0xff]   ;;  %v7345_v59 = vld [vmem:[%s8306_s16 + $0x164] ss:$8 sps:$4 sm:$0xff]  }
 0x419   : > { %3801 = vmatprep.subr.bf16.mxu1 %v7298_v28  ;;  %6610 = vmatprep.subr.bf16.mxu0 %v7299_v1  ;;  %v7348_v28 = vld [vmem:[%s8306_s16 + $0x174] ss:$8 sps:$4 sm:$0xff]   ;;  %v7346_v1 = vld [vmem:[%s8306_s16 + $0x170] ss:$8 sps:$4 sm:$0xff]  }
 0x41a   : > { %v7396_v44 = vld [vmem:[%s8308_s19 + $0x434] ss:$28 sps:$4 sm:$0xff]  }
 0x41c   : > { %3802 = vmatpush1.bf16.msra.mxu1 %v7296_v2  ;;  %6611 = vmatpush3.bf16.msra.mxu0 %v7300_v3  ;;  %v7351_v2 = vld [vmem:[%s8306_s16 + $0x184] ss:$8 sps:$4 sm:$0xff]   ;;  %v7349_v3 = vld [vmem:[%s8306_s16 + $0x180] ss:$8 sps:$4 sm:$0xff]  }
 0x41d   : > { %3803 = vmatprep.subr.bf16.mxu1 %v7303_v8  ;;  %v7352_v8 = vld [vmem:[%s8306_s16 + $0x190] ss:$8 sps:$4 sm:$0xff]   ;;  %5001 = vmatprep.subr.bf16.mxu0 %v7375_v29 }
 0x41f   : > { %3861 = vmatmul.mubr.bf16.vlgmr.msra.gmra.mrb[12].mxu0 %v8885_v12 }
 0x420   : > { %3804 = vmatpush1.bf16.msra.mxu1 %v7301_v9  ;;  %v7357_v9 = vld [vmem:[%s8306_s16 + $0x1a4] ss:$8 sps:$4 sm:$0xff]   ;;  %5002 = vmatpush1.bf16.msra.mxu0 %v7373_v27  ;;  %v7406_v27 = vld [vmem:[%s8308_s19 + $0x4a0] ss:$28 sps:$4 sm:$0xff]  }
 0x421   : > { %3805 = vmatprep.subr.bf16.mxu1 %v7306_v11  ;;  %v7360_v11 = vld [vmem:[%s8306_s16 + $0x1b4] ss:$8 sps:$4 sm:$0xff]  }
 0x424   : > { %3806 = vmatpush1.bf16.msra.mxu1 %v7304_v13  ;;  %v7358_v13 = vld [vmem:[%s8306_s16 + $0x1b0] ss:$8 sps:$4 sm:$0xff]  }
 0x425   : > { %3807 = vmatprep.subr.bf16.mxu1 %v7309_v14  ;;  %v7363_v14 = vld [vmem:[%s8306_s16 + $0x1c4] ss:$8 sps:$4 sm:$0xff]  }
 0x428   : > { %3808 = vmatpush1.bf16.msra.mxu1 %v7307_v15  ;;  %v7361_v15 = vld [vmem:[%s8306_s16 + $0x1c0] ss:$8 sps:$4 sm:$0xff]  }
 0x429   : > { %3809 = vmatprep.subr.bf16.mxu1 %v7312_v16  ;;  %v7366_v16 = vld [vmem:[%s8306_s16 + $0x1d4] ss:$8 sps:$4 sm:$0xff]  }
 0x42c   : > { %3810 = vmatpush1.bf16.msra.mxu1 %v7310_v17  ;;  %v7364_v17 = vld [vmem:[%s8306_s16 + $0x1d0] ss:$8 sps:$4 sm:$0xff]  }
 0x42d   : > { %3811 = vmatprep.subr.bf16.mxu1 %v7315_v19  ;;  %v7369_v19 = vld [vmem:[%s8306_s16 + $0x1e4] ss:$8 sps:$4 sm:$0xff]  }
 0x430   : > { %3812 = vmatpush1.bf16.msra.mxu1 %v7313_v25  ;;  %v2617_v25 = vmax.f32 %v8790_v62, 0.0  ;;  %v7379_v62 = vld [vmem:[%s8308_s19 + $0x3b8] ss:$28 sps:$4 sm:$0xff]  }
 0x431   : > { %3813 = vmatprep.subr.bf16.mxu1 %v7318_v4 }
 0x432   : > { %v3911_v4 = vpack.c.bf16 %v2617_v25, %v2617_v25 }
 0x434   : > { %3814 = vmatpush1.bf16.msra.mxu1 %v7316_v31  ;;  %v7378_v31 = vld [vmem:[%s8308_s19 + $0x38c] ss:$28 sps:$4 sm:$0xff]  }
 0x435   : > { %3815 = vmatprep.subr.bf16.mxu1 %v7321_v35  ;;  %v7381_v35 = vld [vmem:[%s8308_s19 + $0x3bc] ss:$28 sps:$4 sm:$0xff]  }
 0x436   : > { %5003 = vmatprep.subr.bf16.mxu0 %v7381_v35  ;;  %v7414_v35 = vld [vmem:[%s8308_s19 + $0x4dc] ss:$28 sps:$4 sm:$0xff]  }
 0x437   : > { %5004 = vmatpush1.bf16.msra.mxu0 %v7379_v62 }
 0x438   : > { %3816 = vmatpush1.bf16.msra.mxu1 %v7319_v41  ;;  %v7387_v41 = vld [vmem:[%s8308_s19 + $0x3f4] ss:$28 sps:$4 sm:$0xff]  }
 0x439   : > { %3817 = vmatprep.subr.bf16.mxu1 %v7324_v42  ;;  %v7390_v42 = vld [vmem:[%s8308_s19 + $0x3fc] ss:$28 sps:$4 sm:$0xff]   ;;  %5005 = vmatprep.subr.bf16.mxu0 %v7387_v41 }
 0x43a   : > { %v7412_v41 = vld [vmem:[%s8308_s19 + $0x4d8] ss:$28 sps:$4 sm:$0xff]  }
 0x43b   : > { %5006 = vmatpush1.bf16.msra.mxu0 %v7385_v43  ;;  %v7417_v43 = vld [vmem:[%s8308_s19 + $0x50c] ss:$28 sps:$4 sm:$0xff]  }
 0x43c   : > { %3818 = vmatpush1.bf16.msra.mxu1 %v7322_v51  ;;  %v7388_v51 = vld [vmem:[%s8308_s19 + $0x3f8] ss:$28 sps:$4 sm:$0xff]  }
 0x43d   : > { %4127 = vmatprep.subr.bf16.mxu1 %v7327_v38  ;;  %v7393_v38 = vld [vmem:[%s8308_s19 + $0x42c] ss:$28 sps:$4 sm:$0xff]  }
 0x43e   : > { %5007 = vmatprep.subr.bf16.mxu0 %v7393_v38  ;;  %v7415_v38 = vld [vmem:[%s8308_s19 + $0x508] ss:$28 sps:$4 sm:$0xff]  }
 0x43f   : > { %3820 = vmatmul.mubr.bf16.vlgmr.msra.gmra.mrb[8].mxu1 %v8885_v12  ;;  %v7337_v12 = vld [vmem:[%s8306_s16 + $0x140] ss:$8 sps:$4 sm:$0xff]  }
 0x440   : > { %4128 = vmatpush1.bf16.msra.mxu1 %v7325_v58  ;;  %4159 = vmatprep.mubr.bf16.mxu1 %v3912_v48  ;;  %v7391_v58 = vld [vmem:[%s8308_s19 + $0x428] ss:$28 sps:$4 sm:$0xff]  }
 0x441   : > { %4129 = vmatprep.subr.bf16.mxu1 %v7330_v57  ;;  %v7394_v57 = vld [vmem:[%s8308_s19 + $0x430] ss:$28 sps:$4 sm:$0xff]   ;;  %5008 = vmatpush1.bf16.msra.mxu0 %v7391_v58  ;;  %v7423_v58 = vld [vmem:[%s8308_s19 + $0x544] ss:$28 sps:$4 sm:$0xff]  }
 0x442   : > { %v8992_v48 = vld [vmem:[%s8310_s2] sm:$0xff] }
 0x444   : > { %4130 = vmatpush1.bf16.msra.mxu1 %v7328_v49  ;;  %v7564_v49 = vld [vmem:[%s8288_s17] sm:$0xff] }
 0x445   : > { %4131 = vmatprep.subr.bf16.mxu1 %v7333_v37  ;;  %v8995_v37 = vsub.f32 1.0, %v7564_v49  ;;  %v7421_v49 = vld [vmem:[%s8308_s19 + $0x540] ss:$28 sps:$4 sm:$0xff]  }
 0x447   : > { %v9031_v25 = vrot.slane %v8995_v37, %v8483_v40 }
 0x448   : > { %4132 = vmatpush1.bf16.msra.mxu1 %v7331_v56  ;;  %v3097_v56 = vrot.slane %v8992_v48, %v8443_v7 }
 0x449   : > { %4133 = vmatprep.subr.bf16.mxu1 %v7336_v20  ;;  %v3105_v20 = vrot.slane %v8992_v48, %v8532_v24 }
 0x44c   : > { %4134 = vmatpush1.bf16.msra.mxu1 %v7334_v26  ;;  %v3101_v26 = vrot.slane %v8992_v48, %v8418_v55 }
 0x44d   : > { %4135 = vmatprep.subr.bf16.mxu1 %v7339_v60  ;;  %v9005_v60 = vrot.slane %v8995_v37, %v8443_v7 }
 0x450   : > { %4136 = vmatpush1.bf16.msra.mxu1 %v7337_v12  ;;  %v7399_v12 = vld [vmem:[%s8308_s19 + $0x464] ss:$28 sps:$4 sm:$0xff]  }
 0x451   : > { %4137 = vmatprep.subr.bf16.mxu1 %v7342_v54  ;;  %v7402_v54 = vld [vmem:[%s8308_s19 + $0x46c] ss:$28 sps:$4 sm:$0xff]   ;;  %5009 = vmatprep.subr.bf16.mxu0 %v7399_v12  ;;  %v7427_v12 = vld [vmem:[%s8308_s19 + $0x578] ss:$28 sps:$4 sm:$0xff]  }
 0x454   : > { %4138 = vmatpush1.bf16.msra.mxu1 %v7340_v61 }
 0x455   : > { %4139 = vmatprep.subr.bf16.mxu1 %v7345_v59 }
 0x458   : > { %4140 = vmatpush1.bf16.msra.mxu1 %v7343_v63  ;;  %v9011_v63 = vrot.slane %v8995_v37, %v8418_v55 }
 0x459   : > { %4141 = vmatprep.subr.bf16.mxu1 %v7348_v28  ;;  %v3109_v28 = vrot.slane %v8992_v48, %v8483_v40 }
 0x45c   : > { %4142 = vmatpush1.bf16.msra.mxu1 %v7346_v1  ;;  %v7397_v1 = vld [vmem:[%s8308_s19 + $0x460] ss:$28 sps:$4 sm:$0xff]  }
 0x45d   : > { %4143 = vmatprep.subr.bf16.mxu1 %v7351_v2  ;;  %v7400_v2 = vld [vmem:[%s8308_s19 + $0x468] ss:$28 sps:$4 sm:$0xff]   ;;  %5010 = vmatpush1.bf16.msra.mxu0 %v7397_v1  ;;  %v7436_v1 = vld [vmem:[%s8308_s19 + $0x5b8] ss:$28 sps:$4 sm:$0xff]  }
 0x460   : > { %4144 = vmatpush1.bf16.msra.mxu1 %v7349_v3 }
 0x461   : > { %4145 = vmatprep.subr.bf16.mxu1 %v7354_v6 }
 0x464   : > { %4146 = vmatpush1.bf16.msra.mxu1 %v7352_v8 }
 0x465   : > { %4147 = vmatprep.subr.bf16.mxu1 %v7357_v9 }
 0x468   : > { %4148 = vmatpush1.bf16.msra.mxu1 %v7355_v10  ;;  %v9019_v10 = vrot.slane %v8995_v37, %v8532_v24 }
 0x469   : > { %4149 = vmatprep.subr.bf16.mxu1 %v7360_v11 }
 0x46c   : > { %4150 = vmatpush1.bf16.msra.mxu1 %v7358_v13 }
 0x46d   : > { %4151 = vmatprep.subr.bf16.mxu1 %v7363_v14 }
 0x470   : > { %4152 = vmatpush1.bf16.msra.mxu1 %v7361_v15 }
 0x471   : > { %4153 = vmatprep.subr.bf16.mxu1 %v7366_v16 }
 0x474   : > { %4154 = vmatpush1.bf16.msra.mxu1 %v7364_v17 }
 0x475   : > { %4155 = vmatprep.subr.bf16.mxu1 %v7369_v19  ;;  %v7405_v19 = vld [vmem:[%s8308_s19 + $0x49c] ss:$28 sps:$4 sm:$0xff]  }
 0x476   : > { %5011 = vmatprep.subr.bf16.mxu0 %v7405_v19 }
 0x478   : > { %4156 = vmatpush1.bf16.msra.mxu1 %v7367_v21  ;;  %v7408_v21 = vld [vmem:[%s8308_s19 + $0x4a4] ss:$28 sps:$4 sm:$0xff]  }
 0x479   : > { %4157 = vmatprep.subr.bf16.mxu1 %v7372_v22 }
 0x47c   : > { %4158 = vmatpush1.bf16.msra.mxu1 %v7370_v23 }
 0x47d   : > { %5042 = vmatprep.subr.bf16.mxu1 %v7378_v31  ;;  %v7411_v31 = vld [vmem:[%s8308_s19 + $0x4d4] ss:$28 sps:$4 sm:$0xff]  }
 0x47f   : > { %4160 = vmatmul.mubr.bf16.vlgmr.msra.gmra.mrb[12].mxu1 %v3911_v4  ;;  %v7403_v4 = vld [vmem:[%s8308_s19 + $0x498] ss:$28 sps:$4 sm:$0xff]  }
 0x480   : > { %5043 = vmatpush1.bf16.msra.mxu1 %v7376_v30  ;;  %5012 = vmatpush1.bf16.msra.mxu0 %v7403_v4  ;;  %v7453_v4 = vld [vmem:[%s8308_s19 + $0x65c] ss:$28 sps:$4 sm:$0xff]  }
 0x481   : > { %5044 = vmatprep.subr.bf16.mxu1 %v7384_v32  ;;  %5013 = vmatprep.subr.bf16.mxu0 %v7411_v31  ;;  %v7454_v31 = vld [vmem:[%s8308_s19 + $0x660] ss:$28 sps:$4 sm:$0xff]  }
 0x484   : > { %5045 = vmatpush1.bf16.msra.mxu1 %v7382_v39  ;;  %v7409_v39 = vld [vmem:[%s8308_s19 + $0x4d0] ss:$28 sps:$4 sm:$0xff]  }
 0x485   : > { %5046 = vmatprep.subr.bf16.mxu1 %v7390_v42  ;;  %5014 = vmatpush1.bf16.msra.mxu0 %v7409_v39  ;;  %v7457_v39 = vld [vmem:[%s8308_s19 + $0x690] ss:$28 sps:$4 sm:$0xff]  }
 0x486   : > { %5015 = vmatprep.subr.bf16.mxu0 %v7417_v43  ;;  %v7465_v43 = vld [vmem:[%s8308_s19 + $0x6cc] ss:$28 sps:$4 sm:$0xff]  }
 0x488   : > { %5047 = vmatpush1.bf16.msra.mxu1 %v7388_v51  ;;  %v7420_v51 = vld [vmem:[%s8308_s19 + $0x514] ss:$28 sps:$4 sm:$0xff]  }
 0x489   : > { %5048 = vmatprep.subr.bf16.mxu1 %v7396_v44  ;;  %v7418_v44 = vld [vmem:[%s8308_s19 + $0x510] ss:$28 sps:$4 sm:$0xff]   ;;  %5016 = vmatpush1.bf16.msra.mxu0 %v7415_v38 }
 0x48a   : > { %5017 = vmatprep.subr.bf16.mxu0 %v7423_v58  ;;  %v7466_v38 = vld [vmem:[%s8308_s19 + $0x6d0] ss:$28 sps:$4 sm:$0xff]  }
 0x48b   : > { %v7471_v58 = vld [vmem:[%s8308_s19 + $0x394] ss:$28 sps:$4 sm:$0xff]  }
 0x48c   : > { %5049 = vmatpush1.bf16.msra.mxu1 %v7394_v57  ;;  %v7426_v57 = vld [vmem:[%s8308_s19 + $0x54c] ss:$28 sps:$4 sm:$0xff]  }
 0x48d   : > { %5050 = vmatprep.subr.bf16.mxu1 %v7402_v54  ;;  %5018 = vmatpush1.bf16.msra.mxu0 %v7421_v49  ;;  %v7430_v54 = vld [vmem:[%s8308_s19 + $0x580] ss:$28 sps:$4 sm:$0xff]   ;;  %v3113_v49 = vrot.slane %v8992_v48, %v8627_v53 }
 0x490   : > { %5051 = vmatpush1.bf16.msra.mxu1 %v7400_v2  ;;  %v7441_v2 = vld [vmem:[%s8308_s19 + $0x5ec] ss:$28 sps:$4 sm:$0xff]  }
 0x491   : > { %5052 = vmatprep.subr.bf16.mxu1 %v7408_v21 }
 0x494   : > { %5053 = vmatpush1.bf16.msra.mxu1 %v7406_v27  ;;  %v7456_v27 = vld [vmem:[%s8308_s19 + $0x664] ss:$28 sps:$4 sm:$0xff]  }
 0x495   : > { %5054 = vmatprep.subr.bf16.mxu1 %v7414_v35  ;;  %v7459_v35 = vld [vmem:[%s8308_s19 + $0x694] ss:$28 sps:$4 sm:$0xff]  }
 0x498   : > { %5055 = vmatpush1.bf16.msra.mxu1 %v7412_v41  ;;  %v7460_v41 = vld [vmem:[%s8308_s19 + $0x698] ss:$28 sps:$4 sm:$0xff]  }
 0x499   : > { %5056 = vmatprep.subr.bf16.mxu1 %v7420_v51  ;;  %v7463_v51 = vld [vmem:[%s8308_s19 + $0x6c8] ss:$28 sps:$4 sm:$0xff]  }
 0x49c   : > { %5057 = vmatpush1.bf16.msra.mxu1 %v7418_v44  ;;  %v7468_v44 = vld [vmem:[%s8308_s19 + $0x6d4] ss:$28 sps:$4 sm:$0xff]  }
 0x49d   : > { %5058 = vmatprep.subr.bf16.mxu1 %v7426_v57  ;;  %v7472_v57 = vld [vmem:[%s8308_s19 + $0x558] ss:$28 sps:$4 sm:$0xff]  }
 0x4d2   : > { %v3739_v61 = vpop.f32.mrb[4].mxu1  ;;  %v3780_v59 = vpop.f32.mrb[8].mxu0 }
 0x4d3   : > { %v3740_v3 = vadd.f32 %v3739_v61, %v3097_v56  ;;  %v3741_v6 = vpop.f32.mrb[5].mxu1  ;;  %v3782_v8 = vpop.f32.mrb[9].mxu0  ;;  %v3781_v9 = vadd.f32 %v3780_v59, %v3105_v20  ;;  %v7424_v56 = vld [vmem:[%s8308_s19 + $0x548] ss:$28 sps:$4 sm:$0xff]   ;;  %v7429_v20 = vld [vmem:[%s8308_s19 + $0x57c] ss:$28 sps:$4 sm:$0xff]  }
 0x4d4   : > { %v3742_v11 = vadd.f32 %v3741_v6, %v3101_v26  ;;  %v3743_v13 = vpop.f32.mrb[6].mxu1  ;;  %v3784_v14 = vpop.f32.mrb[10].mxu0  ;;  %v3783_v23 = vadd.f32 %v3782_v8, %v3109_v28  ;;  %5059 = vmatpush1.bf16.msra.mxu1 %v7424_v56  ;;  %v7432_v26 = vld [vmem:[%s8308_s19 + $0x584] ss:$28 sps:$4 sm:$0xff]   ;;  %5019 = vmatprep.subr.bf16.mxu0 %v7429_v20  ;;  %v7435_v61 = vld [vmem:[%s8308_s19 + $0x5b4] ss:$28 sps:$4 sm:$0xff]   ;;  %v3117_v56 = vrot.slane %v8992_v48, %v8547_v34 }
 0x4d5   : > { %v9022_v15 = vmul.f32 %v9005_v60, %v3740_v3  ;;  %v3744_v16 = vpop.f32.mrb[7].mxu1  ;;  %v3785_v17 = vpop.f32.mrb[11].mxu0  ;;  %v9036_v29 = vmul.f32 %v9019_v10, %v3781_v9  ;;  %5060 = vmatprep.subr.bf16.mxu1 %v7432_v26  ;;  %5020 = vmatpush1.bf16.msra.mxu0 %v7427_v12  ;;  %v7438_v59 = vld [vmem:[%s8308_s19 + $0x5bc] ss:$28 sps:$4 sm:$0xff]   ;;  %v7433_v28 = vld [vmem:[%s8308_s19 + $0x5b0] ss:$28 sps:$4 sm:$0xff]   ;;  %v3121_v20 = vrot.slane %v8992_v48, %v8676_v33 }
 0x4d6   : > { %v9027_v22 = vmul.f32 %v9011_v63, %v3742_v11  ;;  %v9043_v32 = vmul.f32 %v9031_v25, %v3783_v23  ;;  %5021 = vmatprep.subr.bf16.mxu0 %v7435_v61  ;;  %v7444_v3 = vld [vmem:[%s8308_s19 + $0x5f4] ss:$28 sps:$4 sm:$0xff]   ;;  %v7439_v6 = vld [vmem:[%s8308_s19 + $0x5e8] ss:$28 sps:$4 sm:$0xff]   ;;  %v7445_v14 = vld [vmem:[%s8308_s19 + $0x620] ss:$28 sps:$4 sm:$0xff]   ;;  %v9097_v26 = vrot.slane %v8995_v37, %v8627_v53  ;;  %v9108_v48 = vrot.slane %v8995_v37, %v8676_v33 }
 0x4d7   : > { %v7442_v8 = vld [vmem:[%s8308_s19 + $0x5f0] ss:$28 sps:$4 sm:$0xff]   ;;  %v7447_v9 = vld [vmem:[%s8308_s19 + $0x624] ss:$28 sps:$4 sm:$0xff]  }
 0x4d8   : > { %v5221_v30 = vadd.f32 %v9027_v22, %v9022_v15  ;;  %5061 = vmatpush1.bf16.msra.mxu1 %v7430_v54  ;;  %v7450_v11 = vld [vmem:[%s8308_s19 + $0x62c] ss:$28 sps:$4 sm:$0xff]   ;;  %v9101_v54 = vrot.slane %v8995_v37, %v8547_v34 }
 0x4d9   : > { %5062 = vmatprep.subr.bf16.mxu1 %v7438_v59  ;;  %5022 = vmatpush1.bf16.msra.mxu0 %v7433_v28  ;;  %v7448_v16 = vld [vmem:[%s8308_s19 + $0x628] ss:$28 sps:$4 sm:$0xff]  }
 0x4da   : > { %v5222_v62 = vadd.f32 %v5221_v30, %v9036_v29  ;;  %5023 = vmatprep.subr.bf16.mxu0 %v7441_v2  ;;  %v7451_v30 = vld [vmem:[%s8308_s19 + $0x658] ss:$28 sps:$4 sm:$0xff]  }
 0x4dc   : > { %v9049_v42 = vadd.f32 %v5222_v62, %v9043_v32  ;;  %5063 = vmatpush1.bf16.msra.mxu1 %v7436_v1  ;;  %v7462_v62 = vld [vmem:[%s8308_s19 + $0x69c] ss:$28 sps:$4 sm:$0xff]  }
 0x4dd   : > { %5064 = vmatprep.subr.bf16.mxu1 %v7444_v3  ;;  %5024 = vmatpush1.bf16.msra.mxu0 %v7439_v6 }
 0x4de   : > { %5025 = vmatprep.subr.bf16.mxu0 %v7447_v9 }
 0x4e0   : > { %5065 = vmatpush1.bf16.msra.mxu1 %v7442_v8 }
 0x4e1   : > { %5066 = vmatprep.subr.bf16.mxu1 %v7450_v11  ;;  %5026 = vmatpush1.bf16.msra.mxu0 %v7445_v14 }
 0x4e2   : > { %5027 = vmatprep.subr.bf16.mxu0 %v7453_v4 }
 0x4e4   : > { %5067 = vmatpush1.bf16.msra.mxu1 %v7448_v16  ;;  %v9121_v16 = vld [vmem:[%s8321_s29 + $0x8] sm:$0x77] }
 0x4e5   : > { %5068 = vmatprep.subr.bf16.mxu1 %v7456_v27  ;;  %5028 = vmatpush1.bf16.msra.mxu0 %v7451_v30  ;;  %v3952_v37 = vrot.slane %v9121_v16, %v8443_v7 }
 0x4e6   : > { %5029 = vmatprep.subr.bf16.mxu0 %v7459_v35 }
 0x4e8   : > { %5069 = vmatpush1.bf16.msra.mxu1 %v7454_v31 }
 0x4e9   : > { %5070 = vmatprep.subr.bf16.mxu1 %v7462_v62  ;;  %5030 = vmatpush1.bf16.msra.mxu0 %v7457_v39 }
 0x4ea   : > { %5031 = vmatprep.subr.bf16.mxu0 %v7465_v43 }
 0x4ec   : > { %5071 = vmatpush1.bf16.msra.mxu1 %v7460_v41 }
 0x4ed   : > { %5072 = vmatprep.subr.bf16.mxu1 %v7468_v44  ;;  %5032 = vmatpush1.bf16.msra.mxu0 %v7463_v51 }
 0x4ee   : > { %5083 = vmatprep.subr.bf16.mxu0 %v7471_v58 }
 0x4f0   : > { %5073 = vmatpush1.bf16.msra.mxu1 %v7466_v38 }
 0x4f1   : > { %6618 = vmatprep.subr.bf16.mxu1 %v7472_v57 }
 0x4f2   : > { %v6612_v13 = vpop.f32.mrb[12].mxu0 }
 0x4f3   : > { %v6613_v17 = vpop.f32.mrb[13].mxu0 }
 0x4f4   : > { %v6614_v19 = vadd.f32 %v6613_v17, %v6612_v13  ;;  %v6615_v21 = vpop.f32.mrb[14].mxu0  ;;  %v3956_v17 = vrot.slane %v9121_v16, %v8627_v53 }
 0x4f5   : > { %v6616_v23 = vpop.f32.mrb[15].mxu0 }
 0x4f6   : > { %v3863_v2 = vadd.f32 %v6614_v19, %v3121_v20  ;;  %v3962_v19 = vrot.slane %v3952_v37, %v8443_v7 }
 0x4f8   : > { %v9116_v11 = vmul.f32 %v9108_v48, %v3863_v2 }
 0x512   : > { %v3821_v12 = vpop.f32.mrb[8].mxu1 }
 0x513   : > { %v3822_v61 = vadd.f32 %v3821_v12, %v3113_v49  ;;  %v3823_v59 = vpop.f32.mrb[9].mxu1 }
 0x514   : > { %v3824_v28 = vadd.f32 %v3823_v59, %v3117_v56  ;;  %v3825_v1 = vpop.f32.mrb[10].mxu1 }
 0x515   : > { %v9104_v3 = vmul.f32 %v9097_v26, %v3822_v61  ;;  %v3826_v6 = vpop.f32.mrb[11].mxu1 }
 0x516   : > { %v9111_v8 = vmul.f32 %v9101_v54, %v3824_v28 }
 0x517   : > { %v5224_v9 = vadd.f32 %v9049_v42, %v9104_v3  ;;  %v3966_v42 = vrot.slane %v3956_v17, %v8443_v7 }
 0x519   : > { %v5225_v13 = vadd.f32 %v5224_v9, %v9111_v8 }
 0x51b   : > { %v5226_v14 = vadd.f32 %v5225_v13, %v9116_v11 }
 0x51d   : > { %5227 = vadd.xlane.f32.xlu0 %v5226_v14 }
 0x552   : > { %v4161_v21 = vpop.f32.mrb[12].mxu1 }
 0x553   : > { %v4162_v23 = vadd.f32 %v4161_v21, %v3962_v19  ;;  %v4163_v4 = vpop.f32.mrb[13].mxu1 }
 0x554   : > { %v4164_v27 = vadd.f32 %v4163_v4, %v3966_v42  ;;  %v4165_v30 = vpop.f32.mrb[14].mxu1 }
 0x555   : > { %v4168_v31 = vsel %vm2442_vm1, %v4162_v23, 0.0  ;;  %v4166_v35 = vpop.f32.mrb[15].mxu1 }
 0x556   : > { %v4170_v62 = vrot.slane %v4168_v31, 4  ;;  %v4184_v39 = vmul.f32 %v4168_v31, %v4168_v31  ;;  %v4169_v41 = vsel %vm2442_vm1, %v4164_v27, 0.0 }
 0x557   : > { %v4176_v43 = vrot.slane %v4169_v41, 4  ;;  %v4185_v51 = vmul.f32 %v4169_v41, %v4169_v41 }
 0x558   : > { %v4171_v38 = vadd.f32 %v4170_v62, %v4168_v31  ;;  %v4186_v44 = vrot.slane %v4184_v39, 4 }
 0x559   : > { %v4177_v58 = vadd.f32 %v4176_v43, %v4169_v41  ;;  %v4192_v57 = vrot.slane %v4185_v51, 4 }
 0x55a   : > { %v4172_v49 = vrot.slane %v4171_v38, 2  ;;  %v4187_v56 = vadd.f32 %v4186_v44, %v4184_v39 }
 0x55b   : > { %v4178_v20 = vrot.slane %v4177_v58, 2  ;;  %v4193_v12 = vadd.f32 %v4192_v57, %v4185_v51  ;;  %v4217_v57 = vrot.slane %v9121_v16, %v8418_v55 }
 0x55c   : > { %v4173_v61 = vadd.f32 %v4172_v49, %v4171_v38  ;;  %v4188_v59 = vrot.slane %v4187_v56, 2  ;;  %v4221_v49 = vrot.slane %v9121_v16, %v8547_v34 }
 0x55d   : > { %v4179_v28 = vadd.f32 %v4178_v20, %v4177_v58  ;;  %v4194_v1 = vrot.slane %v4193_v12, 2  ;;  %v4241_v20 = vrot.slane %v9121_v16, %v8676_v33 }
 0x55e   : > { %v4174_v2 = vrot.slane %v4173_v61, 1  ;;  %v4189_v6 = vadd.f32 %v4188_v59, %v4187_v56  ;;  %v4237_v56 = vrot.slane %v9121_v16, %v8532_v24 }
 0x55f   : > { %v4180_v9 = vrot.slane %v4179_v28, 1  ;;  %v4195_v13 = vadd.f32 %v4194_v1, %v4193_v12  ;;  %v4231_v1 = vrot.slane %v4221_v49, %v8418_v55  ;;  %v7488_v49 = vld [vmem:[%s8308_s19 + $0x440] ss:$28 sps:$4 sm:$0xff]  }
 0x560   : > { %v4175_v14 = vadd.f32 %v4174_v2, %v4173_v61  ;;  %v4190_v37 = vrot.slane %v4189_v6, 1  ;;  %v4227_v61 = vrot.slane %v4217_v57, %v8418_v55  ;;  %v7484_v57 = vld [vmem:[%s8308_s19 + $0x438] ss:$28 sps:$4 sm:$0xff]  }
 0x561   : > { %v4181_v17 = vadd.f32 %v4180_v9, %v4179_v28  ;;  %v4196_v19 = vrot.slane %v4195_v13, 1  ;;  %v4247_v9 = vrot.slane %v4237_v56, %v8532_v24  ;;  %v7491_v56 = vld [vmem:[%s8308_s19 + $0x474] ss:$28 sps:$4 sm:$0xff]  }
 0x562   : > { %v4182_v42 = vmul.f32 0.5, %v4175_v14  ;;  %v4191_v21 = vadd.f32 %v4190_v37, %v4189_v6  ;;  %v4251_v14 = vrot.slane %v4241_v20, %v8532_v24  ;;  %v7492_v20 = vld [vmem:[%s8308_s19 + $0x638] ss:$28 sps:$4 sm:$0xff]  }
 0x563   : > { %v4183_v4 = vmul.f32 0.5, %v4181_v17  ;;  %v4197_v30 = vadd.f32 %v4196_v19, %v4195_v13 }
 0x564   : > { %v4198_v31 = vmul.f32 0.5, %v4191_v21  ;;  %v4200_v35 = vmul.f32 %v4182_v42, %v4182_v42  ;;  %v4206_v12 = vsub.f32 %v4162_v23, %v4182_v42  ;;  %v7469_v21 = vld [vmem:[%s8308_s19 + $0x390] ss:$28 sps:$4 sm:$0xff]  }
 0x565   : > { %v4199_v62 = vmul.f32 0.5, %v4197_v30  ;;  %v4201_v39 = vmul.f32 %v4183_v4, %v4183_v4  ;;  %v4207_v28 = vsub.f32 %v4164_v27, %v4183_v4  ;;  %v7473_v4 = vld [vmem:[%s8308_s19 + $0x398] ss:$28 sps:$4 sm:$0xff]  }
 0x566   : > { %v4202_v41 = vsub.f32 %v4198_v31, %v4200_v35  ;;  %v7476_v31 = vld [vmem:[%s8308_s19 + $0x3cc] ss:$28 sps:$4 sm:$0xff]  }
 0x567   : > { %v4203_v43 = vsub.f32 %v4199_v62, %v4201_v39  ;;  %v7477_v35 = vld [vmem:[%s8308_s19 + $0x590] ss:$28 sps:$4 sm:$0xff]   ;;  %v7474_v62 = vld [vmem:[%s8308_s19 + $0x3c8] ss:$28 sps:$4 sm:$0xff]  }
 0x568   : > { %v4204_v51 = vmax.f32 %v4202_v41, 0.0  ;;  %v7478_v39 = vld [vmem:[%s8308_s19 + $0x3d0] ss:$28 sps:$4 sm:$0xff]   ;;  %v7481_v41 = vld [vmem:[%s8308_s19 + $0x404] ss:$28 sps:$4 sm:$0xff]  }
 0x569   : > { %v4205_v38 = vmax.f32 %v4203_v43, 0.0  ;;  %v7482_v43 = vld [vmem:[%s8308_s19 + $0x5c8] ss:$28 sps:$4 sm:$0xff]  }
 0x56a   : > { %v4208_v44 = vadd.f32 1e-05, %v4204_v51  ;;  %v7479_v51 = vld [vmem:[%s8308_s19 + $0x400] ss:$28 sps:$4 sm:$0xff]  }
 0x56b   : > { %v4209_v58 = vadd.f32 1e-05, %v4205_v38  ;;  %v7483_v38 = vld [vmem:[%s8308_s19 + $0x408] ss:$28 sps:$4 sm:$0xff]  }
 0x56c   : > { %7545 = vrsqrt.f32 %v4208_v44  ;;  %v7486_v44 = vld [vmem:[%s8308_s19 + $0x43c] ss:$28 sps:$4 sm:$0xff]  }
 0x56d   : > { %7547 = vrsqrt.f32 %v4209_v58  ;;  %v7487_v58 = vld [vmem:[%s8308_s19 + $0x600] ss:$28 sps:$4 sm:$0xff]  }
 0x576   : > { %v7546_v59 = vpop.eup %7545 }
 0x577   : > { %v7548_v2 = vpop.eup %7547  ;;  %v4212_v6 = vmul.f32 %v7546_v59, %v4206_v12  ;;  %v7489_v12 = vld [vmem:[%s8308_s19 + $0x470] ss:$28 sps:$4 sm:$0xff]  }
 0x578   : > { %v4213_v13 = vmul.f32 %v7548_v2, %v4207_v28  ;;  %v7496_v59 = vld [vmem:[%s8308_s19 + $0x4ac] ss:$28 sps:$4 sm:$0xff]  }
 0x579   : > { %v4232_v37 = vmul.f32 %v4227_v61, %v4212_v6  ;;  %v7493_v61 = vld [vmem:[%s8308_s19 + $0x478] ss:$28 sps:$4 sm:$0xff]   ;;  %v7497_v28 = vld [vmem:[%s8308_s19 + $0x670] ss:$28 sps:$4 sm:$0xff]   ;;  %v7501_v6 = vld [vmem:[%s8308_s19 + $0x4e4] ss:$28 sps:$4 sm:$0xff]  }
 0x57a   : > { %v4233_v16 = vmul.f32 %v4231_v1, %v4213_v13  ;;  %v7494_v1 = vld [vmem:[%s8308_s19 + $0x4a8] ss:$28 sps:$4 sm:$0xff]   ;;  %v7498_v2 = vld [vmem:[%s8308_s19 + $0x4b0] ss:$28 sps:$4 sm:$0xff]   ;;  %v7499_v13 = vld [vmem:[%s8308_s19 + $0x4e0] ss:$28 sps:$4 sm:$0xff]  }
 0x57b   : > { %v4252_v23 = vadd.f32 %v4247_v9, %v4232_v37  ;;  %v7502_v9 = vld [vmem:[%s8308_s19 + $0x6a8] ss:$28 sps:$4 sm:$0xff]   ;;  %v7506_v37 = vld [vmem:[%s8308_s19 + $0x51c] ss:$28 sps:$4 sm:$0xff]  }
 0x57c   : > { %v4253_v17 = vadd.f32 %v4251_v14, %v4233_v16  ;;  %v7503_v14 = vld [vmem:[%s8308_s19 + $0x4e8] ss:$28 sps:$4 sm:$0xff]   ;;  %v7507_v16 = vld [vmem:[%s8308_s19 + $0x6e0] ss:$28 sps:$4 sm:$0xff]  }
 0x57d   : > { %v4254_v19 = vmax.f32 %v4252_v23, 0.0  ;;  %v7504_v23 = vld [vmem:[%s8308_s19 + $0x518] ss:$28 sps:$4 sm:$0xff]  }
 0x57e   : > { %v4255_v42 = vmax.f32 %v4253_v17, 0.0  ;;  %v7508_v17 = vld [vmem:[%s8308_s19 + $0x520] ss:$28 sps:$4 sm:$0xff]  }
 0x57f   : > { %v9147_v30 = vpack.c.bf16 %v4254_v19, %v4254_v19  ;;  %v7511_v19 = vld [vmem:[%s8308_s19 + $0x554] ss:$28 sps:$4 sm:$0xff]  }
 0x580   : > { %v4257_v27 = vpack.c.bf16 %v4255_v42, %v4255_v42  ;;  %v7509_v42 = vld [vmem:[%s8308_s19 + $0x550] ss:$28 sps:$4 sm:$0xff]  }
 0x582   : > { %5033 = vmatprep.mubr.bf16.mxu0 %v4257_v27  ;;  %5074 = vmatprep.mubr.bf16.mxu1 %v4257_v27 }
 0x583   : > { %5034 = vmatmul.mubr.bf16.vlgmr.msra.gmra.mrb[16].mxu0 %v9147_v30  ;;  %5075 = vmatmul.mubr.bf16.vlgmr.msra.gmra.mrb[16].mxu1 %v9147_v30 }
 0x584   : > { %5084 = vmatpush1.bf16.msra.mxu0 %v7469_v21  ;;  %6619 = vmatpush3.bf16.msra.mxu1 %v7473_v4  ;;  %v7512_v21 = vld [vmem:[%s8308_s19 + $0x588] ss:$28 sps:$4 sm:$0xff]  }
 0x585   : > { %5115 = vmatprep.mubr.bf16.mxu0 %v4257_v27  ;;  %5156 = vmatprep.mubr.bf16.mxu1 %v4257_v27  ;;  %v7514_v27 = vld [vmem:[%s8308_s19 + $0x58c] ss:$28 sps:$4 sm:$0xff]   ;;  %v7517_v4 = vld [vmem:[%s8308_s19 + $0x5c4] ss:$28 sps:$4 sm:$0xff]  }
 0x586   : > { %5085 = vmatprep.subr.bf16.mxu0 %v7476_v31  ;;  %6620 = vmatprep.subr.bf16.mxu1 %v7477_v35  ;;  %v7515_v31 = vld [vmem:[%s8308_s19 + $0x5c0] ss:$28 sps:$4 sm:$0xff]   ;;  %v5220_v35 = vld [vmem:[%s9516_s12] sm:$0xff] }
 0x588   : > { %5086 = vmatpush1.bf16.msra.mxu0 %v7474_v62  ;;  %6621 = vmatpush3.bf16.msra.mxu1 %v7478_v39  ;;  %v7520_v62 = vld [vmem:[%s8308_s19 + $0x5fc] ss:$28 sps:$4 sm:$0xff]  }
 0x589   : > { %5087 = vmatprep.subr.bf16.mxu0 %v7481_v41  ;;  %6622 = vmatprep.subr.bf16.mxu1 %v7482_v43  ;;  %v7518_v43 = vld [vmem:[%s8308_s19 + $0x5f8] ss:$28 sps:$4 sm:$0xff]  }
 0x58c   : > { %5088 = vmatpush1.bf16.msra.mxu0 %v7479_v51  ;;  %6623 = vmatpush3.bf16.msra.mxu1 %v7483_v38  ;;  %v7523_v51 = vld [vmem:[%s8308_s19 + $0x634] ss:$28 sps:$4 sm:$0xff]  }
 0x58d   : > { %5089 = vmatprep.subr.bf16.mxu0 %v7486_v44  ;;  %6624 = vmatprep.subr.bf16.mxu1 %v7487_v58  ;;  %v7521_v38 = vld [vmem:[%s8308_s19 + $0x630] ss:$28 sps:$4 sm:$0xff]   ;;  %v7524_v58 = vld [vmem:[%s8308_s19 + $0x668] ss:$28 sps:$4 sm:$0xff]  }
 0x58e   : > { %v7526_v44 = vld [vmem:[%s8308_s19 + $0x66c] ss:$28 sps:$4 sm:$0xff]  }
 0x590   : > { %5090 = vmatpush1.bf16.msra.mxu0 %v7484_v57  ;;  %6625 = vmatpush3.bf16.msra.mxu1 %v7488_v49  ;;  %v7529_v57 = vld [vmem:[%s8308_s19 + $0x6a4] ss:$28 sps:$4 sm:$0xff]  }
 0x591   : > { %5091 = vmatprep.subr.bf16.mxu0 %v7491_v56  ;;  %6626 = vmatprep.subr.bf16.mxu1 %v7492_v20  ;;  %v7527_v49 = vld [vmem:[%s8308_s19 + $0x6a0] ss:$28 sps:$4 sm:$0xff]   ;;  %v7530_v20 = vld [vmem:[%s8308_s19 + $0x6d8] ss:$28 sps:$4 sm:$0xff]  }
 0x592   : > { %v7532_v56 = vld [vmem:[%s8308_s19 + $0x6dc] ss:$28 sps:$4 sm:$0xff]  }
 0x594   : > { %5092 = vmatpush1.bf16.msra.mxu0 %v7489_v12  ;;  %6627 = vmatpush3.bf16.msra.mxu1 %v7493_v61  ;;  %v5171_v12 = vmul.f32 1.442695, %v9022_v15  ;;  %v5175_v61 = vmul.f32 1.442695, %v9036_v29 }
 0x595   : > { %5093 = vmatprep.subr.bf16.mxu0 %v7496_v59  ;;  %6628 = vmatprep.subr.bf16.mxu1 %v7497_v28  ;;  %v5173_v59 = vmul.f32 1.442695, %v9027_v22  ;;  %v5177_v28 = vmul.f32 1.442695, %v9043_v32 }
 0x596   : > { %7549 = vpow2.f32 %v5171_v12 }
 0x597   : > { %7551 = vpow2.f32 %v5175_v61 }
 0x598   : > { %5094 = vmatpush1.bf16.msra.mxu0 %v7494_v1  ;;  %6629 = vmatpush3.bf16.msra.mxu1 %v7498_v2  ;;  %7553 = vpow2.f32 %v5173_v59  ;;  %v9208_v1 = vld [vmem:[%s8310_s2 + $0x7] sm:$0xff] }
 0x599   : > { %5095 = vmatprep.subr.bf16.mxu0 %v7501_v6  ;;  %6630 = vmatprep.subr.bf16.mxu1 %v7502_v9  ;;  %7555 = vpow2.f32 %v5177_v28  ;;  %v4393_v2 = vrot.slane %v9208_v1, %v8443_v7  ;;  %v4397_v15 = vrot.slane %v9208_v1, %v8418_v55  ;;  %v4405_v22 = vrot.slane %v9208_v1, %v8483_v40 }
 0x59c   : > { %5096 = vmatpush1.bf16.msra.mxu0 %v7499_v13  ;;  %6631 = vmatpush3.bf16.msra.mxu1 %v7503_v14 }
 0x59d   : > { %5097 = vmatprep.subr.bf16.mxu0 %v7506_v37  ;;  %6632 = vmatprep.subr.bf16.mxu1 %v7507_v16 }
 0x5a0   : > { %5098 = vmatpush1.bf16.msra.mxu0 %v7504_v23  ;;  %6633 = vmatpush3.bf16.msra.mxu1 %v7508_v17  ;;  %v7550_v6 = vpop.eup %7549 }
 0x5a1   : > { %5099 = vmatprep.subr.bf16.mxu0 %v7511_v19  ;;  %v7552_v29 = vpop.eup %7551 }
 0x5a2   : > { %v7554_v32 = vpop.eup %7553 }
 0x5a3   : > { %5157 = vmatmul.mubr.bf16.vlgmr.msra.gmra.mrb[20].mxu1 %v9147_v30  ;;  %v7556_v14 = vpop.eup %7555 }
 0x5a4   : > { %5100 = vmatpush1.bf16.msra.mxu0 %v7509_v42 }
 0x5a5   : > { %5101 = vmatprep.subr.bf16.mxu0 %v7514_v27 }
 0x5a8   : > { %5102 = vmatpush1.bf16.msra.mxu0 %v7512_v21 }
 0x5a9   : > { %5103 = vmatprep.subr.bf16.mxu0 %v7517_v4 }
 0x5aa   : > { %v5228_v39 = vpop.xlane.xlu0 %5227 }
 0x5ab   : > { %v5229_v41 = vadd.f32 %v5228_v39, %v5220_v35  ;;  %v7566_v39 = vld [vmem:[%s9515_s11 + $0x10] sm:$0xff] }
 0x5ac   : > { %5104 = vmatpush1.bf16.msra.mxu0 %v7515_v31  ;;  %v7565_v31 = vld [vmem:[%s9515_s11] sm:$0xff] }
 0x5ad   : > { %5230 = vst [vmem:[%s9516_s12] sm:$0xff] %v5229_v41  ;;  %5105 = vmatprep.subr.bf16.mxu0 %v7520_v62  ;;  %v5185_v35 = vmul.f32 %v7565_v31, %v7550_v6  ;;  %v5187_v41 = vmul.f32 %v7566_v39, %v7552_v29 }
 0x5b0   : > { %5106 = vmatpush1.bf16.msra.mxu0 %v7518_v43 }
 0x5b1   : > { %5107 = vmatprep.subr.bf16.mxu0 %v7523_v51 }
 0x5b4   : > { %5108 = vmatpush1.bf16.msra.mxu0 %v7521_v38 }
 0x5b5   : > { %5109 = vmatprep.subr.bf16.mxu0 %v7526_v44  ;;  %v7567_v44 = vld [vmem:[%s9515_s11 + $0x8] sm:$0xff] }
 0x5b8   : > { %5110 = vmatpush1.bf16.msra.mxu0 %v7524_v58  ;;  %v5186_v58 = vmul.f32 %v7567_v44, %v7554_v32 }
 0x5b9   : > { %5111 = vmatprep.subr.bf16.mxu0 %v7529_v57 }
 0x5bc   : > { %5112 = vmatpush1.bf16.msra.mxu0 %v7527_v49  ;;  %v7568_v49 = vld [vmem:[%s9515_s11 + $0x18] sm:$0xff] }
 0x5bd   : > { %5113 = vmatprep.subr.bf16.mxu0 %v7532_v56  ;;  %v5188_v56 = vmul.f32 %v7568_v49, %v7556_v14  ;;  %v7569_v14 = vld [vmem:[%s9515_s11 + $0x30] sm:$0xff] }
 0x5c0   : > { %5114 = vmatpush1.bf16.msra.mxu0 %v7530_v20 }
 0x5c3   : > { %5116 = vmatmul.mubr.bf16.vlgmr.msra.gmra.mrb[20].mxu0 %v9147_v30  ;;  %v4401_v30 = vrot.slane %v9208_v1, %v8532_v24 }
 0x656   : > { %v5035_v9 = vpop.f32.mrb[16].mxu0  ;;  %v5076_v13 = vpop.f32.mrb[16].mxu1 }
 0x657   : > { %v5036_v37 = vadd.f32 %v5035_v9, %v4393_v2  ;;  %v5077_v16 = vadd.f32 %v5076_v13, %v4401_v30  ;;  %v5037_v23 = vpop.f32.mrb[17].mxu0  ;;  %v5078_v17 = vpop.f32.mrb[17].mxu1 }
 0x658   : > { %v5038_v19 = vadd.f32 %v5037_v23, %v4397_v15  ;;  %v5079_v42 = vadd.f32 %v5078_v17, %v4405_v22  ;;  %v5039_v27 = vpop.f32.mrb[18].mxu0  ;;  %v5080_v21 = vpop.f32.mrb[18].mxu1  ;;  %v5179_v17 = vmul.f32 1.442695, %v9104_v3  ;;  %v7570_v3 = vld [vmem:[%s9515_s11 + $0x20] sm:$0xff] }
 0x659   : > { %v5164_v4 = vmul.f32 %v5036_v37, %v9005_v60  ;;  %v5166_v62 = vmul.f32 %v5077_v16, %v9019_v10  ;;  %v5040_v43 = vpop.f32.mrb[19].mxu0  ;;  %v5081_v51 = vpop.f32.mrb[19].mxu1  ;;  %v4413_v27 = vrot.slane %v9208_v1, %v8547_v34 }
 0x65a   : > { %v5165_v38 = vmul.f32 %v5038_v19, %v9011_v63  ;;  %v5167_v57 = vmul.f32 %v5079_v42, %v9031_v25  ;;  %v5181_v19 = vmul.f32 1.442695, %v9111_v8  ;;  %v4409_v42 = vrot.slane %v9208_v1, %v8627_v53 }
 0x65b   : > { %v5192_v20 = vadd.f32 %v5185_v35, %v5164_v4  ;;  %v5194_v12 = vadd.f32 %v5187_v41, %v5166_v62 }
 0x65c   : > { %v5193_v61 = vadd.f32 %v5186_v58, %v5165_v38  ;;  %v5195_v59 = vadd.f32 %v5188_v56, %v5167_v57 }
 0x65d   : > { %v5199_v28 = vmul.f32 %v5192_v20, %v9005_v60  ;;  %v5201_v2 = vmul.f32 %v5194_v12, %v9019_v10 }
 0x65e   : > { %v5200_v30 = vmul.f32 %v5193_v61, %v9011_v63  ;;  %v5202_v6 = vmul.f32 %v5195_v59, %v9031_v25 }
 0x65f   : > { %v5206_v15 = vadd.f32 %v5199_v28, %v8458_v18  ;;  %v5208_v22 = vadd.f32 %v5201_v2, %v8550_v36 }
 0x660   : > { %v5207_v29 = vadd.f32 %v5200_v30, %v8433_v0  ;;  %v5209_v32 = vadd.f32 %v5202_v6, %v8498_v52  ;;  %v5183_v0 = vmul.f32 1.442695, %v9116_v11  ;;  %v4417_v52 = vrot.slane %v9208_v1, %v8676_v33  ;;  %v7571_v1 = vld [vmem:[%s9515_s11 + $0x28] sm:$0xff] }
 0x661   : > { %5213 = vst [vmem:[%s9515_s11] sm:$0xff] %v5206_v15  ;;  %5215 = vst [vmem:[%s9515_s11 + $0x10] sm:$0xff] %v5208_v22 }
 0x662   : > { %5214 = vst [vmem:[%s9515_s11 + $0x8] sm:$0xff] %v5207_v29  ;;  %5216 = vst [vmem:[%s9515_s11 + $0x18] sm:$0xff] %v5209_v32  ;;  %7557 = vpow2.f32 %v5183_v0 }
 0x663   : > { %7559 = vpow2.f32 %v5179_v17 }
 0x664   : > { %7561 = vpow2.f32 %v5181_v19 }
 0x66c   : > { %v7558_v10 = vpop.eup %7557 }
 0x66d   : > { %v5191_v37 = vmul.f32 %v7569_v14, %v7558_v10  ;;  %v7560_v21 = vpop.eup %7559 }
 0x66e   : > { %v7562_v4 = vpop.eup %7561  ;;  %v5189_v8 = vmul.f32 %v7570_v3, %v7560_v21 }
 0x66f   : > { %v5190_v51 = vmul.f32 %v7571_v1, %v7562_v4 }
 0x676   : > { %v6634_v18 = vpop.f32.mrb[20].mxu1 }
 0x677   : > { %v6635_v36 = vpop.f32.mrb[21].mxu1 }
 0x678   : > { %v6636_v60 = vadd.f32 %v6635_v36, %v6634_v18  ;;  %v6637_v63 = vpop.f32.mrb[22].mxu1 }
 0x679   : > { %v6638_v25 = vpop.f32.mrb[23].mxu1 }
 0x67a   : > { %v5159_v9 = vadd.f32 %v6636_v60, %v4417_v52 }
 0x67c   : > { %v5170_v13 = vmul.f32 %v5159_v9, %v9108_v48 }
 0x67e   : > { %v5198_v16 = vadd.f32 %v5191_v37, %v5170_v13 }
 0x680   : > { %v5205_v11 = vmul.f32 %v5198_v16, %v9108_v48 }
 0x682   : > { %v5212_v23 = vadd.f32 %v5205_v11, %v8689_v45 }
 0x684   : > { %5219 = vst [vmem:[%s9515_s11 + $0x30] sm:$0xff] %v5212_v23 }
 0x68b   : > { %v9333_v2 = vld [vmem:[%s9515_s11 + $0x30] sm:$0xff] (!%p6588_p6) }
 0x68c   : > { %v5255_v29 = vsel (!%p6588_p6), %vm2442_vm1, %v9333_v2, 0.0 }
 0x68d   : > { %v5292_v63 = vrot.slane (!%p6588_p6), %v5255_v29, 4 }
 0x68f   : > { %v5293_v11 = vadd.f32 (!%p6588_p6), %v5292_v63, %v5255_v29 }
 0x696   : > { %v5117_v48 = vpop.f32.mrb[20].mxu0 }
 0x697   : > { %v5118_v45 = vadd.f32 %v5117_v48, %v4409_v42  ;;  %v5119_v31 = vpop.f32.mrb[21].mxu0  ;;  %v5294_v48 = vrot.slane (!%p6588_p6), %v5293_v11, 2 }
 0x698   : > { %v5120_v35 = vadd.f32 %v5119_v31, %v4413_v27  ;;  %v5121_v62 = vpop.f32.mrb[22].mxu0 }
 0x699   : > { %v5168_v39 = vmul.f32 %v5118_v45, %v9097_v26  ;;  %v5122_v41 = vpop.f32.mrb[23].mxu0 }
 0x69a   : > { %v5169_v43 = vmul.f32 %v5120_v35, %v9101_v54 }
 0x69b   : > { %v5196_v38 = vadd.f32 %v5189_v8, %v5168_v39  ;;  %v5295_v8 = vadd.f32 (!%p6588_p6), %v5294_v48, %v5293_v11 }
 0x69c   : > { %v5197_v44 = vadd.f32 %v5190_v51, %v5169_v43  ;;  %5234 = sbr.rel (%p6588_p6) target bundleno = 1999 (0x7cf), region = 104 }
 0x69d   : > { %v5203_v58 = vmul.f32 %v5196_v38, %v9097_v26  ;;  %v9294_v26 = vld [vmem:[%s9515_s11] sm:$0xff] (!%p6588_p6) }
 0x69e   : > { %v5204_v57 = vmul.f32 %v5197_v44, %v9101_v54  ;;  %v9309_v54 = vld [vmem:[%s9515_s11 + $0x18] sm:$0xff] (!%p6588_p6)  ;;  %v5249_v61 = vsel (!%p6588_p6), %vm2442_vm1, %v9294_v26, 0.0 }
 0x69f   : > { %v5210_v49 = vadd.f32 %v5203_v58, %v8645_v5  ;;  %v9304_v5 = vld [vmem:[%s9515_s11 + $0x10] sm:$0xff] (!%p6588_p6)  ;;  %v5252_v30 = vsel (!%p6588_p6), %vm2442_vm1, %v9309_v54, 0.0  ;;  %v5256_v22 = vrot.slane (!%p6588_p6), %v5249_v61, 4  ;;  %v5305_v13 = vmul.f32 (!%p6588_p6), %v5249_v61, %v5249_v61 }
 0x6a0   : > { %v5211_v56 = vadd.f32 %v5204_v57, %v8566_v47  ;;  %v9299_v47 = vld [vmem:[%s9515_s11 + $0x8] sm:$0xff] (!%p6588_p6)  ;;  %v5251_v28 = vsel (!%p6588_p6), %vm2442_vm1, %v9304_v5, 0.0  ;;  %v5274_v18 = vrot.slane (!%p6588_p6), %v5252_v30, 4  ;;  %v5308_v51 = vmul.f32 (!%p6588_p6), %v5252_v30, %v5252_v30 }
 0x6a1   : > { %5217 = vst [vmem:[%s9515_s11 + $0x20] sm:$0xff] %v5210_v49  ;;  %v5250_v59 = vsel (!%p6588_p6), %vm2442_vm1, %v9299_v47, 0.0  ;;  %v5268_v0 = vrot.slane (!%p6588_p6), %v5251_v28, 4  ;;  %v5257_v52 = vadd.f32 (!%p6588_p6), %v5256_v22, %v5249_v61  ;;  %v5307_v35 = vmul.f32 (!%p6588_p6), %v5251_v28, %v5251_v28 }
 0x6a2   : > { %5218 = vst [vmem:[%s9515_s11 + $0x28] sm:$0xff] %v5211_v56  ;;  %v5262_v32 = vrot.slane (!%p6588_p6), %v5250_v59, 4  ;;  %v5275_v9 = vadd.f32 (!%p6588_p6), %v5274_v18, %v5252_v30  ;;  %v5306_v46 = vmul.f32 (!%p6588_p6), %v5250_v59, %v5250_v59  ;;  %v5296_v57 = vrot.slane (!%p6588_p6), %v5295_v8, 1 }
 0x6a3   : > { %v5269_v25 = vadd.f32 %v5268_v0, %v5251_v28  ;;  %v5258_v14 = vrot.slane %v5257_v52, 2  ;;  %s9572_s28 = smov (!%p5235_p8, %s8149_s28), 3 }
 0x6a4   : > { %v5263_v10 = vadd.f32 %v5262_v32, %v5250_v59  ;;  %v5276_v19 = vrot.slane %v5275_v9, 2  ;;  %v5297_v0 = vadd.f32 %v5296_v57, %v5295_v8  ;;  %s6595_s19 = smul.u32 14, %s9572_s28 }
 0x6a5   : > { %v5270_v17 = vrot.slane %v5269_v25, 2  ;;  %v5259_v42 = vadd.f32 %v5258_v14, %v5257_v52  ;;  %v5324_v14 = vrot.slane %v5307_v35, 4 }
 0x6a6   : > { %v5264_v23 = vrot.slane %v5263_v10, 2  ;;  %v5277_v31 = vadd.f32 %v5276_v19, %v5275_v9  ;;  %v5318_v9 = vrot.slane %v5306_v46, 4  ;;  %s5239_s2 = scalar_lea.vmem [#allocation11], %s6595_s19 }
 0x6a7   : > { %v5271_v45 = vadd.f32 %v5270_v17, %v5269_v25  ;;  %v5260_v62 = vrot.slane %v5259_v42, 1  ;;  %v5311_v25 = vmul.f32 %v5255_v29, %v5255_v29 }
 0x6a8   : > { %v9314_v20 = vld [vmem:[%s9515_s11 + $0x20] sm:$0xff]  ;;  %v5265_v4 = vadd.f32 %v5264_v23, %v5263_v10  ;;  %v5278_v1 = vrot.slane %v5277_v31, 1  ;;  %v9359_v10 = vmul.f32 0.5, %v5297_v0 }
 0x6a9   : > { %v9319_v12 = vld [vmem:[%s9515_s11 + $0x28] sm:$0xff]  ;;  %v5253_v6 = vsel %vm2442_vm1, %v9314_v20, 0.0  ;;  %v5272_v43 = vrot.slane %v5271_v45, 1  ;;  %v5261_v38 = vadd.f32 %v5260_v62, %v5259_v42  ;;  %v5348_v23 = vrot.slane %v5311_v25, 4 }
 0x6aa   : > { %v5254_v15 = vsel %vm2442_vm1, %v9319_v12, 0.0  ;;  %v5280_v36 = vrot.slane %v5253_v6, 4  ;;  %v5266_v41 = vrot.slane %v5265_v4, 1  ;;  %v5279_v61 = vadd.f32 %v5278_v1, %v5277_v31 }
 0x6ab   : > { %v5286_v60 = vrot.slane %v5254_v15, 4  ;;  %v5273_v56 = vadd.f32 %v5272_v43, %v5271_v45  ;;  %v5309_v59 = vmul.f32 %v5253_v6, %v5253_v6  ;;  %v9347_v28 = vmul.f32 0.5, %v5261_v38 }
 0x6ac   : > { %v5281_v37 = vadd.f32 %v5280_v36, %v5253_v6  ;;  %v5267_v49 = vadd.f32 %v5266_v41, %v5265_v4  ;;  %v9353_v36 = vmul.f32 0.5, %v5279_v61  ;;  %v5310_v30 = vmul.f32 %v5254_v15, %v5254_v15 }
 0x6ad   : > { %v5287_v16 = vadd.f32 %v5286_v60, %v5254_v15  ;;  %v9351_v52 = vmul.f32 0.5, %v5273_v56  ;;  %v5312_v6 = vrot.slane %v5305_v13, 4  ;;  %v5361_v17 = vmul.f32 %v9347_v28, %v9347_v28 }
 0x6ae   : > { %v5282_v27 = vrot.slane %v5281_v37, 2  ;;  %v9349_v18 = vmul.f32 0.5, %v5267_v49  ;;  %v5342_v11 = vrot.slane %v5310_v30, 4  ;;  %v5319_v42 = vadd.f32 %v5318_v9, %v5306_v46 }
 0x6af   : > { %v5288_v21 = vrot.slane %v5287_v16, 2  ;;  %v5313_v19 = vadd.f32 %v5312_v6, %v5305_v13  ;;  %v5325_v15 = vadd.f32 %v5324_v14, %v5307_v35  ;;  %v5349_v4 = vadd.f32 %v5348_v23, %v5311_v25 }
 0x6b0   : > { %v5283_v39 = vadd.f32 %v5282_v27, %v5281_v37  ;;  %v5330_v37 = vrot.slane %v5308_v51, 4  ;;  %v5343_v48 = vadd.f32 %v5342_v11, %v5310_v30  ;;  %v5362_v29 = vmul.f32 %v9349_v18, %v9349_v18 }
 0x6b1   : > { %v5289_v3 = vadd.f32 %v5288_v21, %v5287_v16  ;;  %v5336_v16 = vrot.slane %v5309_v59, 4  ;;  %v5314_v45 = vrot.slane %v5313_v19, 2  ;;  %v5320_v31 = vrot.slane %v5319_v42, 2 }
 0x6b2   : > { %v5284_v44 = vrot.slane %v5283_v39, 1  ;;  %v5331_v27 = vadd.f32 %v5330_v37, %v5308_v51  ;;  %v5326_v62 = vrot.slane %v5325_v15, 2  ;;  %v5344_v8 = vrot.slane %v5343_v48, 2 }
 0x6b3   : > { %v5290_v58 = vrot.slane %v5289_v3, 1  ;;  %v5337_v21 = vadd.f32 %v5336_v16, %v5309_v59  ;;  %v5350_v41 = vrot.slane %v5349_v4, 2  ;;  %v5363_v13 = vmul.f32 %v9351_v52, %v9351_v52 }
 0x6b4   : > { %v5285_v22 = vadd.f32 %v5284_v44, %v5283_v39  ;;  %v5332_v39 = vrot.slane %v5331_v27, 2  ;;  %v5315_v46 = vadd.f32 %v5314_v45, %v5313_v19  ;;  %v5321_v35 = vadd.f32 %v5320_v31, %v5319_v42 }
 0x6b5   : > { %v5291_v32 = vadd.f32 %v5290_v58, %v5289_v3  ;;  %v5338_v3 = vrot.slane %v5337_v21, 2  ;;  %v5327_v43 = vadd.f32 %v5326_v62, %v5325_v15  ;;  %v5345_v38 = vadd.f32 %v5344_v8, %v5343_v48 }
 0x6b6   : > { %v9355_v60 = vmul.f32 0.5, %v5285_v22  ;;  %v5333_v1 = vadd.f32 %v5332_v39, %v5331_v27  ;;  %v5351_v44 = vadd.f32 %v5350_v41, %v5349_v4  ;;  %v5364_v58 = vmul.f32 %v9353_v36, %v9353_v36 }
 0x6b7   : > { %v9357_v63 = vmul.f32 0.5, %v5291_v32  ;;  %v5339_v51 = vadd.f32 %v5338_v3, %v5337_v21  ;;  %v5316_v57 = vrot.slane %v5315_v46, 1  ;;  %v5322_v49 = vrot.slane %v5321_v35, 1 }
 0x6b8   : > { %v5328_v56 = vrot.slane %v5327_v43, 1  ;;  %v5334_v61 = vrot.slane %v5333_v1, 1  ;;  %v5346_v22 = vrot.slane %v5345_v38, 1  ;;  %v5352_v32 = vrot.slane %v5351_v44, 1 }
 0x6b9   : > { %v5340_v59 = vrot.slane %v5339_v51, 1  ;;  %v5365_v0 = vmul.f32 %v9355_v60, %v9355_v60  ;;  %v5317_v30 = vadd.f32 %v5316_v57, %v5315_v46  ;;  %v5323_v25 = vadd.f32 %v5322_v49, %v5321_v35 }
 0x6ba   : > { %v5329_v6 = vadd.f32 %v5328_v56, %v5327_v43  ;;  %v5335_v9 = vadd.f32 %v5334_v61, %v5333_v1  ;;  %v5347_v37 = vadd.f32 %v5346_v22, %v5345_v38  ;;  %v5353_v16 = vadd.f32 %v5352_v32, %v5351_v44 }
 0x6bb   : > { %v5341_v14 = vadd.f32 %v5340_v59, %v5339_v51  ;;  %v5366_v11 = vmul.f32 %v9357_v63, %v9357_v63  ;;  %v5354_v23 = vmul.f32 0.5, %v5317_v30  ;;  %v5355_v19 = vmul.f32 0.5, %v5323_v25 }
 0x6bc   : > { %v5356_v42 = vmul.f32 0.5, %v5329_v6  ;;  %v5357_v15 = vmul.f32 0.5, %v5335_v9  ;;  %v5359_v21 = vmul.f32 0.5, %v5347_v37  ;;  %v5360_v48 = vmul.f32 0.5, %v5353_v16 }
 0x6bd   : > { %v5358_v27 = vmul.f32 0.5, %v5341_v14  ;;  %v5367_v4 = vmul.f32 %v9359_v10, %v9359_v10  ;;  %v5368_v45 = vsub.f32 %v5354_v23, %v5361_v17  ;;  %v5369_v31 = vsub.f32 %v5355_v19, %v5362_v29  ;;  %v9382_v17 = vld [vmem:[%s5239_s2] sm:$0xff] }
 0x6be   : > { %v5370_v62 = vsub.f32 %v5356_v42, %v5363_v13  ;;  %v5371_v39 = vsub.f32 %v5357_v15, %v5364_v58  ;;  %v5373_v8 = vsub.f32 %v5359_v21, %v5366_v11  ;;  %v9384_v13 = vld [vmem:[%s5239_s2 + $0x8] sm:$0x3f]  ;;  %v5410_v59 = vmul.f32 1.442695, %v9382_v17 }
 0x6bf   : > { %v5372_v3 = vsub.f32 %v5358_v27, %v5365_v0  ;;  %v5375_v41 = vmax.f32 %v5368_v45, 0.0  ;;  %v5376_v46 = vmax.f32 %v5369_v31, 0.0  ;;  %v5374_v35 = vsub.f32 %v5360_v48, %v5367_v4 }
 0x6c0   : > { %v5377_v43 = vmax.f32 %v5370_v62, 0.0  ;;  %v5378_v1 = vmax.f32 %v5371_v39, 0.0  ;;  %v5380_v44 = vmax.f32 %v5373_v8, 0.0  ;;  %v5412_v32 = vmul.f32 1.442695, %v9384_v13 }
 0x6c1   : > { %v5379_v51 = vmax.f32 %v5372_v3, 0.0  ;;  %v5389_v38 = vadd.f32 1e-05, %v5375_v41  ;;  %v5390_v57 = vadd.f32 1e-05, %v5376_v46  ;;  %v5381_v49 = vmax.f32 %v5374_v35, 0.0 }
 0x6c2   : > { %v5391_v56 = vadd.f32 1e-05, %v5377_v43  ;;  %v5392_v61 = vadd.f32 1e-05, %v5378_v1  ;;  %v5394_v58 = vadd.f32 1e-05, %v5380_v44  ;;  %v5382_v30 = vsub.f32 %v9294_v26, %v9347_v28 }
 0x6c3   : > { %7572 = vrsqrt.f32 %v5389_v38  ;;  %v5393_v29 = vadd.f32 1e-05, %v5379_v51  ;;  %v5395_v22 = vadd.f32 1e-05, %v5381_v49  ;;  %v5502_v0 = vsub.s32 7, %v8411_v50 }
 0x6c4   : > { %7574 = vrsqrt.f32 %v5390_v57  ;;  %v5383_v25 = vsub.f32 %v9299_v47, %v9349_v18  ;;  %v5384_v6 = vsub.f32 %v9304_v5, %v9351_v52  ;;  %v5385_v9 = vsub.f32 %v9309_v54, %v9353_v36 }
 0x6c5   : > { %7576 = vrsqrt.f32 %v5391_v56  ;;  %v5491_v14 = vrot.slane %v9382_v17, %v8418_v55  ;;  %v5495_v16 = vrot.slane %v9382_v17, %v8483_v40  ;;  %v5499_v26 = vrot.slane %v9382_v17, %v8547_v34 }
 0x6c6   : > { %7578 = vrsqrt.f32 %v5392_v61  ;;  %v9404_v47 = vrot.slane %v9382_v17, %v5502_v0  ;;  %v5507_v28 = vrot.slane %v9384_v13, %v8418_v55  ;;  %v5511_v54 = vrot.slane %v9384_v13, %v8483_v40 }
 0x6c7   : > { %7580 = vrsqrt.f32 %v5393_v29  ;;  %v5515_v18 = vrot.slane %v9384_v13, %v8547_v34  ;;  %v5386_v36 = vsub.f32 %v9314_v20, %v9355_v60  ;;  %v5387_v11 = vsub.f32 %v9319_v12, %v9357_v63 }
 0x6c8   : > { %7582 = vrsqrt.f32 %v5394_v58  ;;  %v7908_v23 = vmov 1983009808   ;;  %v5388_v15 = vsub.f32 %v9333_v2, %v9359_v10  ;;  %v5526_v27 = vrot.slane %v5491_v14, %v8418_v55 }
 0x6c9   : > { %7584 = vrsqrt.f32 %v5395_v22  ;;  %v9416_v19 = vunpack.c.l.s4 %v7908_v23  ;;  %v5530_v48 = vrot.slane %v5495_v16, %v8418_v55  ;;  %v5534_v4 = vrot.slane %v5499_v26, %v8418_v55 }
 0x6ca   : > { %7586 = vpow2.f32 %v5410_v59  ;;  %v5538_v20 = vrot.slane %v9404_v47, %v8418_v55  ;;  %v5542_v60 = vrot.slane %v5507_v28, %v8418_v55  ;;  %v5546_v63 = vrot.slane %v5511_v54, %v8418_v55 }
 0x6cb   : > { %7588 = vpow2.f32 %v5412_v32  ;;  %v5550_v45 = vrot.slane %v5515_v18, %v8418_v55  ;;  %v5598_v62 = vunpack.c.0.s8 %v9416_v19  ;;  %v7909_v39 = vmov 1966171168  }
 0x6cc   : > { %7590 = vlog2.f32 %v5389_v38  ;;  %v9429_v3 = vunpack.c.l.s4 %v7909_v39 }
 0x6cd   : > { %v7573_v37 = vpop.eup %7572  ;;  %7592 = vlog2.f32 %v5390_v57 }
 0x6ce   : > { %v7575_v5 = vpop.eup %7574  ;;  %7594 = vlog2.f32 %v5391_v56  ;;  %v5403_v10 = vmul.f32 %v7573_v37, %v5382_v30 }
 0x6cf   : > { %v7577_v52 = vpop.eup %7576  ;;  %7596 = vlog2.f32 %v5392_v61  ;;  %v5404_v31 = vmul.f32 %v7575_v5, %v5383_v25 }
 0x6d0   : > { %v7579_v42 = vpop.eup %7578  ;;  %7598 = vlog2.f32 %v5393_v29  ;;  %v5405_v41 = vmul.f32 %v7577_v52, %v5384_v6 }
 0x6d1   : > { %v7581_v21 = vpop.eup %7580  ;;  %7600 = vlog2.f32 %v5394_v58  ;;  %v5406_v46 = vmul.f32 %v7579_v42, %v5385_v9 }
 0x6d2   : > { %v7583_v12 = vpop.eup %7582  ;;  %7602 = vlog2.f32 %v5395_v22  ;;  %v5407_v35 = vmul.f32 %v7581_v21, %v5386_v36 }
 0x6d3   : > { %v7585_v2 = vpop.eup %7584  ;;  %v5408_v43 = vmul.f32 %v7583_v12, %v5387_v11 }
 0x6d4   : > { %v7587_v8 = vpop.eup %7586  ;;  %v5409_v56 = vmul.f32 %v7585_v2, %v5388_v15 }
 0x6d5   : > { %v7589_v1 = vpop.eup %7588  ;;  %v5419_v51 = vrot.slane %v7587_v8, %v8443_v7  ;;  %v5423_v38 = vrot.slane %v7587_v8, %v8532_v24  ;;  %v5427_v44 = vrot.slane %v7587_v8, %v8627_v53  ;;  %v5431_v57 = vrot.slane %v7587_v8, %v8676_v33 }
 0x6d6   : > { %v7591_v49 = vpop.eup %7590  ;;  %v5435_v61 = vrot.slane %v7589_v1, %v8443_v7  ;;  %v5439_v29 = vrot.slane %v7589_v1, %v8532_v24  ;;  %v5443_v58 = vrot.slane %v7589_v1, %v8627_v53 }
 0x6d7   : > { %v7593_v59 = vpop.eup %7592  ;;  %v5454_v22 = vrot.slane %v5419_v51, %v8443_v7  ;;  %v5458_v32 = vrot.slane %v5423_v38, %v8443_v7  ;;  %v5462_v0 = vrot.slane %v5427_v44, %v8443_v7  ;;  %v5466_v30 = vrot.slane %v5431_v57, %v8443_v7 }
 0x6d8   : > { %v7595_v25 = vpop.eup %7594  ;;  %v5470_v6 = vrot.slane %v5435_v61, %v8443_v7  ;;  %v5474_v9 = vrot.slane %v5439_v29, %v8443_v7  ;;  %v5478_v14 = vrot.slane %v5443_v58, %v8443_v7  ;;  %v5567_v37 = vmul.f32 0.6931472, %v7591_v49 }
 0x6d9   : > { %v7597_v16 = vpop.eup %7596  ;;  %v5479_v26 = vmul.f32 %v5454_v22, %v5403_v10  ;;  %v5480_v47 = vmul.f32 %v5458_v32, %v5404_v31  ;;  %v5481_v5 = vmul.f32 %v5462_v0, %v5405_v41  ;;  %v5482_v28 = vmul.f32 %v5466_v30, %v5406_v46  ;;  %v5565_v30 = vld [vmem:[#allocation4] sm:$0xff] }
 0x6da   : > { %v7599_v54 = vpop.eup %7598  ;;  %v5483_v18 = vmul.f32 %v5470_v6, %v5407_v35  ;;  %v5484_v52 = vmul.f32 %v5474_v9, %v5408_v43  ;;  %v5485_v36 = vmul.f32 %v5478_v14, %v5409_v56  ;;  %v5569_v11 = vmul.f32 0.6931472, %v7593_v59 }
 0x6db   : > { %v7601_v23 = vpop.eup %7600  ;;  %v5551_v19 = vadd.f32 %v5526_v27, %v5479_v26  ;;  %v5552_v42 = vadd.f32 %v5530_v48, %v5480_v47  ;;  %v5553_v15 = vadd.f32 %v5534_v4, %v5481_v5  ;;  %v5554_v21 = vadd.f32 %v5538_v20, %v5482_v28 }
 0x6dc   : > { %v7603_v12 = vpop.eup %7602  ;;  %v5555_v2 = vadd.f32 %v5542_v60, %v5483_v18  ;;  %v5556_v39 = vadd.f32 %v5546_v63, %v5484_v52  ;;  %v5557_v8 = vadd.f32 %v5550_v45, %v5485_v36  ;;  %v5571_v1 = vmul.f32 0.6931472, %v7595_v25 }
 0x6dd   : > { %5558 = vst [vmem:[%s9515_s11] sm:$0xff] %v5551_v19  ;;  %5559 = vst [vmem:[%s9515_s11 + $0x8] sm:$0xff] %v5552_v42  ;;  %v5573_v27 = vmul.f32 0.6931472, %v7597_v16  ;;  %v5575_v48 = vmul.f32 0.6931472, %v7599_v54  ;;  %v5601_v20 = vsub.s32 %v5598_v62, %v8411_v50  ;;  %v5580_v63 = vmul.f32 0.5, %v5567_v37 }
 0x6de   : > { %5560 = vst [vmem:[%s9515_s11 + $0x10] sm:$0xff] %v5553_v15  ;;  %5561 = vst [vmem:[%s9515_s11 + $0x18] sm:$0xff] %v5554_v21  ;;  %v5577_v4 = vmul.f32 0.6931472, %v7601_v23  ;;  %v5579_v60 = vmul.f32 0.6931472, %v7603_v12  ;;  %v5635_v38 = vunpack.c.0.s8 %v9429_v3 }
 0x6df   : > { %5562 = vst [vmem:[%s9515_s11 + $0x20] sm:$0xff] %v5555_v2  ;;  %5563 = vst [vmem:[%s9515_s11 + $0x28] sm:$0xff] %v5556_v39  ;;  %v5581_v45 = vmul.f32 0.5, %v5569_v11  ;;  %v5582_v10 = vmul.f32 0.5, %v5571_v1  ;;  %v5583_v31 = vmul.f32 0.5, %v5573_v27  ;;  %v5584_v41 = vmul.f32 0.5, %v5575_v48 }
 0x6e0   : > { %5564 = vst [vmem:[%s9515_s11 + $0x30] sm:$0xff] %v5557_v8  ;;  %v5585_v46 = vmul.f32 0.5, %v5577_v4  ;;  %v5586_v62 = vmul.f32 0.5, %v5579_v60  ;;  %v5638_v58 = vsub.s32 %v5635_v38, %v8411_v50 }
 0x6e1   : > { %v5594_v35 = vcombine.low %v5580_v63, %v5581_v45  ;;  %v5595_v43 = vcombine.low %v5582_v10, %v5583_v31 }
 0x6e2   : > { %v5611_v51 = vcombine.low %v5584_v41, %v5585_v46  ;;  %v5625_v57 = vrot.slane %v5586_v62, %v5601_v20 }
 0x6e3   : > { %v5602_v44 = vrot.slane %v5594_v35, %v5601_v20  ;;  %v5609_v49 = vrot.slane %v5595_v43, %v5601_v20 }
 0x6e4   : > { %v5618_v56 = vrot.slane %v5611_v51, %v5601_v20 }
 0x6e5   : > { %v5610_v61 = vcombine.low %v5602_v44, %v5609_v49 }
 0x6e6   : > { %v5626_v29 = vcombine.low %v5618_v56, %v5625_v57 }
 0x6e7   : > { %v5629_v59 = vsub.f32 %v9382_v17, %v5610_v61 }
 0x6e8   : > { %v5630_v22 = vsub.f32 %v9384_v13, %v5626_v29 }
 0x6e9   : > { %v5639_v32 = vrot.slane %v5629_v59, %v5638_v58 }
 0x6ea   : > { %v5646_v0 = vrot.slane %v5630_v22, %v5638_v58 }
 0x6ec   : > { %v5647_v25 = vcombine.low %v5639_v32, %v5646_v0 }
 0x6ee   : > { %v5649_v6 = vmul.f32 %v5647_v25, %v5565_v30 }
 0x6f0   : > { %v5654_v3 = vrot.slane %v5649_v6, %v8443_v7  ;;  %v5658_v9 = vrot.slane %v5649_v6, %v8418_v55  ;;  %v5662_v14 = vrot.slane %v5649_v6, %v8532_v24  ;;  %v5666_v37 = vrot.slane %v5649_v6, %v8483_v40 }
 0x6f1   : > { %v5670_v50 = vrot.slane %v5649_v6, %v8627_v53  ;;  %v5674_v47 = vrot.slane %v5649_v6, %v8547_v34  ;;  %v5678_v55 = vrot.slane %v5649_v6, %v8676_v33  ;;  %v5709_v33 = vld [vmem:[%s9516_s12] sm:$0xff] }
 0x6f2   : > { %v5687_v17 = vsel %vm5686_vm2, %v5654_v3, 0.0  ;;  %v5688_v13 = vsel %vm5686_vm2, %v5658_v9, 0.0  ;;  %v5690_v16 = vsel %vm5686_vm2, %v5662_v14, 0.0  ;;  %v5692_v5 = vsel %vm5686_vm2, %v5666_v37, 0.0 }
 0x6f3   : > { %v5689_v26 = vadd.f32 %v5688_v13, %v5687_v17  ;;  %v5694_v24 = vsel %vm5686_vm2, %v5670_v50, 0.0  ;;  %v5696_v40 = vsel %vm5686_vm2, %v5674_v47, 0.0  ;;  %v5698_v54 = vsel %vm5686_vm2, %v5678_v55, 0.0 }
 0x6f5   : > { %v5691_v7 = vadd.f32 %v5690_v16, %v5689_v26 }
 0x6f7   : > { %v5693_v28 = vadd.f32 %v5692_v5, %v5691_v7 }
 0x6f9   : > { %v5695_v53 = vadd.f32 %v5694_v24, %v5693_v28 }
 0x6fb   : > { %v5697_v18 = vadd.f32 %v5696_v40, %v5695_v53 }
 0x6fd   : > { %v5699_v52 = vadd.f32 %v5698_v54, %v5697_v18 }
 0x6ff   : > { %5700 = vadd.xlane.f32.xlu0 %v5699_v52 }
 0x78c   : > { %v5701_v36 = vpop.xlane.xlu0 %5700 }
 0x78d   : > { %v5702_v11 = vrot.slane %v5701_v36, 4 }
 0x78f   : > { %v5703_v23 = vadd.f32 %v5702_v11, %v5701_v36 }
 0x791   : > { %v5704_v34 = vrot.slane %v5703_v23, 2 }
 0x793   : > { %v5705_v19 = vadd.f32 %v5704_v34, %v5703_v23 }
 0x795   : > { %v5706_v42 = vrot.slane %v5705_v19, 1 }
 0x797   : > { %v5707_v15 = vadd.f32 %v5706_v42, %v5705_v19 }
 0x799   : > { %6679 = vpush %v5707_v15 }
 0x7ca   : > { %s6680_s17 = spop %6679 }
 0x7cb   : > { %v5710_v21 = vstv %s6680_s17 }
 0x7cc   : > { %v5711_v12 = vadd.f32 %v5710_v21, %v5709_v33 }
 0x7ce   : > { %5712 = vst [vmem:[%s9516_s12] sm:$0xff] %v5711_v12 }
 0x7cf PF: > { %s9566_s24 = sld [smem:[#allocation17_spill]]  ;;  %s9567_s16 = sld [smem:[#allocation16_spill]] }
 0x7d0   : > { %s9568_s23 = sld [smem:[#allocation18_spill]]  ;;  %s9569_s21 = smov %s7878_s22 }
 0x7d5   : > { %p24_p1 = scmp.ge.s32.totalorder %s9566_s24, 8   ;;  %s9570_s22 = smov %s9567_s16 }
 0x7d7   :  { %26 = sbr.rel (!%p24_p1) target bundleno = 10 (0xa), region = 187 }
 0x7de   :  { %5730 = vsyncpa [#allocation3], 1 }
 0x7df   :  { %5732 = vsyncpa [#allocation3 + $0x1], 1 }
 0x7e0   :  { %5733 = vsyncpa [#allocation5], 1 }

</bundles_post_ra>
